<compile_context>
chip_gen: v5e
topology: v5e:2x2
jax: 0.10.0
libtpu: 0.0.40
codegen_flags: <defaults>
</compile_context>

<pallas_src>
import math

import numpy as np
import jax
import jax.numpy as jnp
from jax.experimental import pallas as pl
from jax.experimental.pallas import tpu as pltpu

C_IN = 64   # CSFblock in_channels (fixed by the torch module: CSFblock(64, 32))
C_MID = 32  # CSFblock channels_1

_HIGHEST = jax.lax.Precision.HIGHEST


# ----------------------------------------------------------------------------
# Host-side matrix builders (exact PyTorch bilinear / pooling semantics)
# ----------------------------------------------------------------------------
def bilinear_matrix(out_size, in_size):
    """(out_size, in_size) interpolation matrix for 1-D bilinear resize
    (align_corners=False), identical to F.interpolate."""
    scale = in_size / out_size
    o = np.arange(out_size, dtype=np.float64)
    real = np.maximum(scale * (o + 0.5) - 0.5, 0.0)
    i0 = np.minimum(np.floor(real).astype(np.int64), in_size - 1)
    i1 = np.minimum(i0 + 1, in_size - 1)
    l1 = real - i0
    l0 = 1.0 - l1
    A = np.zeros((out_size, in_size), dtype=np.float64)
    A[np.arange(out_size), i0] += l0
    A[np.arange(out_size), i1] += l1
    return A


def pool_select_matrix(W):
    """Stacked (3*P, W) 0/1 selection matrix for MaxPool W-direction.

    Section 0 selects column 2j (center tap), section 1 column max(2j-1, 0)
    (left tap; the clamp duplicates the center at j==0, a no-op under max),
    section 2 column 2j+1 (right tap).  Each section is padded to P = ceil8(Wo)
    rows so the in-kernel slices start at 8-aligned sublane offsets.
    """
    Wo = W // 2
    P = 8 * ((Wo + 7) // 8)
    A = np.zeros((3 * P, W), np.float32)
    for j in range(Wo):
        A[j, 2 * j] = 1.0
        A[P + j, max(2 * j - 1, 0)] = 1.0
        A[2 * P + j, min(2 * j + 1, W - 1)] = 1.0
    return A


def column_select_matrix(W, offset):
    """(W//2, W) 0/1 matrix selecting column 2k+offset (offset in {0,1})."""
    Wo = W // 2
    A = np.zeros((Wo, W), np.float32)
    A[np.arange(Wo), 2 * np.arange(Wo) + offset] = 1.0
    return A


# ----------------------------------------------------------------------------
# In-kernel building blocks (channels-last values, shapes (BT, rows, cols, C))
# ----------------------------------------------------------------------------
def _contract_cols(mat, x):
    """out[..., j, c] = sum_w mat[j, w] * x[..., w, c]   (HIGHEST precision).

    mat: (Wout, Win); x: (..., Win, C).  Leading dims are merged (free, major
    dims only) and the contraction runs as a canonical batched matmul on the
    MXU -- no minor-dim reshape / transpose.
    """
    lead = x.shape[:-2]
    Win, C = x.shape[-2:]
    R = math.prod(lead)
    x3 = x.reshape((R, Win, C))
    mat_b = jnp.broadcast_to(mat[None], (R,) + mat.shape)
    out = jax.lax.dot_general(
        mat_b, x3,
        dimension_numbers=(((2,), (1,)), ((0,), (0,))),
        precision=_HIGHEST,
        preferred_element_type=jnp.float32)
    return out.reshape(lead + (mat.shape[0], C))


def _maxpool_3x3_s2_p1(x, sel):
    """MaxPool2d(3, stride=2, padding=1) on a channels-last (BT, H, W, C) map."""
    BT, H, W, C = x.shape
    Ho, Wo = H // 2, W // 2
    P = sel.shape[0] // 3
    # ---- H direction (major dim): separable 3-tap max, stride-2 direct ------
    x5 = x.reshape(BT, Ho, 2, W, C)
    xe = x5[:, :, 0]                      # rows 2i
    xo = x5[:, :, 1]                      # rows 2i+1
    rmax = jnp.maximum(xe, xo)            # taps 2i, 2i+1
    if Ho > 1:                            # tap 2i-1 (row -1 is padding -> skip)
        rmax = jnp.concatenate(
            [rmax[:, :1], jnp.maximum(rmax[:, 1:], xo[:, :Ho - 1])], axis=1)
    # ---- W direction: one stacked 0/1 select matmul (exact with HIGHEST),
    #      then elementwise max of the three aligned sections --------------
    taps = _contract_cols(sel, rmax)      # (BT, Ho, 3P, C)
    out = jnp.maximum(
        jnp.maximum(taps[:, :, 0:Wo, :], taps[:, :, P:P + Wo, :]),
        taps[:, :, 2 * P:2 * P + Wo, :])
    return out                            # (BT, Ho, Wo, C)


def _upsample_rows_2x(x):
    """Exact 2x bilinear (align_corners=False) along the H (major) axis.

    Vectorized shifted FMAs + even/odd row interleave; no MXU, no per-row loop.
    (The FPN pyramid ratios are exactly 2 given H, W multiples of 8.)
    """
    BT, hl, w, C = x.shape
    prev = jnp.concatenate([x[:, :1], x[:, :hl - 1]], axis=1)   # row I-1, edge-clamped
    nxt = jnp.concatenate([x[:, 1:], x[:, hl - 1:]], axis=1)    # row I+1, edge-clamped
    even = 0.25 * prev + 0.75 * x                               # output rows 2I
    odd = 0.75 * x + 0.25 * nxt                                 # output rows 2I+1
    out = jnp.stack([even, odd], axis=2)                        # (BT, hl, 2, w, C)
    return out.reshape(BT, 2 * hl, w, C)


def _se_attention(g, w1, w2, wse):
    """Squeeze-excite attention; g: (BT, C); returns softmax weights a1, a2."""
    C = g.shape[-1]
    t = jnp.dot(g, w1, precision=_HIGHEST, preferred_element_type=jnp.float32)
    s = jnp.dot(t, w2, precision=_HIGHEST, preferred_element_type=jnp.float32)
    se = jnp.dot(s, wse, precision=_HIGHEST, preferred_element_type=jnp.float32)
    se1 = se[:, :C]
    se2 = se[:, C:]
    m = jnp.maximum(se1, se2)
    e1 = jnp.exp(se1 - m)
    e2 = jnp.exp(se2 - m)
    inv = 1.0 / (e1 + e2)                 # exact: a1 + a2 == 1
    return e1 * inv, e2 * inv


def _csf(x_h, x_l, a_w, w1, w2, wse):
    """CSFblock forward (unfolded layout); x_h (BT,h,w,C), x_l (BT,h/2,w/2,C)."""
    BT, h, w, C = x_h.shape
    if x_l.shape != x_h.shape:
        up = _upsample_rows_2x(x_l)                 # (BT, h, w/2, C)
        x2 = _contract_cols(a_w, up)                # (BT, h, w, C)
    else:
        x2 = x_l
    xf = x_h + x2
    g = jnp.sum(jnp.sum(xf, axis=1), axis=1) * (1.0 / (h * w))   # (BT, C)
    a1, a2 = _se_attention(g, w1, w2, wse)
    return a1[:, None, None, :] * x_h + a2[:, None, None, :] * x2


def _csf_folded(x_h, x_l, aw_e, aw_o, fe, fo, w1, w2, wse):
    """CSFblock forward producing a lane-dense column-folded result.

    Output layout: (BT, h, w/2, 2C) with [.., k, 0:C] = column 2k and
    [.., k, C:2C] = column 2k+1, i.e. a contiguous view of the NHWC result.
    All large elementwise work runs at full 128-lane width.
    """
    BT, h, w, C = x_h.shape
    up = _upsample_rows_2x(x_l)                     # (BT, h, w/2, C)
    x2e = _contract_cols(aw_e, up)                  # even output cols
    x2o = _contract_cols(aw_o, up)                  # odd output cols
    x2f = jnp.concatenate([x2e, x2o], axis=-1)      # (BT, h, w/2, 2C)
    x1e = _contract_cols(fe, x_h)                   # fold x_h the same way
    x1o = _contract_cols(fo, x_h)
    x1f = jnp.concatenate([x1e, x1o], axis=-1)
    xff = x1f + x2f
    gf = jnp.sum(jnp.sum(xff, axis=1), axis=1)      # (BT, 2C)
    g = (gf[:, :C] + gf[:, C:]) * (1.0 / (h * w))   # (BT, C)
    a1, a2 = _se_attention(g, w1, w2, wse)
    a1f = jnp.concatenate([a1, a1], axis=-1)[:, None, None, :]
    a2f = jnp.concatenate([a2, a2], axis=-1)[:, None, None, :]
    return a1f * x1f + a2f * x2f                    # (BT, h, w/2, 2C)


# ----------------------------------------------------------------------------
# Fused FPN kernel (one grid step per batch tile)
# ----------------------------------------------------------------------------
def _fpn_kernel(x_ref, sp1_ref, sp2_ref, sp3_ref,
                aw1_ref, aw2e_ref, aw2o_ref, fe_ref, fo_ref,
                w1a1_ref, w1b1_ref, wse1_ref,
                w1a2_ref, w1b2_ref, wse2_ref,
                o_ref):
    x = x_ref[...]                                   # (BT, H, W, C)
    x1 = _maxpool_3x3_s2_p1(x, sp1_ref[...])         # (BT, H/2, W/2, C)
    x2 = _maxpool_3x3_s2_p1(x1, sp2_ref[...])        # (BT, H/4, W/4, C)
    x3 = _maxpool_3x3_s2_p1(x2, sp3_ref[...])        # (BT, H/8, W/8, C)
    x2 = _csf(x2, x3, aw1_ref[...],
              w1a1_ref[...], w1b1_ref[...], wse1_ref[...])
    o_ref[...] = _csf_folded(
        x1, x2, aw2e_ref[...], aw2o_ref[...], fe_ref[...], fo_ref[...],
        w1a2_ref[...], w1b2_ref[...], wse2_ref[...])


def _pick_batch_tile(B, per_image_bytes, target_bytes=1 << 20,
                     vmem_budget=40 << 20):
    bt = max(1, min(B, target_bytes // max(per_image_bytes, 1)))
    # keep >= 2 grid steps when B >= 2 so both v7x TensorCores get work
    while bt > 1 and B // bt < 2:
        bt -= 1
    # conservative VMEM budget: double-buffered I/O + resident intermediates
    while bt > 1 and bt * per_image_bytes * 14 > vmem_budget:
        bt -= 1
    while B % bt:
        bt -= 1
    return bt


def fpn_forward_nhwc(x_nhwc, p_csf1, p_csf2, *, batch_tile=None):
    """FPN forward on a channels-last input (B, H, W, 64); returns NHWC."""
    B, H, W, C = x_nhwc.shape
    assert C == C_IN and H % 8 == 0 and W % 8 == 0, (B, H, W, C)
    H1, W1 = H // 2, W // 2
    H2, W2 = H // 4, W // 4
    H3, W3 = H // 8, W // 8

    per_image = H * W * C * 4
    bt = batch_tile or _pick_batch_tile(B, per_image)

    # Host-precomputed matrices (hoisted out of the kernel).
    sp1 = jnp.asarray(pool_select_matrix(W), jnp.float32)
    sp2 = jnp.asarray(pool_select_matrix(W1), jnp.float32)
    sp3 = jnp.asarray(pool_select_matrix(W2), jnp.float32)
    aw1 = jnp.asarray(bilinear_matrix(W2, W3), jnp.float32)
    aw2 = bilinear_matrix(W1, W2)
    aw2e = jnp.asarray(aw2[0::2], jnp.float32)      # even output columns
    aw2o = jnp.asarray(aw2[1::2], jnp.float32)      # odd output columns
    fe = jnp.asarray(column_select_matrix(W1, 0), jnp.float32)
    fo = jnp.asarray(column_select_matrix(W1, 1), jnp.float32)

    # 1x1 conv weights as (in, out); SE1/SE2 fused into a single (C, 2C).
    w1a1, w1b1 = p_csf1["w1a"].T, p_csf1["w1b"].T
    w1a2, w1b2 = p_csf2["w1a"].T, p_csf2["w1b"].T
    wse1 = jnp.concatenate([p_csf1["ws1"].T, p_csf1["ws2"].T], axis=1)
    wse2 = jnp.concatenate([p_csf2["ws1"].T, p_csf2["ws2"].T], axis=1)

    # VMEM budget: double-buffered in/out blocks + resident intermediates.
    blk_in = bt * per_image
    blk_out = bt * H1 * W1 * C * 4
    vmem_need = 2 * (blk_in + blk_out) + 12 * blk_in + (2 << 20)
    vmem_limit = int(min(96 << 20, max(32 << 20, vmem_need)))

    def wspec(a):
        shp = a.shape
        return pl.BlockSpec(shp, lambda b: (0,) * len(shp))

    out_folded = pl.pallas_call(
        _fpn_kernel,
        out_shape=jax.ShapeDtypeStruct((B, H1, W1 // 2, 2 * C), jnp.float32),
        grid=(B // bt,),
        in_specs=[
            pl.BlockSpec((bt, H, W, C), lambda b: (b, 0, 0, 0)),
            wspec(sp1), wspec(sp2), wspec(sp3),
            wspec(aw1), wspec(aw2e), wspec(aw2o), wspec(fe), wspec(fo),
            wspec(w1a1), wspec(w1b1), wspec(wse1),
            wspec(w1a2), wspec(w1b2), wspec(wse2),
        ],
        out_specs=pl.BlockSpec((bt, H1, W1 // 2, 2 * C),
                               lambda b: (b, 0, 0, 0)),
        compiler_params=pltpu.CompilerParams(
            dimension_semantics=("parallel",),
            vmem_limit_bytes=vmem_limit),
    )(x_nhwc, sp1, sp2, sp3, aw1, aw2e, aw2o, fe, fo,
      w1a1, w1b1, wse1, w1a2, w1b2, wse2)

    # Unfold the lane-dense slab back to NHWC (contiguous reshape, free).
    return out_folded.reshape(B, H1, W1, C)


def fpn_forward(x, p_csf1, p_csf2, *, batch_tile=None):
    """FPN forward, NCHW interface matching the torch module.

    The NCHW<->NHWC transposes live outside the kernel; callers that already
    hold NHWC data should use fpn_forward_nhwc directly (no transposes).
    """
    x_nhwc = jnp.transpose(x, (0, 2, 3, 1))
    y = fpn_forward_nhwc(x_nhwc, p_csf1, p_csf2, batch_tile=batch_tile)
    return jnp.transpose(y, (0, 3, 1, 2))


# ----------------------------------------------------------------------------
# Parameter init (bias-free 1x1 convs => plain matrices, shape (out, in))
# ----------------------------------------------------------------------------
def init_csf_params(key, C=C_IN, C1=C_MID):
    k1, k2, k3, k4 = jax.random.split(key, 4)
    return dict(
        w1a=jax.random.normal(k1, (C1, C), jnp.float32) * 0.1,  # layer1[0]: C->C1
        w1b=jax.random.normal(k2, (C, C1), jnp.float32) * 0.1,  # layer1[1]: C1->C
        ws1=jax.random.normal(k3, (C, C), jnp.float32) * 0.1,   # SE1
        ws2=jax.random.normal(k4, (C, C), jnp.float32) * 0.1,   # SE2
    )


# ----------------------------------------------------------------------------
# Pure-JAX reference (numerical sanity check only)
# ----------------------------------------------------------------------------
def _maxpool_ref(x):
    return jax.lax.reduce_window(
        x, -jnp.inf, jax.lax.max,
        (1, 1, 3, 3), (1, 1, 2, 2),
        [(0, 0), (0, 0), (1, 1), (1, 1)],
    )


def _csf_ref(x_h, x_l, p):
    B, C, h, w = x_h.shape
    _, _, hl, wl = x_l.shape
    A_h = jnp.asarray(bilinear_matrix(h, hl), jnp.float32)
    A_w = jnp.asarray(bilinear_matrix(w, wl), jnp.float32)
    x2 = jnp.einsum("hH,bcHW,wW->bchw", A_h, x_l, A_w)
    xf = x_h + x2
    g = jnp.mean(xf, axis=(2, 3))                      # (B, C)
    t = g @ p["w1a"].T
    s = t @ p["w1b"].T
    se1 = s @ p["ws1"].T
    se2 = s @ p["ws2"].T
    att = jax.nn.softmax(jnp.stack([se1, se2], axis=2), axis=2)
    a1 = att[:, :, 0][:, :, None, None]
    a2 = att[:, :, 1][:, :, None, None]
    return a1 * x_h + a2 * x2


def _fpn_ref(x, p1, p2):
    x1 = _maxpool_ref(x)
    x2 = _maxpool_ref(x1)
    x3 = _maxpool_ref(x2)
    x2 = _csf_ref(x2, x3, p1)
    x1 = _csf_ref(x1, x2, p2)
    return x1


if __name__ == "__main__":
    key = jax.random.PRNGKey(0)
    kx, kp1, kp2 = jax.random.split(key, 3)

    # batch=2, channels=64 (required by CSFblock(64, 32)), spatial=16x16
    x = jax.random.normal(kx, (2, C_IN, 16, 16), jnp.float32)
    p1 = init_csf_params(kp1)
    p2 = init_csf_params(kp2)

    out = jax.block_until_ready(jax.jit(fpn_forward)(x, p1, p2))
    assert out.shape == (2, C_IN, 8, 8), out.shape

    ref = jax.block_until_ready(_fpn_ref(x, p1, p2))
    np.testing.assert_allclose(np.asarray(out), np.asarray(ref),
                               rtol=2e-2, atol=2e-2)
    print("KERNEL_OK")
</pallas_src>

<mosaic_0001>
module attributes {stable_mosaic.version = 11 : i64} {
  func.func @_fpn_kernel(%arg0: i32, %arg1: memref<1x16x16x64xf32, #tpu.memory_space<vmem>>, %arg2: memref<24x16xf32, #tpu.memory_space<vmem>>, %arg3: memref<24x8xf32, #tpu.memory_space<vmem>>, %arg4: memref<24x4xf32, #tpu.memory_space<vmem>>, %arg5: memref<4x2xf32, #tpu.memory_space<vmem>>, %arg6: memref<4x4xf32, #tpu.memory_space<vmem>>, %arg7: memref<4x4xf32, #tpu.memory_space<vmem>>, %arg8: memref<4x8xf32, #tpu.memory_space<vmem>>, %arg9: memref<4x8xf32, #tpu.memory_space<vmem>>, %arg10: memref<64x32xf32, #tpu.memory_space<vmem>>, %arg11: memref<32x64xf32, #tpu.memory_space<vmem>>, %arg12: memref<64x128xf32, #tpu.memory_space<vmem>>, %arg13: memref<64x32xf32, #tpu.memory_space<vmem>>, %arg14: memref<32x64xf32, #tpu.memory_space<vmem>>, %arg15: memref<64x128xf32, #tpu.memory_space<vmem>>, %arg16: memref<1x8x4x128xf32, #tpu.memory_space<vmem>>) attributes {dimension_semantics = [#tpu.dimension_semantics<parallel>], iteration_bounds = array<i64: 2>, scalar_prefetch = 0 : i64, scratch_operands = 0 : i64, tpu.core_type = #tpu.core_type<tc>, window_params = [{transform_indices = @transform_0, window_bounds = array<i64: 1, 16, 16, 64>}, {pipeline_mode = #tpu.pipeline_mode<synchronous>, transform_indices = @transform_1, window_bounds = array<i64: 24, 16>}, {pipeline_mode = #tpu.pipeline_mode<synchronous>, transform_indices = @transform_2, window_bounds = array<i64: 24, 8>}, {pipeline_mode = #tpu.pipeline_mode<synchronous>, transform_indices = @transform_3, window_bounds = array<i64: 24, 4>}, {pipeline_mode = #tpu.pipeline_mode<synchronous>, transform_indices = @transform_4, window_bounds = array<i64: 4, 2>}, {pipeline_mode = #tpu.pipeline_mode<synchronous>, transform_indices = @transform_5, window_bounds = array<i64: 4, 4>}, {pipeline_mode = #tpu.pipeline_mode<synchronous>, transform_indices = @transform_6, window_bounds = array<i64: 4, 4>}, {pipeline_mode = #tpu.pipeline_mode<synchronous>, transform_indices = @transform_7, window_bounds = array<i64: 4, 8>}, {pipeline_mode = #tpu.pipeline_mode<synchronous>, transform_indices = @transform_8, window_bounds = array<i64: 4, 8>}, {pipeline_mode = #tpu.pipeline_mode<synchronous>, transform_indices = @transform_9, window_bounds = array<i64: 64, 32>}, {pipeline_mode = #tpu.pipeline_mode<synchronous>, transform_indices = @transform_10, window_bounds = array<i64: 32, 64>}, {pipeline_mode = #tpu.pipeline_mode<synchronous>, transform_indices = @transform_11, window_bounds = array<i64: 64, 128>}, {pipeline_mode = #tpu.pipeline_mode<synchronous>, transform_indices = @transform_12, window_bounds = array<i64: 64, 32>}, {pipeline_mode = #tpu.pipeline_mode<synchronous>, transform_indices = @transform_13, window_bounds = array<i64: 32, 64>}, {pipeline_mode = #tpu.pipeline_mode<synchronous>, transform_indices = @transform_14, window_bounds = array<i64: 64, 128>}, {transform_indices = @transform_15, window_bounds = array<i64: 1, 8, 4, 128>}]} {
    %c0 = arith.constant 0 : index
    %c0_0 = arith.constant 0 : index
    %c0_1 = arith.constant 0 : index
    %c0_2 = arith.constant 0 : index
    %0 = vector.load %arg1[%c0, %c0_0, %c0_1, %c0_2] : memref<1x16x16x64xf32, #tpu.memory_space<vmem>>, vector<1x16x16x64xf32>
    %c0_3 = arith.constant 0 : index
    %c0_4 = arith.constant 0 : index
    %1 = vector.load %arg2[%c0_3, %c0_4] : memref<24x16xf32, #tpu.memory_space<vmem>>, vector<24x16xf32>
    %2 = vector.shape_cast %0 : vector<1x16x16x64xf32> to vector<1x8x2x16x64xf32>
    %3 = vector.extract_strided_slice %2 {offsets = [0, 0, 0, 0, 0], sizes = [1, 8, 1, 16, 64], strides = [1, 1, 1, 1, 1]} : vector<1x8x2x16x64xf32> to vector<1x8x1x16x64xf32>
    %4 = vector.shape_cast %3 : vector<1x8x1x16x64xf32> to vector<1x8x16x64xf32>
    %5 = vector.extract_strided_slice %2 {offsets = [0, 0, 1, 0, 0], sizes = [1, 8, 1, 16, 64], strides = [1, 1, 1, 1, 1]} : vector<1x8x2x16x64xf32> to vector<1x8x1x16x64xf32>
    %6 = vector.shape_cast %5 : vector<1x8x1x16x64xf32> to vector<1x8x16x64xf32>
    %7 = arith.maximumf %4, %6 : vector<1x8x16x64xf32>
    %8 = vector.extract_strided_slice %7 {offsets = [0, 0, 0, 0], sizes = [1, 1, 16, 64], strides = [1, 1, 1, 1]} : vector<1x8x16x64xf32> to vector<1x1x16x64xf32>
    %9 = vector.extract_strided_slice %7 {offsets = [0, 1, 0, 0], sizes = [1, 7, 16, 64], strides = [1, 1, 1, 1]} : vector<1x8x16x64xf32> to vector<1x7x16x64xf32>
    %10 = vector.extract_strided_slice %6 {offsets = [0, 0, 0, 0], sizes = [1, 7, 16, 64], strides = [1, 1, 1, 1]} : vector<1x8x16x64xf32> to vector<1x7x16x64xf32>
    %11 = arith.maximumf %9, %10 : vector<1x7x16x64xf32>
    %12 = tpu.concatenate %8, %11 in 1 : vector<1x1x16x64xf32>, vector<1x7x16x64xf32> -> vector<1x8x16x64xf32>
    %13 = vector.shape_cast %12 : vector<1x8x16x64xf32> to vector<8x16x64xf32>
    %14 = vector.shape_cast %1 : vector<24x16xf32> to vector<1x24x16xf32>
    %15 = vector.shape_cast %14 : vector<1x24x16xf32> to vector<1x24x16xf32>
    %16 = vector.broadcast %15 : vector<1x24x16xf32> to vector<8x24x16xf32>
    %cst = arith.constant dense<0.000000e+00> : vector<8x24x64xf32>
    %17 = tpu.matmul %16, %13, %cst {dimension_numbers = #tpu.dot_dimension_numbers<[2], [1], [1], [2], [0, 0, 0, 1, 1, 2], [0], [0]>, precision = #tpu.contract_precision<fp32>} : vector<8x24x16xf32>, vector<8x16x64xf32>, vector<8x24x64xf32> -> vector<8x24x64xf32>
    %18 = vector.shape_cast %17 : vector<8x24x64xf32> to vector<1x8x24x64xf32>
    %19 = vector.extract_strided_slice %18 {offsets = [0, 0, 0, 0], sizes = [1, 8, 8, 64], strides = [1, 1, 1, 1]} : vector<1x8x24x64xf32> to vector<1x8x8x64xf32>
    %20 = vector.extract_strided_slice %18 {offsets = [0, 0, 8, 0], sizes = [1, 8, 8, 64], strides = [1, 1, 1, 1]} : vector<1x8x24x64xf32> to vector<1x8x8x64xf32>
    %21 = arith.maximumf %19, %20 : vector<1x8x8x64xf32>
    %22 = vector.extract_strided_slice %18 {offsets = [0, 0, 16, 0], sizes = [1, 8, 8, 64], strides = [1, 1, 1, 1]} : vector<1x8x24x64xf32> to vector<1x8x8x64xf32>
    %23 = arith.maximumf %21, %22 : vector<1x8x8x64xf32>
    %c0_5 = arith.constant 0 : index
    %c0_6 = arith.constant 0 : index
    %24 = vector.load %arg3[%c0_5, %c0_6] : memref<24x8xf32, #tpu.memory_space<vmem>>, vector<24x8xf32>
    %25 = vector.shape_cast %23 : vector<1x8x8x64xf32> to vector<1x4x2x8x64xf32>
    %26 = vector.extract_strided_slice %25 {offsets = [0, 0, 0, 0, 0], sizes = [1, 4, 1, 8, 64], strides = [1, 1, 1, 1, 1]} : vector<1x4x2x8x64xf32> to vector<1x4x1x8x64xf32>
    %27 = vector.shape_cast %26 : vector<1x4x1x8x64xf32> to vector<1x4x8x64xf32>
    %28 = vector.extract_strided_slice %25 {offsets = [0, 0, 1, 0, 0], sizes = [1, 4, 1, 8, 64], strides = [1, 1, 1, 1, 1]} : vector<1x4x2x8x64xf32> to vector<1x4x1x8x64xf32>
    %29 = vector.shape_cast %28 : vector<1x4x1x8x64xf32> to vector<1x4x8x64xf32>
    %30 = arith.maximumf %27, %29 : vector<1x4x8x64xf32>
    %31 = vector.extract_strided_slice %30 {offsets = [0, 0, 0, 0], sizes = [1, 1, 8, 64], strides = [1, 1, 1, 1]} : vector<1x4x8x64xf32> to vector<1x1x8x64xf32>
    %32 = vector.extract_strided_slice %30 {offsets = [0, 1, 0, 0], sizes = [1, 3, 8, 64], strides = [1, 1, 1, 1]} : vector<1x4x8x64xf32> to vector<1x3x8x64xf32>
    %33 = vector.extract_strided_slice %29 {offsets = [0, 0, 0, 0], sizes = [1, 3, 8, 64], strides = [1, 1, 1, 1]} : vector<1x4x8x64xf32> to vector<1x3x8x64xf32>
    %34 = arith.maximumf %32, %33 : vector<1x3x8x64xf32>
    %35 = tpu.concatenate %31, %34 in 1 : vector<1x1x8x64xf32>, vector<1x3x8x64xf32> -> vector<1x4x8x64xf32>
    %36 = vector.shape_cast %35 : vector<1x4x8x64xf32> to vector<4x8x64xf32>
    %37 = vector.shape_cast %24 : vector<24x8xf32> to vector<1x24x8xf32>
    %38 = vector.shape_cast %37 : vector<1x24x8xf32> to vector<1x24x8xf32>
    %39 = vector.broadcast %38 : vector<1x24x8xf32> to vector<4x24x8xf32>
    %cst_7 = arith.constant dense<0.000000e+00> : vector<4x24x64xf32>
    %40 = tpu.matmul %39, %36, %cst_7 {dimension_numbers = #tpu.dot_dimension_numbers<[2], [1], [1], [2], [0, 0, 0, 1, 1, 2], [0], [0]>, precision = #tpu.contract_precision<fp32>} : vector<4x24x8xf32>, vector<4x8x64xf32>, vector<4x24x64xf32> -> vector<4x24x64xf32>
    %41 = vector.shape_cast %40 : vector<4x24x64xf32> to vector<1x4x24x64xf32>
    %42 = vector.extract_strided_slice %41 {offsets = [0, 0, 0, 0], sizes = [1, 4, 4, 64], strides = [1, 1, 1, 1]} : vector<1x4x24x64xf32> to vector<1x4x4x64xf32>
    %43 = vector.extract_strided_slice %41 {offsets = [0, 0, 8, 0], sizes = [1, 4, 4, 64], strides = [1, 1, 1, 1]} : vector<1x4x24x64xf32> to vector<1x4x4x64xf32>
    %44 = arith.maximumf %42, %43 : vector<1x4x4x64xf32>
    %45 = vector.extract_strided_slice %41 {offsets = [0, 0, 16, 0], sizes = [1, 4, 4, 64], strides = [1, 1, 1, 1]} : vector<1x4x24x64xf32> to vector<1x4x4x64xf32>
    %46 = arith.maximumf %44, %45 : vector<1x4x4x64xf32>
    %c0_8 = arith.constant 0 : index
    %c0_9 = arith.constant 0 : index
    %47 = vector.load %arg4[%c0_8, %c0_9] : memref<24x4xf32, #tpu.memory_space<vmem>>, vector<24x4xf32>
    %48 = vector.shape_cast %46 : vector<1x4x4x64xf32> to vector<1x2x2x4x64xf32>
    %49 = vector.extract_strided_slice %48 {offsets = [0, 0, 0, 0, 0], sizes = [1, 2, 1, 4, 64], strides = [1, 1, 1, 1, 1]} : vector<1x2x2x4x64xf32> to vector<1x2x1x4x64xf32>
    %50 = vector.shape_cast %49 : vector<1x2x1x4x64xf32> to vector<1x2x4x64xf32>
    %51 = vector.extract_strided_slice %48 {offsets = [0, 0, 1, 0, 0], sizes = [1, 2, 1, 4, 64], strides = [1, 1, 1, 1, 1]} : vector<1x2x2x4x64xf32> to vector<1x2x1x4x64xf32>
    %52 = vector.shape_cast %51 : vector<1x2x1x4x64xf32> to vector<1x2x4x64xf32>
    %53 = arith.maximumf %50, %52 : vector<1x2x4x64xf32>
    %54 = vector.extract_strided_slice %53 {offsets = [0, 0, 0, 0], sizes = [1, 1, 4, 64], strides = [1, 1, 1, 1]} : vector<1x2x4x64xf32> to vector<1x1x4x64xf32>
    %55 = vector.extract_strided_slice %53 {offsets = [0, 1, 0, 0], sizes = [1, 1, 4, 64], strides = [1, 1, 1, 1]} : vector<1x2x4x64xf32> to vector<1x1x4x64xf32>
    %56 = vector.extract_strided_slice %52 {offsets = [0, 0, 0, 0], sizes = [1, 1, 4, 64], strides = [1, 1, 1, 1]} : vector<1x2x4x64xf32> to vector<1x1x4x64xf32>
    %57 = arith.maximumf %55, %56 : vector<1x1x4x64xf32>
    %58 = tpu.concatenate %54, %57 in 1 : vector<1x1x4x64xf32>, vector<1x1x4x64xf32> -> vector<1x2x4x64xf32>
    %59 = vector.shape_cast %58 : vector<1x2x4x64xf32> to vector<2x4x64xf32>
    %60 = vector.shape_cast %47 : vector<24x4xf32> to vector<1x24x4xf32>
    %61 = vector.shape_cast %60 : vector<1x24x4xf32> to vector<1x24x4xf32>
    %62 = vector.broadcast %61 : vector<1x24x4xf32> to vector<2x24x4xf32>
    %cst_10 = arith.constant dense<0.000000e+00> : vector<2x24x64xf32>
    %63 = tpu.matmul %62, %59, %cst_10 {dimension_numbers = #tpu.dot_dimension_numbers<[2], [1], [1], [2], [0, 0, 0, 1, 1, 2], [0], [0]>, precision = #tpu.contract_precision<fp32>} : vector<2x24x4xf32>, vector<2x4x64xf32>, vector<2x24x64xf32> -> vector<2x24x64xf32>
    %64 = vector.shape_cast %63 : vector<2x24x64xf32> to vector<1x2x24x64xf32>
    %65 = vector.extract_strided_slice %64 {offsets = [0, 0, 0, 0], sizes = [1, 2, 2, 64], strides = [1, 1, 1, 1]} : vector<1x2x24x64xf32> to vector<1x2x2x64xf32>
    %66 = vector.extract_strided_slice %64 {offsets = [0, 0, 8, 0], sizes = [1, 2, 2, 64], strides = [1, 1, 1, 1]} : vector<1x2x24x64xf32> to vector<1x2x2x64xf32>
    %67 = arith.maximumf %65, %66 : vector<1x2x2x64xf32>
    %68 = vector.extract_strided_slice %64 {offsets = [0, 0, 16, 0], sizes = [1, 2, 2, 64], strides = [1, 1, 1, 1]} : vector<1x2x24x64xf32> to vector<1x2x2x64xf32>
    %69 = arith.maximumf %67, %68 : vector<1x2x2x64xf32>
    %c0_11 = arith.constant 0 : index
    %c0_12 = arith.constant 0 : index
    %70 = vector.load %arg5[%c0_11, %c0_12] : memref<4x2xf32, #tpu.memory_space<vmem>>, vector<4x2xf32>
    %c0_13 = arith.constant 0 : index
    %c0_14 = arith.constant 0 : index
    %71 = vector.load %arg10[%c0_13, %c0_14] : memref<64x32xf32, #tpu.memory_space<vmem>>, vector<64x32xf32>
    %c0_15 = arith.constant 0 : index
    %c0_16 = arith.constant 0 : index
    %72 = vector.load %arg11[%c0_15, %c0_16] : memref<32x64xf32, #tpu.memory_space<vmem>>, vector<32x64xf32>
    %c0_17 = arith.constant 0 : index
    %c0_18 = arith.constant 0 : index
    %73 = vector.load %arg12[%c0_17, %c0_18] : memref<64x128xf32, #tpu.memory_space<vmem>>, vector<64x128xf32>
    %74 = vector.extract_strided_slice %69 {offsets = [0, 0, 0, 0], sizes = [1, 1, 2, 64], strides = [1, 1, 1, 1]} : vector<1x2x2x64xf32> to vector<1x1x2x64xf32>
    %75 = vector.extract_strided_slice %69 {offsets = [0, 0, 0, 0], sizes = [1, 1, 2, 64], strides = [1, 1, 1, 1]} : vector<1x2x2x64xf32> to vector<1x1x2x64xf32>
    %76 = tpu.concatenate %74, %75 in 1 : vector<1x1x2x64xf32>, vector<1x1x2x64xf32> -> vector<1x2x2x64xf32>
    %77 = vector.extract_strided_slice %69 {offsets = [0, 1, 0, 0], sizes = [1, 1, 2, 64], strides = [1, 1, 1, 1]} : vector<1x2x2x64xf32> to vector<1x1x2x64xf32>
    %78 = vector.extract_strided_slice %69 {offsets = [0, 1, 0, 0], sizes = [1, 1, 2, 64], strides = [1, 1, 1, 1]} : vector<1x2x2x64xf32> to vector<1x1x2x64xf32>
    %79 = tpu.concatenate %77, %78 in 1 : vector<1x1x2x64xf32>, vector<1x1x2x64xf32> -> vector<1x2x2x64xf32>
    %cst_19 = arith.constant 2.500000e-01 : f32
    %80 = vector.broadcast %cst_19 : f32 to vector<1x2x2x64xf32>
    %81 = arith.mulf %80, %76 : vector<1x2x2x64xf32>
    %cst_20 = arith.constant 7.500000e-01 : f32
    %82 = vector.broadcast %cst_20 : f32 to vector<1x2x2x64xf32>
    %83 = arith.mulf %82, %69 : vector<1x2x2x64xf32>
    %84 = arith.addf %81, %83 : vector<1x2x2x64xf32>
    %cst_21 = arith.constant 7.500000e-01 : f32
    %85 = vector.broadcast %cst_21 : f32 to vector<1x2x2x64xf32>
    %86 = arith.mulf %85, %69 : vector<1x2x2x64xf32>
    %cst_22 = arith.constant 2.500000e-01 : f32
    %87 = vector.broadcast %cst_22 : f32 to vector<1x2x2x64xf32>
    %88 = arith.mulf %87, %79 : vector<1x2x2x64xf32>
    %89 = arith.addf %86, %88 : vector<1x2x2x64xf32>
    %90 = vector.shape_cast %84 : vector<1x2x2x64xf32> to vector<1x2x1x2x64xf32>
    %91 = vector.shape_cast %89 : vector<1x2x2x64xf32> to vector<1x2x1x2x64xf32>
    %92 = tpu.concatenate %90, %91 in 2 : vector<1x2x1x2x64xf32>, vector<1x2x1x2x64xf32> -> vector<1x2x2x2x64xf32>
    %93 = vector.shape_cast %92 : vector<1x2x2x2x64xf32> to vector<1x4x2x64xf32>
    %94 = vector.shape_cast %93 : vector<1x4x2x64xf32> to vector<4x2x64xf32>
    %95 = vector.shape_cast %70 : vector<4x2xf32> to vector<1x4x2xf32>
    %96 = vector.shape_cast %95 : vector<1x4x2xf32> to vector<1x4x2xf32>
    %97 = vector.broadcast %96 : vector<1x4x2xf32> to vector<4x4x2xf32>
    %cst_23 = arith.constant dense<0.000000e+00> : vector<4x4x64xf32>
    %98 = tpu.matmul %97, %94, %cst_23 {dimension_numbers = #tpu.dot_dimension_numbers<[2], [1], [1], [2], [0, 0, 0, 1, 1, 2], [0], [0]>, precision = #tpu.contract_precision<fp32>} : vector<4x4x2xf32>, vector<4x2x64xf32>, vector<4x4x64xf32> -> vector<4x4x64xf32>
    %99 = vector.shape_cast %98 : vector<4x4x64xf32> to vector<1x4x4x64xf32>
    %100 = arith.addf %46, %99 : vector<1x4x4x64xf32>
    %cst_24 = arith.constant dense<0.000000e+00> : vector<1x4x64xf32>
    %101 = vector.multi_reduction <add>, %100, %cst_24 [1] : vector<1x4x4x64xf32> to vector<1x4x64xf32>
    %cst_25 = arith.constant dense<0.000000e+00> : vector<1x64xf32>
    %102 = vector.multi_reduction <add>, %101, %cst_25 [1] : vector<1x4x64xf32> to vector<1x64xf32>
    %cst_26 = arith.constant 6.250000e-02 : f32
    %103 = vector.broadcast %cst_26 : f32 to vector<1x64xf32>
    %104 = arith.mulf %102, %103 : vector<1x64xf32>
    %cst_27 = arith.constant dense<0.000000e+00> : vector<1x32xf32>
    %105 = tpu.matmul %104, %71, %cst_27 {dimension_numbers = #tpu.dot_dimension_numbers<[1], [0], [0], [1], [0, 0, 1, 1], [], []>, precision = #tpu.contract_precision<fp32>} : vector<1x64xf32>, vector<64x32xf32>, vector<1x32xf32> -> vector<1x32xf32>
    %cst_28 = arith.constant dense<0.000000e+00> : vector<1x64xf32>
    %106 = tpu.matmul %105, %72, %cst_28 {dimension_numbers = #tpu.dot_dimension_numbers<[1], [0], [0], [1], [0, 0, 1, 1], [], []>, precision = #tpu.contract_precision<fp32>} : vector<1x32xf32>, vector<32x64xf32>, vector<1x64xf32> -> vector<1x64xf32>
    %cst_29 = arith.constant dense<0.000000e+00> : vector<1x128xf32>
    %107 = tpu.matmul %106, %73, %cst_29 {dimension_numbers = #tpu.dot_dimension_numbers<[1], [0], [0], [1], [0, 0, 1, 1], [], []>, precision = #tpu.contract_precision<fp32>} : vector<1x64xf32>, vector<64x128xf32>, vector<1x128xf32> -> vector<1x128xf32>
    %108 = vector.extract_strided_slice %107 {offsets = [0, 0], sizes = [1, 64], strides = [1, 1]} : vector<1x128xf32> to vector<1x64xf32>
    %109 = vector.extract_strided_slice %107 {offsets = [0, 64], sizes = [1, 64], strides = [1, 1]} : vector<1x128xf32> to vector<1x64xf32>
    %110 = arith.maximumf %108, %109 : vector<1x64xf32>
    %111 = arith.subf %108, %110 : vector<1x64xf32>
    %112 = math.exp %111 : vector<1x64xf32>
    %113 = arith.subf %109, %110 : vector<1x64xf32>
    %114 = math.exp %113 : vector<1x64xf32>
    %115 = arith.addf %112, %114 : vector<1x64xf32>
    %cst_30 = arith.constant 1.000000e+00 : f32
    %116 = vector.broadcast %cst_30 : f32 to vector<1x64xf32>
    %117 = arith.divf %116, %115 : vector<1x64xf32>
    %118 = arith.mulf %112, %117 : vector<1x64xf32>
    %119 = arith.mulf %114, %117 : vector<1x64xf32>
    %120 = vector.shape_cast %118 : vector<1x64xf32> to vector<1x1x1x64xf32>
    %121 = vector.broadcast %120 : vector<1x1x1x64xf32> to vector<1x4x4x64xf32>
    %122 = arith.mulf %121, %46 : vector<1x4x4x64xf32>
    %123 = vector.shape_cast %119 : vector<1x64xf32> to vector<1x1x1x64xf32>
    %124 = vector.broadcast %123 : vector<1x1x1x64xf32> to vector<1x4x4x64xf32>
    %125 = arith.mulf %124, %99 : vector<1x4x4x64xf32>
    %126 = arith.addf %122, %125 : vector<1x4x4x64xf32>
    %c0_31 = arith.constant 0 : index
    %c0_32 = arith.constant 0 : index
    %127 = vector.load %arg6[%c0_31, %c0_32] : memref<4x4xf32, #tpu.memory_space<vmem>>, vector<4x4xf32>
    %c0_33 = arith.constant 0 : index
    %c0_34 = arith.constant 0 : index
    %128 = vector.load %arg7[%c0_33, %c0_34] : memref<4x4xf32, #tpu.memory_space<vmem>>, vector<4x4xf32>
    %c0_35 = arith.constant 0 : index
    %c0_36 = arith.constant 0 : index
    %129 = vector.load %arg8[%c0_35, %c0_36] : memref<4x8xf32, #tpu.memory_space<vmem>>, vector<4x8xf32>
    %c0_37 = arith.constant 0 : index
    %c0_38 = arith.constant 0 : index
    %130 = vector.load %arg9[%c0_37, %c0_38] : memref<4x8xf32, #tpu.memory_space<vmem>>, vector<4x8xf32>
    %c0_39 = arith.constant 0 : index
    %c0_40 = arith.constant 0 : index
    %131 = vector.load %arg13[%c0_39, %c0_40] : memref<64x32xf32, #tpu.memory_space<vmem>>, vector<64x32xf32>
    %c0_41 = arith.constant 0 : index
    %c0_42 = arith.constant 0 : index
    %132 = vector.load %arg14[%c0_41, %c0_42] : memref<32x64xf32, #tpu.memory_space<vmem>>, vector<32x64xf32>
    %c0_43 = arith.constant 0 : index
    %c0_44 = arith.constant 0 : index
    %133 = vector.load %arg15[%c0_43, %c0_44] : memref<64x128xf32, #tpu.memory_space<vmem>>, vector<64x128xf32>
    %134 = vector.extract_strided_slice %126 {offsets = [0, 0, 0, 0], sizes = [1, 1, 4, 64], strides = [1, 1, 1, 1]} : vector<1x4x4x64xf32> to vector<1x1x4x64xf32>
    %135 = vector.extract_strided_slice %126 {offsets = [0, 0, 0, 0], sizes = [1, 3, 4, 64], strides = [1, 1, 1, 1]} : vector<1x4x4x64xf32> to vector<1x3x4x64xf32>
    %136 = tpu.concatenate %134, %135 in 1 : vector<1x1x4x64xf32>, vector<1x3x4x64xf32> -> vector<1x4x4x64xf32>
    %137 = vector.extract_strided_slice %126 {offsets = [0, 1, 0, 0], sizes = [1, 3, 4, 64], strides = [1, 1, 1, 1]} : vector<1x4x4x64xf32> to vector<1x3x4x64xf32>
    %138 = vector.extract_strided_slice %126 {offsets = [0, 3, 0, 0], sizes = [1, 1, 4, 64], strides = [1, 1, 1, 1]} : vector<1x4x4x64xf32> to vector<1x1x4x64xf32>
    %139 = tpu.concatenate %137, %138 in 1 : vector<1x3x4x64xf32>, vector<1x1x4x64xf32> -> vector<1x4x4x64xf32>
    %cst_45 = arith.constant 2.500000e-01 : f32
    %140 = vector.broadcast %cst_45 : f32 to vector<1x4x4x64xf32>
    %141 = arith.mulf %140, %136 : vector<1x4x4x64xf32>
    %cst_46 = arith.constant 7.500000e-01 : f32
    %142 = vector.broadcast %cst_46 : f32 to vector<1x4x4x64xf32>
    %143 = arith.mulf %142, %126 : vector<1x4x4x64xf32>
    %144 = arith.addf %141, %143 : vector<1x4x4x64xf32>
    %cst_47 = arith.constant 7.500000e-01 : f32
    %145 = vector.broadcast %cst_47 : f32 to vector<1x4x4x64xf32>
    %146 = arith.mulf %145, %126 : vector<1x4x4x64xf32>
    %cst_48 = arith.constant 2.500000e-01 : f32
    %147 = vector.broadcast %cst_48 : f32 to vector<1x4x4x64xf32>
    %148 = arith.mulf %147, %139 : vector<1x4x4x64xf32>
    %149 = arith.addf %146, %148 : vector<1x4x4x64xf32>
    %150 = vector.shape_cast %144 : vector<1x4x4x64xf32> to vector<1x4x1x4x64xf32>
    %151 = vector.shape_cast %149 : vector<1x4x4x64xf32> to vector<1x4x1x4x64xf32>
    %152 = tpu.concatenate %150, %151 in 2 : vector<1x4x1x4x64xf32>, vector<1x4x1x4x64xf32> -> vector<1x4x2x4x64xf32>
    %153 = vector.shape_cast %152 : vector<1x4x2x4x64xf32> to vector<1x8x4x64xf32>
    %154 = vector.shape_cast %153 : vector<1x8x4x64xf32> to vector<8x4x64xf32>
    %155 = vector.shape_cast %127 : vector<4x4xf32> to vector<1x4x4xf32>
    %156 = vector.shape_cast %155 : vector<1x4x4xf32> to vector<1x4x4xf32>
    %157 = vector.broadcast %156 : vector<1x4x4xf32> to vector<8x4x4xf32>
    %cst_49 = arith.constant dense<0.000000e+00> : vector<8x4x64xf32>
    %158 = tpu.matmul %157, %154, %cst_49 {dimension_numbers = #tpu.dot_dimension_numbers<[2], [1], [1], [2], [0, 0, 0, 1, 1, 2], [0], [0]>, precision = #tpu.contract_precision<fp32>} : vector<8x4x4xf32>, vector<8x4x64xf32>, vector<8x4x64xf32> -> vector<8x4x64xf32>
    %159 = vector.shape_cast %158 : vector<8x4x64xf32> to vector<1x8x4x64xf32>
    %160 = vector.shape_cast %153 : vector<1x8x4x64xf32> to vector<8x4x64xf32>
    %161 = vector.shape_cast %128 : vector<4x4xf32> to vector<1x4x4xf32>
    %162 = vector.shape_cast %161 : vector<1x4x4xf32> to vector<1x4x4xf32>
    %163 = vector.broadcast %162 : vector<1x4x4xf32> to vector<8x4x4xf32>
    %cst_50 = arith.constant dense<0.000000e+00> : vector<8x4x64xf32>
    %164 = tpu.matmul %163, %160, %cst_50 {dimension_numbers = #tpu.dot_dimension_numbers<[2], [1], [1], [2], [0, 0, 0, 1, 1, 2], [0], [0]>, precision = #tpu.contract_precision<fp32>} : vector<8x4x4xf32>, vector<8x4x64xf32>, vector<8x4x64xf32> -> vector<8x4x64xf32>
    %165 = vector.shape_cast %164 : vector<8x4x64xf32> to vector<1x8x4x64xf32>
    %166 = tpu.concatenate %159, %165 in 3 : vector<1x8x4x64xf32>, vector<1x8x4x64xf32> -> vector<1x8x4x128xf32>
    %167 = vector.shape_cast %23 : vector<1x8x8x64xf32> to vector<8x8x64xf32>
    %168 = vector.shape_cast %129 : vector<4x8xf32> to vector<1x4x8xf32>
    %169 = vector.shape_cast %168 : vector<1x4x8xf32> to vector<1x4x8xf32>
    %170 = vector.broadcast %169 : vector<1x4x8xf32> to vector<8x4x8xf32>
    %cst_51 = arith.constant dense<0.000000e+00> : vector<8x4x64xf32>
    %171 = tpu.matmul %170, %167, %cst_51 {dimension_numbers = #tpu.dot_dimension_numbers<[2], [1], [1], [2], [0, 0, 0, 1, 1, 2], [0], [0]>, precision = #tpu.contract_precision<fp32>} : vector<8x4x8xf32>, vector<8x8x64xf32>, vector<8x4x64xf32> -> vector<8x4x64xf32>
    %172 = vector.shape_cast %171 : vector<8x4x64xf32> to vector<1x8x4x64xf32>
    %173 = vector.shape_cast %23 : vector<1x8x8x64xf32> to vector<8x8x64xf32>
    %174 = vector.shape_cast %130 : vector<4x8xf32> to vector<1x4x8xf32>
    %175 = vector.shape_cast %174 : vector<1x4x8xf32> to vector<1x4x8xf32>
    %176 = vector.broadcast %175 : vector<1x4x8xf32> to vector<8x4x8xf32>
    %cst_52 = arith.constant dense<0.000000e+00> : vector<8x4x64xf32>
    %177 = tpu.matmul %176, %173, %cst_52 {dimension_numbers = #tpu.dot_dimension_numbers<[2], [1], [1], [2], [0, 0, 0, 1, 1, 2], [0], [0]>, precision = #tpu.contract_precision<fp32>} : vector<8x4x8xf32>, vector<8x8x64xf32>, vector<8x4x64xf32> -> vector<8x4x64xf32>
    %178 = vector.shape_cast %177 : vector<8x4x64xf32> to vector<1x8x4x64xf32>
    %179 = tpu.concatenate %172, %178 in 3 : vector<1x8x4x64xf32>, vector<1x8x4x64xf32> -> vector<1x8x4x128xf32>
    %180 = arith.addf %179, %166 : vector<1x8x4x128xf32>
    %cst_53 = arith.constant dense<0.000000e+00> : vector<1x4x128xf32>
    %181 = vector.multi_reduction <add>, %180, %cst_53 [1] : vector<1x8x4x128xf32> to vector<1x4x128xf32>
    %cst_54 = arith.constant dense<0.000000e+00> : vector<1x128xf32>
    %182 = vector.multi_reduction <add>, %181, %cst_54 [1] : vector<1x4x128xf32> to vector<1x128xf32>
    %183 = vector.extract_strided_slice %182 {offsets = [0, 0], sizes = [1, 64], strides = [1, 1]} : vector<1x128xf32> to vector<1x64xf32>
    %184 = vector.extract_strided_slice %182 {offsets = [0, 64], sizes = [1, 64], strides = [1, 1]} : vector<1x128xf32> to vector<1x64xf32>
    %185 = arith.addf %183, %184 : vector<1x64xf32>
    %cst_55 = arith.constant 1.562500e-02 : f32
    %186 = vector.broadcast %cst_55 : f32 to vector<1x64xf32>
    %187 = arith.mulf %185, %186 : vector<1x64xf32>
    %cst_56 = arith.constant dense<0.000000e+00> : vector<1x32xf32>
    %188 = tpu.matmul %187, %131, %cst_56 {dimension_numbers = #tpu.dot_dimension_numbers<[1], [0], [0], [1], [0, 0, 1, 1], [], []>, precision = #tpu.contract_precision<fp32>} : vector<1x64xf32>, vector<64x32xf32>, vector<1x32xf32> -> vector<1x32xf32>
    %cst_57 = arith.constant dense<0.000000e+00> : vector<1x64xf32>
    %189 = tpu.matmul %188, %132, %cst_57 {dimension_numbers = #tpu.dot_dimension_numbers<[1], [0], [0], [1], [0, 0, 1, 1], [], []>, precision = #tpu.contract_precision<fp32>} : vector<1x32xf32>, vector<32x64xf32>, vector<1x64xf32> -> vector<1x64xf32>
    %cst_58 = arith.constant dense<0.000000e+00> : vector<1x128xf32>
    %190 = tpu.matmul %189, %133, %cst_58 {dimension_numbers = #tpu.dot_dimension_numbers<[1], [0], [0], [1], [0, 0, 1, 1], [], []>, precision = #tpu.contract_precision<fp32>} : vector<1x64xf32>, vector<64x128xf32>, vector<1x128xf32> -> vector<1x128xf32>
    %191 = vector.extract_strided_slice %190 {offsets = [0, 0], sizes = [1, 64], strides = [1, 1]} : vector<1x128xf32> to vector<1x64xf32>
    %192 = vector.extract_strided_slice %190 {offsets = [0, 64], sizes = [1, 64], strides = [1, 1]} : vector<1x128xf32> to vector<1x64xf32>
    %193 = arith.maximumf %191, %192 : vector<1x64xf32>
    %194 = arith.subf %191, %193 : vector<1x64xf32>
    %195 = math.exp %194 : vector<1x64xf32>
    %196 = arith.subf %192, %193 : vector<1x64xf32>
    %197 = math.exp %196 : vector<1x64xf32>
    %198 = arith.addf %195, %197 : vector<1x64xf32>
    %cst_59 = arith.constant 1.000000e+00 : f32
    %199 = vector.broadcast %cst_59 : f32 to vector<1x64xf32>
    %200 = arith.divf %199, %198 : vector<1x64xf32>
    %201 = arith.mulf %195, %200 : vector<1x64xf32>
    %202 = arith.mulf %197, %200 : vector<1x64xf32>
    %203 = tpu.concatenate %201, %201 in 1 : vector<1x64xf32>, vector<1x64xf32> -> vector<1x128xf32>
    %204 = vector.shape_cast %203 : vector<1x128xf32> to vector<1x1x1x128xf32>
    %205 = tpu.concatenate %202, %202 in 1 : vector<1x64xf32>, vector<1x64xf32> -> vector<1x128xf32>
    %206 = vector.shape_cast %205 : vector<1x128xf32> to vector<1x1x1x128xf32>
    %207 = vector.broadcast %204 : vector<1x1x1x128xf32> to vector<1x8x4x128xf32>
    %208 = arith.mulf %207, %179 : vector<1x8x4x128xf32>
    %209 = vector.broadcast %206 : vector<1x1x1x128xf32> to vector<1x8x4x128xf32>
    %210 = arith.mulf %209, %166 : vector<1x8x4x128xf32>
    %211 = arith.addf %208, %210 : vector<1x8x4x128xf32>
    %c0_60 = arith.constant 0 : index
    %c0_61 = arith.constant 0 : index
    %c0_62 = arith.constant 0 : index
    %c0_63 = arith.constant 0 : index
    %212 = vector.load %arg16[%c0_60, %c0_61, %c0_62, %c0_63] : memref<1x8x4x128xf32, #tpu.memory_space<vmem>>, vector<1x8x4x128xf32>
    tpu.vector_store %arg16[%c0_60, %c0_61, %c0_62, %c0_63], %211 {strides = array<i32>} : memref<1x8x4x128xf32, #tpu.memory_space<vmem>>, vector<1x8x4x128xf32>,
    return
  }
  func.func @transform_0(%arg0: i32) -> (i32, i32, i32, i32) {
    %c0_i32 = arith.constant 0 : i32
    %c0_i32_0 = arith.constant 0 : i32
    %c0_i32_1 = arith.constant 0 : i32
    %c0_i32_2 = arith.constant 0 : i32
    return %arg0, %c0_i32, %c0_i32_0, %c0_i32_1 : i32, i32, i32, i32
  }
  func.func @transform_1(%arg0: i32) -> (i32, i32) {
    %c0_i32 = arith.constant 0 : i32
    %c0_i32_0 = arith.constant 0 : i32
    %c0_i32_1 = arith.constant 0 : i32
    return %c0_i32, %c0_i32_0 : i32, i32
  }
  func.func @transform_2(%arg0: i32) -> (i32, i32) {
    %c0_i32 = arith.constant 0 : i32
    %c0_i32_0 = arith.constant 0 : i32
    %c0_i32_1 = arith.constant 0 : i32
    return %c0_i32, %c0_i32_0 : i32, i32
  }
  func.func @transform_3(%arg0: i32) -> (i32, i32) {
    %c0_i32 = arith.constant 0 : i32
    %c0_i32_0 = arith.constant 0 : i32
    %c0_i32_1 = arith.constant 0 : i32
    return %c0_i32, %c0_i32_0 : i32, i32
  }
  func.func @transform_4(%arg0: i32) -> (i32, i32) {
    %c0_i32 = arith.constant 0 : i32
    %c0_i32_0 = arith.constant 0 : i32
    %c0_i32_1 = arith.constant 0 : i32
    return %c0_i32, %c0_i32_0 : i32, i32
  }
  func.func @transform_5(%arg0: i32) -> (i32, i32) {
    %c0_i32 = arith.constant 0 : i32
    %c0_i32_0 = arith.constant 0 : i32
    %c0_i32_1 = arith.constant 0 : i32
    return %c0_i32, %c0_i32_0 : i32, i32
  }
  func.func @transform_6(%arg0: i32) -> (i32, i32) {
    %c0_i32 = arith.constant 0 : i32
    %c0_i32_0 = arith.constant 0 : i32
    %c0_i32_1 = arith.constant 0 : i32
    return %c0_i32, %c0_i32_0 : i32, i32
  }
  func.func @transform_7(%arg0: i32) -> (i32, i32) {
    %c0_i32 = arith.constant 0 : i32
    %c0_i32_0 = arith.constant 0 : i32
    %c0_i32_1 = arith.constant 0 : i32
    return %c0_i32, %c0_i32_0 : i32, i32
  }
  func.func @transform_8(%arg0: i32) -> (i32, i32) {
    %c0_i32 = arith.constant 0 : i32
    %c0_i32_0 = arith.constant 0 : i32
    %c0_i32_1 = arith.constant 0 : i32
    return %c0_i32, %c0_i32_0 : i32, i32
  }
  func.func @transform_9(%arg0: i32) -> (i32, i32) {
    %c0_i32 = arith.constant 0 : i32
    %c0_i32_0 = arith.constant 0 : i32
    %c0_i32_1 = arith.constant 0 : i32
    return %c0_i32, %c0_i32_0 : i32, i32
  }
  func.func @transform_10(%arg0: i32) -> (i32, i32) {
    %c0_i32 = arith.constant 0 : i32
    %c0_i32_0 = arith.constant 0 : i32
    %c0_i32_1 = arith.constant 0 : i32
    return %c0_i32, %c0_i32_0 : i32, i32
  }
  func.func @transform_11(%arg0: i32) -> (i32, i32) {
    %c0_i32 = arith.constant 0 : i32
    %c0_i32_0 = arith.constant 0 : i32
    %c0_i32_1 = arith.constant 0 : i32
    return %c0_i32, %c0_i32_0 : i32, i32
  }
  func.func @transform_12(%arg0: i32) -> (i32, i32) {
    %c0_i32 = arith.constant 0 : i32
    %c0_i32_0 = arith.constant 0 : i32
    %c0_i32_1 = arith.constant 0 : i32
    return %c0_i32, %c0_i32_0 : i32, i32
  }
  func.func @transform_13(%arg0: i32) -> (i32, i32) {
    %c0_i32 = arith.constant 0 : i32
    %c0_i32_0 = arith.constant 0 : i32
    %c0_i32_1 = arith.constant 0 : i32
    return %c0_i32, %c0_i32_0 : i32, i32
  }
  func.func @transform_14(%arg0: i32) -> (i32, i32) {
    %c0_i32 = arith.constant 0 : i32
    %c0_i32_0 = arith.constant 0 : i32
    %c0_i32_1 = arith.constant 0 : i32
    return %c0_i32, %c0_i32_0 : i32, i32
  }
  func.func @transform_15(%arg0: i32) -> (i32, i32, i32, i32) {
    %c0_i32 = arith.constant 0 : i32
    %c0_i32_0 = arith.constant 0 : i32
    %c0_i32_1 = arith.constant 0 : i32
    %c0_i32_2 = arith.constant 0 : i32
    return %arg0, %c0_i32, %c0_i32_0, %c0_i32_1 : i32, i32, i32, i32
  }
}

</mosaic_0001>

<bundles_post_ra>
// kernel: fpn_forward.1
= control target key start
LH: loop header
LB: loop body
LE: loop exit
PB: predicated region body
PF: predicated region fallthrough
CT: control target
= control target key end

     0   :  { %s13121_s0 = inlined_call_operand.hbm [shape: f32[2,16,16,64], index: 0, kind: input, shape index: {}]   ;;  %s13122_s1 = inlined_call_operand.vmem [shape: f32[24,16], index: 1, kind: input, shape index: {}]   ;;  %s13123_s2 = inlined_call_operand.vmem [shape: f32[24,8], index: 2, kind: input, shape index: {}]   ;;  %s13124_s3 = inlined_call_operand.vmem [shape: f32[24,4], index: 3, kind: input, shape index: {}]   ;;  %s13125_s4 = inlined_call_operand.vmem [shape: f32[4,2], index: 4, kind: input, shape index: {}]   ;;  %s13126_s5 = inlined_call_operand.vmem [shape: f32[4,4], index: 5, kind: input, shape index: {}]   ;;  %s13127_s6 = inlined_call_operand.vmem [shape: f32[4,4], index: 6, kind: input, shape index: {}]   ;;  %s13128_s7 = inlined_call_operand.vmem [shape: f32[4,8], index: 7, kind: input, shape index: {}]   ;;  %s13129_s8 = inlined_call_operand.vmem [shape: f32[4,8], index: 8, kind: input, shape index: {}]   ;;  %s13130_s9 = inlined_call_operand.vmem [shape: f32[64,32], index: 9, kind: input, shape index: {}]   ;;  %s13131_s10 = inlined_call_operand.vmem [shape: f32[32,64], index: 10, kind: input, shape index: {}]   ;;  %s13132_s11 = inlined_call_operand.vmem [shape: f32[64,128], index: 11, kind: input, shape index: {}]   ;;  %s13133_s12 = inlined_call_operand.vmem [shape: f32[64,32], index: 12, kind: input, shape index: {}]   ;;  %s13134_s13 = inlined_call_operand.vmem [shape: f32[32,64], index: 13, kind: input, shape index: {}]   ;;  %s13135_s14 = inlined_call_operand.vmem [shape: f32[64,128], index: 14, kind: input, shape index: {}]   ;;  %s13136_s15 = inlined_call_operand.vmem [shape: f32[2,8,4,128], index: 15, kind: output, shape index: {}]  }
   0x1   :  { %13153 = sst [smem:[#allocation14_spill]] %s13135_s14 }
   0x2   :  { %13154 = sst [smem:[#allocation15_spill]] %s13136_s15 }
   0x3   :  { %20 = vsyncpa [#allocation3], 0 }
   0x4   :  { %22 = vsyncpa [#allocation3 + $0x1], 0  ;;  %s10991_s18 = smov 0   ;;  %s10993_s19 = smov 0  }
   0x5   :  { %s10995_s20 = smov 0   ;;  %s10997_s21 = smov 0  }
   0x6 LB: > { %13155 = sst [smem:[#allocation5_spill]] %s10902_s20  ;;  %s11010_s22 = sadd.s32 4294967295, %s10906_s21   ;;  %s10906_s21 = sphi %s10997_s21, %s13175_s21   ;;  %s10902_s20 = sphi %s10995_s20, %s13177_s20   ;;  %s10898_s19 = sphi %s10993_s19, %s13179_s19   ;;  %s10894_s18 = sphi %s10991_s18, %s13178_s18  }
   0x7   : > { %13156 = sst [smem:[#allocation6_spill]] %s11010_s22  ;;  %s11013_s23 = sadd.s32 1, %s10906_s21  }
   0x8   : > { %13157 = sst [smem:[#allocation7_spill]] %s11013_s23  ;;  %s32_s24 = ssub.s32 %s10906_s21, %s11013_s23 }
   0x9   : > { %s35_s25 = sadd.s32 1, %s10902_s20  ;;  %p33_p0 = scmp.eq.s32.totalorder %s32_s24, 0 }
   0xa   : > { %p42_p1 = scmp.ne.s32.totalorder %s10902_s20, %s10898_s19  ;;  %p43_p2 = scmp.eq.s32.totalorder %s10906_s21, 0 }
   0xb   : > { %p48_p3 = scmp.ne.s32.totalorder %s10898_s19, %s10894_s18  ;;  %p49_p5 = scmp.eq.s32.totalorder %s11010_s22, 0 }
   0xc   : > { %s11023_s26 = scalar_select %p33_p0, %s10902_s20, %s35_s25  }
   0xd   : > { %p11025_p4 = por %p43_p2, %p42_p1  ;;  %p10794_p6 = scmp.lt.s32.totalorder %s10906_s21, 2 }
   0xe   : > { %13158 = sst [smem:[#allocation8_spill]] %s11023_s26  ;;  %p11031_p7 = por %p49_p5, %p48_p3 }
   0xf   : > { %s434_s29 = sand.u32 1, %s10902_s20   ;;  %s10782_s16 = sshll.u32 %s10906_s21, 8 }
  0x10   : > { %s10773_s30 = sshll.u32 %s434_s29, 8  ;;  %s443_s18 = scalar_lea.hbm %s13121_s0, %s10782_s16 }
  0x11   : > { %s438_s25 = scalar_lea.vmem [#allocation2], %s10773_s30  ;;  %s444_s23 = sshll.u32 %s443_s18, 4  ;;  %s445_s23 = int_to_ptr.hbm [resolvable:$true] %s444_s23 }
  0x12   : > { %s446_s26 = sshll.u32 %s438_s25, 4  ;;  %p11042_p8 = pnand %p10794_p6, %p11025_p4  ;;  %s447_s26 = int_to_ptr.vmem [resolvable:$true] %s446_s26 }
  0x13   : > { %p10776_p9 = scmp.ge.s32.totalorder %s10906_s21, 1  ;;  %s435_s22 = scalar_lea.sflag [#allocation3], %s434_s29 }
  0x14   : > { %s10842_s20 = sshra.s32 %s445_s23, 4  ;;  %p10846_p11 = pneg %p11042_p8  ;;  %s10843_s20 = int_to_ptr.hbm [resolvable:$true] %s10842_s20 }
  0x15   : > { %s10844_s14 = scalar_lea.hbm %s10843_s20, 256  ;;  %s10849_s17 = scalar_lea.hbm %s13121_s0, 512 }
  0x16   : > { %p10845_p10 = scmp.ne.s32.totalorder %s10843_s20, %s10844_s14  ;;  %p10850_p0 = scmp.lt.s32.totalorder %s10843_s20, %s13121_s0 }
  0x17   : > { %p10851_p1 = scmp.lt.s32.totalorder %s10849_s17, %s10844_s14 }
  0x18   : > { %p10847_p12 = pnand %p10846_p11, %p10845_p10 }
  0x19   : > { %p10852_p2 = por %p10851_p1, %p10850_p0 }
  0x1a   : > { %p10848_p13 = pneg %p10847_p12 }
  0x1c   : > { %p10853_p3 = pnand %p10852_p2, %p10848_p13 }
  0x1e   : > { %10856 = shalt.err (!%p10853_p3)
}
  0x1f   : > { %s10908_s29 = smov 128   ;;  %s10909_s18 = smov 8  }
  0x20   : > { %10793 = dma.hbm_to_vmem [thread:$0]  (!%p11042_p8), %s445_s23, 4096, %s447_s26, %s435_s22, %s10908_s29, %s10908_s29, %s10909_s18  }
  0x21   : > { %p454_p4 = scmp.lt.s32.totalorder %s10906_s21, 3 }
  0x23   : > { %p455_p5 = pnand %p10776_p9, %p454_p4 }
  0x25   : > { %458 = sbr.rel (%p455_p5) target bundleno = 3965 (0xf7d), region = 80 }
  0x2a   : > { %s460_s25 = sand.u32 1, %s10898_s19  }
  0x2b   : > { %s10777_s30 = sshll.u32 %s460_s25, 8  ;;  %s461_s20 = scalar_lea.sflag [#allocation3], %s460_s25 }
  0x2c   : > { %s11061_s14 = scalar_lea.vmem [#allocation2], %s10777_s30 }
  0x2d   : > { %10889 = dma.done.wait (%p11031_p7), %s461_s20, 4096  }
  0x2e   : > { %10891 = vsyncadd (%p11031_p7), %s461_s20, 4294963200  ;;  %vm582_vm0 = vcmask 130048   ;;  %v518_v0 = vld [vmem:[%s11061_s14 + $0x8] sm:$0xff]  ;;  %v520_v1 = vld [vmem:[%s11061_s14 + $0x18] sm:$0xff]  ;;  %vm2386_vm1 = vcmask 64512   ;;  %vm3242_vm2 = vcmask 31744  }
  0x2f   : > { %v517_v2 = vld [vmem:[%s11061_s14] sm:$0xff]  ;;  %v553_v3 = vmax.f32 %v518_v0, %v520_v1  ;;  %v519_v4 = vld [vmem:[%s11061_s14 + $0x10] sm:$0xff]  ;;  %v550_v10 = vld [vmem:[%s13122_s1 + $0x8] sm:$0xff]  ;;  %vm3252_vm3 = vcmask 1043456   ;;  %vm3708_vm4 = vcmask 15360   ;;  %vm3712_vm5 = vcmask 1041408  }
  0x30   : > { %v549_v5 = vld [vmem:[%s13122_s1] sm:$0xff]  ;;  %v551_v6 = vld [vmem:[%s13122_s1 + $0x10] sm:$0xff]  ;;  %v552_v7 = vmax.f32 %v517_v2, %v519_v4  ;;  %v522_v11 = vld [vmem:[%s11061_s14 + $0x28] sm:$0xff]  ;;  %v587_v16 = vsel %vm582_vm0, %v550_v10, 0  ;;  %s10910_s26 = smov 64   ;;  %vm4313_vm6 = vcmask 519168  }
  0x31   : > { %v584_v8 = vsel %vm582_vm0, %v549_v5, 0  ;;  %v590_v9 = vsel %vm582_vm0, %v551_v6, 0  ;;  %v11084_v12 = vld [vmem:[%s11061_s14 + $0x38] sm:$0xff]  ;;  %v606_v13 = vand.u32 4294901760, %v553_v3  ;;  %v521_v17 = vld [vmem:[%s11061_s14 + $0x20] sm:$0xff]  ;;  %v11093_v18 = vld [vmem:[%s11061_s14 + $0x30] sm:$0xff] }
  0x32   : > { %v11086_v14 = vand.u32 4294901760, %v584_v8  ;;  %v11088_v15 = vand.u32 4294901760, %v590_v9  ;;  %v608_v19 = vand.u32 4294901760, %v552_v7  ;;  %v11095_v20 = vand.u32 4294901760, %v587_v16  ;;  %v526_v55 = vld [vmem:[%s11061_s14 + $0x48] sm:$0xff]  ;;  %v528_v56 = vld [vmem:[%s11061_s14 + $0x58] sm:$0xff] }
  0x33   : > { %v555_v21 = vmax.f32 %v522_v11, %v11084_v12  ;;  %v554_v22 = vmax.f32 %v521_v17, %v11093_v18  ;;  %607 = vmatpush.msra.mxu0 %v606_v13  ;;  %10784 = vmatpush.msra.mxu2 %v606_v13  ;;  %v650_v25 = vsub.f32 %v553_v3, %v606_v13  ;;  %v525_v58 = vld [vmem:[%s11061_s14 + $0x40] sm:$0xff]  ;;  %v527_v59 = vld [vmem:[%s11061_s14 + $0x50] sm:$0xff]  ;;  %v532_v10 = vld [vmem:[%s11061_s14 + $0x78] sm:$0xff]  ;;  %vm4329_vm7 = vcmask 523264   ;;  %s13172_s23 = sld [smem:[#allocation14_spill]] }
  0x34   : > { %v11100_v23 = vsub.f32 %v584_v8, %v11086_v14  ;;  %v11103_v24 = vsub.f32 %v590_v9, %v11088_v15  ;;  %v656_v26 = vsub.f32 %v552_v7, %v608_v19  ;;  %v11106_v27 = vsub.f32 %v587_v16, %v11095_v20  ;;  %v530_v9 = vld [vmem:[%s11061_s14 + $0x68] sm:$0xff]  ;;  %s13173_s28 = sld [smem:[#allocation6_spill]] }
  0x35   : > { %v569_v28 = vmax.f32 %v555_v21, %v520_v1  ;;  %v568_v29 = vmax.f32 %v554_v22, %v519_v4  ;;  %609 = vmatpush.msra.mxu0 %v608_v19  ;;  %10785 = vmatpush.msra.mxu2 %v608_v19  ;;  %v651_v32 = vand.u32 4294901760, %v650_v25  ;;  %v557_v57 = vmax.f32 %v526_v55, %v528_v56  ;;  %s13174_s27 = sld [smem:[#allocation15_spill]] }
  0x36   : > { %v11109_v30 = vand.u32 4294901760, %v11100_v23  ;;  %v11112_v31 = vand.u32 4294901760, %v11103_v24  ;;  %v657_v33 = vand.u32 4294901760, %v656_v26  ;;  %v11119_v39 = vand.u32 4294901760, %v11106_v27 }
  0x37   : > { %690 = vmatpush.msrb.mxu2 %v650_v25  ;;  %v827_v34 = vand.u32 4294901760, %v569_v28  ;;  %v829_v35 = vand.u32 4294901760, %v568_v29  ;;  %v652_v38 = vsub.f32 %v650_v25, %v651_v32  ;;  %764 = vmatpush.msrb.mxu0 %v651_v32  ;;  %v571_v60 = vmax.f32 %v557_v57, %v11084_v12  ;;  %v529_v12 = vld [vmem:[%s11061_s14 + $0x60] sm:$0xff] }
  0x38   : > { %v613_v36 = vsub.f32 %v11100_v23, %v11109_v30  ;;  %v629_v37 = vsub.f32 %v11103_v24, %v11112_v31  ;;  %v658_v40 = vsub.f32 %v656_v26, %v657_v33  ;;  %v621_v49 = vsub.f32 %v11106_v27, %v11119_v39 }
  0x39   : > { %693 = vmatpush.msrb.mxu2 %v656_v26  ;;  %v871_v41 = vsub.f32 %v569_v28, %v827_v34  ;;  %v877_v42 = vsub.f32 %v568_v29, %v829_v35  ;;  %v653_v45 = vand.u32 4294901760, %v652_v38  ;;  %768 = vmatpush.msrb.mxu0 %v657_v33  ;;  %v556_v61 = vmax.f32 %v525_v58, %v527_v59  ;;  %v533_v38 = vld [vmem:[%s11061_s14 + $0x80] sm:$0xff] }
  0x3a   : > { %v11121_v43 = vand.u32 4294901760, %v613_v36  ;;  %v11123_v44 = vand.u32 4294901760, %v629_v37  ;;  %v659_v46 = vand.u32 4294901760, %v658_v40  ;;  %v11131_v52 = vand.u32 4294901760, %v621_v49  ;;  %v536_v36 = vld [vmem:[%s11061_s14 + $0x98] sm:$0xff]  ;;  %v535_v40 = vld [vmem:[%s11061_s14 + $0x90] sm:$0xff] }
  0x3b   : > { %v872_v47 = vand.u32 4294901760, %v871_v41  ;;  %v878_v48 = vand.u32 4294901760, %v877_v42  ;;  %654 = vmatpush.msra.mxu1 %v653_v45  ;;  %10786 = vmatpush.msra.mxu3 %v653_v45  ;;  %v1048_v62 = vand.u32 4294901760, %v571_v60  ;;  %v570_v63 = vmax.f32 %v556_v61, %v11093_v18  ;;  %p512_p6 = scmp.lt.s32.totalorder %s13173_s28, 1 }
  0x3c   : > { %615 = vmatmul.f32.vlgmr.msra.gmra.mxu0 %v11121_v43  ;;  %631 = vmatmul.f32.vlgmr.msra.gmra.mxu2 %v11123_v44  ;;  %v559_v11 = vmax.f32 %v530_v9, %v532_v10  ;;  %vm4570_vm8 = vcmask 261120  }
  0x3d   : > { %v873_v50 = vsub.f32 %v871_v41, %v872_v47  ;;  %828 = vmatpush.msra.mxu2 %v827_v34  ;;  %911 = vmatpush.msra.mxu0 %v871_v41  ;;  %v879_v51 = vsub.f32 %v877_v42, %v878_v48  ;;  %v1092_v0 = vsub.f32 %v571_v60, %v1048_v62  ;;  %v1050_v1 = vand.u32 4294901760, %v570_v63  ;;  %v11211_v60 = vld [vmem:[%s11061_s14 + $0xb8] sm:$0xff]  ;;  %s13181_s28 = smov (!%p512_p6, %s13173_s28), 1 }
  0x3e   : > { %660 = vmatpush.msra.mxu1 %v659_v46  ;;  %10787 = vmatpush.msra.mxu3 %v659_v46  ;;  %v573_v16 = vmax.f32 %v559_v11, %v528_v56  ;;  %s10783_s16 = sshll.u32 %s13181_s28, 5 }
  0x3f   : > { %662 = vmatmul.f32.vlgmr.msra.gmra.mxu1 %v11086_v14  ;;  %670 = vmatmul.f32.vlgmr.msra.gmra.mxu3 %v11088_v15  ;;  %v874_v53 = vand.u32 4294901760, %v873_v50  ;;  %v880_v54 = vand.u32 4294901760, %v879_v51  ;;  %v1093_v2 = vand.u32 4294901760, %v1092_v0  ;;  %v1098_v3 = vsub.f32 %v570_v63, %v1050_v1  ;;  %v537_v63 = vld [vmem:[%s11061_s14 + $0xa0] sm:$0xff]  ;;  %s516_s24 = scalar_lea.vmem %s13174_s27, %s10783_s16 }
  0x40   : > { %725 = vmatpush.msrb.mxu3 %v606_v13  ;;  %797 = vmatpush.msrb.mxu1 %v606_v13  ;;  %v531_v13 = vld [vmem:[%s11061_s14 + $0x70] sm:$0xff]  ;;  %v1269_v18 = vand.u32 4294901760, %v573_v16 }
  0x41   : > { %830 = vmatpush.msra.mxu2 %v829_v35  ;;  %914 = vmatpush.msra.mxu0 %v877_v42  ;;  %v1094_v4 = vsub.f32 %v1092_v0, %v1093_v2  ;;  %v1099_v5 = vand.u32 4294901760, %v1098_v3  ;;  %v558_v17 = vmax.f32 %v529_v12, %v531_v13  ;;  %v560_v42 = vmax.f32 %v533_v38, %v535_v40 }
  0x42   : > { %727 = vmatpush.msrb.mxu3 %v608_v19  ;;  %799 = vmatpush.msrb.mxu1 %v608_v19  ;;  %v1313_v21 = vsub.f32 %v573_v16, %v1269_v18 }
  0x43   : > { %v1095_v6 = vand.u32 4294901760, %v1094_v4  ;;  %v1100_v7 = vsub.f32 %v1098_v3, %v1099_v5  ;;  %v572_v19 = vmax.f32 %v558_v17, %v527_v59  ;;  %v574_v46 = vmax.f32 %v560_v42, %v531_v13  ;;  %v538_v59 = vld [vmem:[%s11061_s14 + $0xa8] sm:$0xff] }
  0x44   : > { %623 = vmatmul.f32.gmra.mxu0 %v11131_v52  ;;  %696 = vmatmul.f32.vlgmr.msrb.gmra.mxu2 %v11100_v23  ;;  %v1314_v25 = vand.u32 4294901760, %v1313_v21 }
  0x45   : > { %875 = vmatpush.msra.mxu3 %v874_v53  ;;  %946 = vmatpush.msra.mxu1 %v827_v34  ;;  %v1101_v8 = vand.u32 4294901760, %v1100_v7  ;;  %v1271_v22 = vand.u32 4294901760, %v572_v19 }
  0x46   : > { %985 = vmatpush.msrb.mxu2 %v872_v47  ;;  %v1315_v28 = vsub.f32 %v1313_v21, %v1314_v25 }
  0x47   : > { %881 = vmatpush.msra.mxu3 %v880_v54  ;;  %948 = vmatpush.msra.mxu1 %v829_v35  ;;  %v1319_v26 = vsub.f32 %v572_v19, %v1271_v22 }
  0x48   : > { %666 = vmatmul.f32.gmra.mxu1 %v11095_v20  ;;  %731 = vmatmul.f32.vlgmr.msrb.gmra.mxu3 %v11109_v30  ;;  %v1316_v32 = vand.u32 4294901760, %v1315_v28 }
  0x49   : > { %989 = vmatpush.msrb.mxu2 %v878_v48  ;;  %1018 = vmatpush.msrb.mxu3 %v827_v34  ;;  %v1320_v29 = vand.u32 4294901760, %v1319_v26  ;;  %v1492_v48 = vand.u32 4294901760, %v574_v46 }
  0x4b   : > { %1020 = vmatpush.msrb.mxu3 %v829_v35  ;;  %v1321_v33 = vsub.f32 %v1319_v26, %v1320_v29  ;;  %v534_v35 = vld [vmem:[%s11061_s14 + $0x88] sm:$0xff]  ;;  %v1540_v50 = vsub.f32 %v574_v46, %v1492_v48 }
  0x4c   : > { %701 = vmatmul.f32.gmra.mxu2 %v11106_v27  ;;  %770 = vmatmul.f32.vlgmr.msrb.gmra.mxu0 %v11086_v14  ;;  %v561_v37 = vmax.f32 %v534_v35, %v536_v36 }
  0x4d   : > { %1049 = vmatpush.msrb.mxu0 %v1048_v62  ;;  %v1322_v34 = vand.u32 4294901760, %v1321_v33  ;;  %v1541_v53 = vand.u32 4294901760, %v1540_v50 }
  0x4e   : > { %v575_v41 = vmax.f32 %v561_v37, %v532_v10 }
  0x4f   : > { %1051 = vmatpush.msrb.mxu0 %v1050_v1  ;;  %v1542_v55 = vsub.f32 %v1540_v50, %v1541_v53 }
  0x50   : > { %737 = vmatmul.f32.gmra.mxu3 %v11119_v39  ;;  %801 = vmatmul.f32.vlgmr.msrb.gmra.mxu1 %v11086_v14  ;;  %v1490_v45 = vand.u32 4294901760, %v575_v41 }
  0x51   : > { %1096 = vmatpush.msrb.mxu1 %v1095_v6  ;;  %v1543_v56 = vand.u32 4294901760, %v1542_v55  ;;  %v542_v55 = vld [vmem:[%s11061_s14 + $0xc8] sm:$0xff] }
  0x52   : > { %v1534_v47 = vsub.f32 %v575_v41, %v1490_v45 }
  0x53   : > { %1102 = vmatpush.msrb.mxu1 %v1101_v8 }
  0x54   : > { %706 = vmatmul.f32.gmra.mxu2 %v11103_v24  ;;  %774 = vmatmul.f32.gmra.mxu0 %v11095_v20  ;;  %v1535_v49 = vand.u32 4294901760, %v1534_v47 }
  0x56   : > { %v1536_v51 = vsub.f32 %v1534_v47, %v1535_v49 }
  0x58   : > { %743 = vmatmul.f32.gmra.mxu3 %v11112_v31  ;;  %805 = vmatmul.f32.gmra.mxu1 %v11095_v20  ;;  %v1537_v54 = vand.u32 4294901760, %v1536_v51 }
  0x5c   : > { %778 = vmatmul.f32.gmra.mxu0 %v11088_v15  ;;  %836 = vmatmul.f32.vlgmr.msra.gmra.mxu2 %v11121_v43 }
  0x5d   : > { %1132 = vmatpush.msra.mxu2 %v1092_v0  ;;  %v11218_v0 = vld [vmem:[%s11061_s14 + $0xb0] sm:$0xff] }
  0x5f   : > { %1135 = vmatpush.msra.mxu2 %v1098_v3  ;;  %v562_v3 = vmax.f32 %v537_v63, %v11218_v0  ;;  %v11246_v63 = vld [vmem:[%s11061_s14 + $0xd0] sm:$0xff] }
  0x60   : > { %809 = vmatmul.f32.gmra.mxu1 %v11088_v15  ;;  %883 = vmatmul.f32.vlgmr.msra.gmra.mxu3 %v11086_v14 }
  0x61   : > { %1167 = vmatpush.msra.mxu3 %v1048_v62  ;;  %v576_v6 = vmax.f32 %v562_v3, %v535_v40 }
  0x63   : > { %1169 = vmatpush.msra.mxu3 %v1050_v1  ;;  %v1713_v11 = vand.u32 4294901760, %v576_v6 }
  0x64   : > { %844 = vmatmul.f32.gmra.mxu2 %v11131_v52  ;;  %917 = vmatmul.f32.vlgmr.msra.gmra.mxu0 %v11100_v23 }
  0x65   : > { %1206 = vmatpush.msra.mxu0 %v1093_v2  ;;  %v1761_v16 = vsub.f32 %v576_v6, %v1713_v11 }
  0x67   : > { %1210 = vmatpush.msra.mxu0 %v1099_v5 }
  0x68   : > { %887 = vmatmul.f32.gmra.mxu3 %v11095_v20  ;;  %952 = vmatmul.f32.vlgmr.msra.gmra.mxu1 %v11109_v30 }
  0x69   : > { %1239 = vmatpush.msra.mxu1 %v1048_v62  ;;  %v563_v62 = vmax.f32 %v538_v59, %v11211_v60 }
  0x6b   : > { %1241 = vmatpush.msra.mxu1 %v1050_v1  ;;  %v577_v2 = vmax.f32 %v563_v62, %v536_v36  ;;  %v541_v62 = vld [vmem:[%s11061_s14 + $0xc0] sm:$0xff] }
  0x6c   : > { %852 = vmatmul.f32.gmra.mxu2 %v11123_v44  ;;  %922 = vmatmul.f32.gmra.mxu0 %v11106_v27  ;;  %v564_v3 = vmax.f32 %v541_v62, %v11246_v63 }
  0x6d   : > { %v1711_v5 = vand.u32 4294901760, %v577_v2 }
  0x6f   : > { %v1755_v10 = vsub.f32 %v577_v2, %v1711_v5 }
  0x70   : > { %891 = vmatmul.f32.gmra.mxu3 %v11088_v15  ;;  %958 = vmatmul.f32.gmra.mxu1 %v11119_v39 }
  0x71   : > { %v1756_v13 = vand.u32 4294901760, %v1755_v10 }
  0x73   : > { %v1757_v19 = vsub.f32 %v1755_v10, %v1756_v13 }
  0x74   : > { %927 = vmatmul.f32.gmra.mxu0 %v11103_v24  ;;  %991 = vmatmul.f32.vlgmr.msrb.gmra.mxu2 %v11086_v14 }
  0x75   : > { %1270 = vmatpush.msrb.mxu2 %v1269_v18 }
  0x77   : > { %1272 = vmatpush.msrb.mxu2 %v1271_v22 }
  0x78   : > { %964 = vmatmul.f32.gmra.mxu1 %v11112_v31  ;;  %1022 = vmatmul.f32.vlgmr.msrb.gmra.mxu3 %v11086_v14 }
  0x79   : > { %1317 = vmatpush.msrb.mxu3 %v1316_v32 }
  0x7b   : > { %1323 = vmatpush.msrb.mxu3 %v1322_v34 }
  0x7c   : > { %995 = vmatmul.f32.gmra.mxu2 %v11095_v20  ;;  %1057 = vmatmul.f32.vlgmr.msrb.gmra.mxu0 %v11121_v43 }
  0x7d   : > { %1353 = vmatpush.msrb.mxu0 %v1313_v21  ;;  %v1762_v21 = vand.u32 4294901760, %v1761_v16 }
  0x7f   : > { %1356 = vmatpush.msrb.mxu0 %v1319_v26  ;;  %v1763_v26 = vsub.f32 %v1761_v16, %v1762_v21 }
  0x80   : > { %1026 = vmatmul.f32.gmra.mxu3 %v11095_v20  ;;  %1104 = vmatmul.f32.vlgmr.msrb.gmra.mxu1 %v11086_v14 }
  0x81   : > { %1388 = vmatpush.msrb.mxu1 %v1269_v18  ;;  %v1764_v33 = vand.u32 4294901760, %v1763_v26 }
  0x83   : > { %1390 = vmatpush.msrb.mxu1 %v1271_v22 }
  0x84   : > { %999 = vmatmul.f32.gmra.mxu2 %v11088_v15  ;;  %1065 = vmatmul.f32.gmra.mxu0 %v11131_v52 }
  0x88   : > { %1030 = vmatmul.f32.gmra.mxu3 %v11088_v15  ;;  %1108 = vmatmul.f32.gmra.mxu1 %v11095_v20 }
  0x8c   : > { %1073 = vmatmul.f32.gmra.mxu0 %v11123_v44  ;;  %1138 = vmatmul.f32.vlgmr.msra.gmra.mxu2 %v11100_v23 }
  0x8d   : > { %1427 = vmatpush.msra.mxu2 %v1314_v25  ;;  %v1758_v25 = vand.u32 4294901760, %v1757_v19 }
  0x8f   : > { %1431 = vmatpush.msra.mxu2 %v1320_v29 }
  0x90   : > { %1112 = vmatmul.f32.gmra.mxu1 %v11088_v15  ;;  %1173 = vmatmul.f32.vlgmr.msra.gmra.mxu3 %v11109_v30 }
  0x91   : > { %1460 = vmatpush.msra.mxu3 %v1269_v18 }
  0x93   : > { %1462 = vmatpush.msra.mxu3 %v1271_v22 }
  0x94   : > { %1143 = vmatmul.f32.gmra.mxu2 %v11106_v27  ;;  %1212 = vmatmul.f32.vlgmr.msra.gmra.mxu0 %v11086_v14 }
  0x95   : > { %1491 = vmatpush.msra.mxu0 %v1490_v45 }
  0x97   : > { %1493 = vmatpush.msra.mxu0 %v1492_v48 }
  0x98   : > { %1179 = vmatmul.f32.gmra.mxu3 %v11119_v39  ;;  %1243 = vmatmul.f32.vlgmr.msra.gmra.mxu1 %v11086_v14 }
  0x99   : > { %1538 = vmatpush.msra.mxu1 %v1537_v54 }
  0x9b   : > { %1544 = vmatpush.msra.mxu1 %v1543_v56  ;;  %v11237_v56 = vld [vmem:[%s11061_s14 + $0xd8] sm:$0xff] }
  0x9c   : > { %1148 = vmatmul.f32.gmra.mxu2 %v11103_v24  ;;  %1216 = vmatmul.f32.gmra.mxu0 %v11095_v20 }
  0xa0   : > { %1185 = vmatmul.f32.gmra.mxu3 %v11112_v31  ;;  %1247 = vmatmul.f32.gmra.mxu1 %v11095_v20 }
  0xa4   : > { %1220 = vmatmul.f32.gmra.mxu0 %v11088_v15  ;;  %1278 = vmatmul.f32.vlgmr.msrb.gmra.mxu2 %v11121_v43 }
  0xa5   : > { %1574 = vmatpush.msrb.mxu2 %v1534_v47 }
  0xa7   : > { %1577 = vmatpush.msrb.mxu2 %v1540_v50 }
  0xa8   : > { %1251 = vmatmul.f32.gmra.mxu1 %v11088_v15  ;;  %1325 = vmatmul.f32.vlgmr.msrb.gmra.mxu3 %v11086_v14 }
  0xa9   : > { %1609 = vmatpush.msrb.mxu3 %v1490_v45 }
  0xab   : > { %1611 = vmatpush.msrb.mxu3 %v1492_v48 }
  0xac   : > { %1286 = vmatmul.f32.gmra.mxu2 %v11131_v52  ;;  %1359 = vmatmul.f32.vlgmr.msrb.gmra.mxu0 %v11100_v23 }
  0xad   : > { %1648 = vmatpush.msrb.mxu0 %v1535_v49 }
  0xaf   : > { %1652 = vmatpush.msrb.mxu0 %v1541_v53 }
  0xb0   : > { %1329 = vmatmul.f32.gmra.mxu3 %v11095_v20  ;;  %1394 = vmatmul.f32.vlgmr.msrb.gmra.mxu1 %v11109_v30 }
  0xb1   : > { %1681 = vmatpush.msrb.mxu1 %v1490_v45 }
  0xb3   : > { %1683 = vmatpush.msrb.mxu1 %v1492_v48 }
  0xb4   : > { %1294 = vmatmul.f32.gmra.mxu2 %v11123_v44  ;;  %1364 = vmatmul.f32.gmra.mxu0 %v11106_v27 }
  0xb8   : > { %1333 = vmatmul.f32.gmra.mxu3 %v11088_v15  ;;  %1400 = vmatmul.f32.gmra.mxu1 %v11119_v39 }
  0xb9   : > { %v616_v57 = vpop.f32.mrf.mxu0 }
  0xbc   : > { %1369 = vmatmul.f32.gmra.mxu0 %v11103_v24  ;;  %1433 = vmatmul.f32.vlgmr.msra.gmra.mxu2 %v11086_v14  ;;  %v663_v58 = vpop.f32.mrf.mxu1 }
  0xbd   : > { %v664_v7 = vadd.f32 %v663_v58, %v616_v57  ;;  %1712 = vmatpush.msra.mxu2 %v1711_v5  ;;  %v565_v58 = vmax.f32 %v542_v55, %v11237_v56 }
  0xbf   : > { %v632_v61 = vpop.f32.mrf.mxu2  ;;  %1714 = vmatpush.msra.mxu2 %v1713_v11  ;;  %v579_v2 = vmax.f32 %v565_v58, %v11211_v60 }
  0xc0   : > { %1406 = vmatmul.f32.gmra.mxu1 %v11112_v31  ;;  %1464 = vmatmul.f32.vlgmr.msra.gmra.mxu3 %v11086_v14 }
  0xc1   : > { %v624_v1 = vpop.f32.mrf.mxu0  ;;  %1759 = vmatpush.msra.mxu3 %v1758_v25  ;;  %v1932_v6 = vand.u32 4294901760, %v579_v2 }
  0xc2   : > { %v671_v4 = vpop.f32.mrf.mxu3 }
  0xc3   : > { %v672_v8 = vadd.f32 %v671_v4, %v632_v61  ;;  %1765 = vmatpush.msra.mxu3 %v1764_v33  ;;  %v546_v33 = vld [vmem:[%s11061_s14 + $0xe8] sm:$0xff] }
  0xc4   : > { %1437 = vmatmul.f32.gmra.mxu2 %v11095_v20  ;;  %1499 = vmatmul.f32.vlgmr.msra.gmra.mxu0 %v11121_v43 }
  0xc5   : > { %v667_v9 = vpop.f32.mrf.mxu1  ;;  %1795 = vmatpush.msra.mxu0 %v1755_v10 }
  0xc6   : > { %v668_v28 = vadd.f32 %v667_v9, %v624_v1  ;;  %v1976_v9 = vsub.f32 %v579_v2, %v1932_v6 }
  0xc7   : > { %v697_v12 = vpop.f32.mrf.mxu2  ;;  %1798 = vmatpush.msra.mxu0 %v1761_v16 }
  0xc8   : > { %v698_v17 = vadd.f32 %v697_v12, %v664_v7  ;;  %1468 = vmatmul.f32.gmra.mxu3 %v11095_v20  ;;  %1546 = vmatmul.f32.vlgmr.msra.gmra.mxu1 %v11086_v14  ;;  %v578_v7 = vmax.f32 %v564_v3, %v11218_v0  ;;  %v1977_v60 = vand.u32 4294901760, %v1976_v9 }
  0xc9   : > { %v771_v18 = vpop.f32.mrf.mxu0  ;;  %1830 = vmatpush.msra.mxu1 %v1711_v5 }
  0xca   : > { %v1934_v10 = vand.u32 4294901760, %v578_v7  ;;  %v1978_v16 = vsub.f32 %v1976_v9, %v1977_v60 }
  0xcb   : > { %v732_v22 = vpop.f32.mrf.mxu3  ;;  %1832 = vmatpush.msra.mxu1 %v1713_v11 }
  0xcc   : > { %v733_v29 = vadd.f32 %v732_v22, %v698_v17  ;;  %1441 = vmatmul.f32.gmra.mxu2 %v11088_v15  ;;  %1507 = vmatmul.f32.gmra.mxu0 %v11131_v52  ;;  %v1982_v12 = vsub.f32 %v578_v7, %v1934_v10 }
  0xcd   : > { %v802_v32 = vpop.f32.mrf.mxu1 }
  0xce   : > { %v772_v46 = vadd.f32 %v771_v18, %v733_v29  ;;  %v1983_v0 = vand.u32 4294901760, %v1982_v12  ;;  %v1979_v18 = vand.u32 4294901760, %v1978_v16 }
  0xcf   : > { %v702_v34 = vpop.f32.mrf.mxu2 }
  0xd0   : > { %v703_v35 = vadd.f32 %v702_v34, %v668_v28  ;;  %1472 = vmatmul.f32.gmra.mxu3 %v11088_v15  ;;  %1550 = vmatmul.f32.gmra.mxu1 %v11095_v20  ;;  %v803_v53 = vadd.f32 %v802_v32, %v772_v46  ;;  %v1984_v19 = vsub.f32 %v1982_v12, %v1983_v0  ;;  %v548_v34 = vld [vmem:[%s11061_s14 + $0xf8] sm:$0xff] }
  0xd1   : > { %v775_v36 = vpop.f32.mrf.mxu0 }
  0xd2   : > { %v1985_v22 = vand.u32 4294901760, %v1984_v19 }
  0xd3   : > { %v738_v37 = vpop.f32.mrf.mxu3 }
  0xd4   : > { %v739_v38 = vadd.f32 %v738_v37, %v703_v35  ;;  %1515 = vmatmul.f32.gmra.mxu0 %v11123_v44  ;;  %1580 = vmatmul.f32.vlgmr.msrb.gmra.mxu2 %v11100_v23  ;;  %v547_v37 = vld [vmem:[%s11061_s14 + $0xf0] sm:$0xff] }
  0xd5   : > { %v806_v40 = vpop.f32.mrf.mxu1  ;;  %1869 = vmatpush.msrb.mxu2 %v1756_v13 }
  0xd6   : > { %v776_v42 = vadd.f32 %v775_v36, %v739_v38  ;;  %v545_v36 = vld [vmem:[%s11061_s14 + $0xe0] sm:$0xff] }
  0xd7   : > { %v707_v41 = vpop.f32.mrf.mxu2  ;;  %1873 = vmatpush.msrb.mxu2 %v1762_v21 }
  0xd8   : > { %1554 = vmatmul.f32.gmra.mxu1 %v11088_v15  ;;  %1615 = vmatmul.f32.vlgmr.msrb.gmra.mxu3 %v11109_v30  ;;  %v708_v47 = vadd.f32 %v707_v41, %v672_v8  ;;  %v807_v49 = vadd.f32 %v806_v40, %v776_v42  ;;  %v567_v40 = vmax.f32 %v546_v33, %v548_v34 }
  0xd9   : > { %v779_v45 = vpop.f32.mrf.mxu0  ;;  %1902 = vmatpush.msrb.mxu3 %v1711_v5 }
  0xda   : > { %v2360_v59 = vmax.f32 %v803_v53, %v807_v49 }
  0xdb   : > { %v744_v48 = vpop.f32.mrf.mxu3  ;;  %1904 = vmatpush.msrb.mxu3 %v1713_v11 }
  0xdc   : > { %v745_v50 = vadd.f32 %v744_v48, %v708_v47  ;;  %1585 = vmatmul.f32.gmra.mxu2 %v11106_v27  ;;  %1654 = vmatmul.f32.vlgmr.msrb.gmra.mxu0 %v11086_v14  ;;  %v581_v48 = vmax.f32 %v567_v40, %v11237_v56 }
  0xdd   : > { %v810_v51 = vpop.f32.mrf.mxu1  ;;  %1933 = vmatpush.msrb.mxu0 %v1932_v6 }
  0xde   : > { %v780_v54 = vadd.f32 %v779_v45, %v745_v50  ;;  %v566_v45 = vmax.f32 %v545_v36, %v547_v37  ;;  %v11287_v58 = vand.u32 4294901760, %v581_v48 }
  0xdf   : > { %v11239_v57 = vpop.f32.mrf.mxu2  ;;  %1935 = vmatpush.msrb.mxu0 %v1934_v10 }
  0xe0   : > { %v811_v61 = vadd.f32 %v810_v51, %v780_v54  ;;  %1621 = vmatmul.f32.gmra.mxu3 %v11119_v39  ;;  %1685 = vmatmul.f32.vlgmr.msrb.gmra.mxu1 %v11086_v14  ;;  %v580_v53 = vmax.f32 %v566_v45, %v11246_v63  ;;  %v2197_v7 = vsub.f32 %v581_v48, %v11287_v58 }
  0xe1   : > { %v11248_v1 = vpop.f32.mrf.mxu0  ;;  %1980 = vmatpush.msrb.mxu1 %v1979_v18 }
  0xe2   : > { %v11252_v4 = vmax.f32 %v2360_v59, %v811_v61  ;;  %v11293_v61 = vand.u32 4294901760, %v580_v53  ;;  %v2198_v16 = vand.u32 4294901760, %v2197_v7 }
  0xe3   : > { %v884_v5 = vpop.f32.mrf.mxu3  ;;  %1986 = vmatpush.msrb.mxu1 %v1985_v22 }
  0xe4   : > { %1590 = vmatmul.f32.gmra.mxu2 %v11103_v24  ;;  %1658 = vmatmul.f32.gmra.mxu0 %v11095_v20  ;;  %v885_v46 = vadd.f32 %v884_v5, %v11239_v57  ;;  %v2199_v18 = vsub.f32 %v2197_v7, %v2198_v16 }
  0xe5   : > { %v11257_v8 = vpop.f32.mrf.mxu1 }
  0xe6   : > { %v919_v54 = vadd.f32 %v11248_v1, %v885_v46  ;;  %v2200_v22 = vand.u32 4294901760, %v2199_v18 }
  0xe7   : > { %v845_v11 = vpop.f32.mrf.mxu2 }
  0xe8   : > { %1627 = vmatmul.f32.gmra.mxu3 %v11112_v31  ;;  %1689 = vmatmul.f32.gmra.mxu1 %v11095_v20  ;;  %v954_v62 = vadd.f32 %v11257_v8, %v919_v54  ;;  %v2203_v8 = vsub.f32 %v580_v53, %v11293_v61 }
  0xe9   : > { %v923_v13 = vpop.f32.mrf.mxu0 }
  0xea   : > { %v2204_v19 = vand.u32 4294901760, %v2203_v8 }
  0xeb   : > { %v888_v17 = vpop.f32.mrf.mxu3 }
  0xec   : > { %1662 = vmatmul.f32.gmra.mxu0 %v11088_v15  ;;  %1720 = vmatmul.f32.vlgmr.msra.gmra.mxu2 %v11121_v43  ;;  %v889_v41 = vadd.f32 %v888_v17, %v845_v11 }
  0xed   : > { %v959_v21 = vpop.f32.mrf.mxu1  ;;  %2016 = vmatpush.msra.mxu2 %v1976_v9 }
  0xee   : > { %v924_v50 = vadd.f32 %v923_v13, %v889_v41 }
  0xef   : > { %v853_v25 = vpop.f32.mrf.mxu2  ;;  %2019 = vmatpush.msra.mxu2 %v1982_v12 }
  0xf0   : > { %1693 = vmatmul.f32.gmra.mxu1 %v11088_v15  ;;  %1767 = vmatmul.f32.vlgmr.msra.gmra.mxu3 %v11086_v14  ;;  %v960_v56 = vadd.f32 %v959_v21, %v924_v50 }
  0xf1   : > { %v928_v26 = vpop.f32.mrf.mxu0  ;;  %2051 = vmatpush.msra.mxu3 %v1932_v6 }
  0xf3   : > { %v892_v28 = vpop.f32.mrf.mxu3  ;;  %2053 = vmatpush.msra.mxu3 %v1934_v10 }
  0xf4   : > { %1728 = vmatmul.f32.gmra.mxu2 %v11131_v52  ;;  %1801 = vmatmul.f32.vlgmr.msra.gmra.mxu0 %v11100_v23  ;;  %v893_v49 = vadd.f32 %v892_v28, %v853_v25  ;;  %v2205_v25 = vsub.f32 %v2203_v8, %v2204_v19 }
  0xf5   : > { %v965_v29 = vpop.f32.mrf.mxu1  ;;  %2090 = vmatpush.msra.mxu0 %v1977_v60 }
  0xf6   : > { %v929_v59 = vadd.f32 %v928_v26, %v893_v49 }
  0xf7   : > { %v992_v32 = vpop.f32.mrf.mxu2  ;;  %2094 = vmatpush.msra.mxu0 %v1983_v0 }
  0xf8   : > { %1771 = vmatmul.f32.gmra.mxu3 %v11095_v20  ;;  %1836 = vmatmul.f32.vlgmr.msra.gmra.mxu1 %v11109_v30  ;;  %v966_v1 = vadd.f32 %v965_v29, %v929_v59  ;;  %v993_v3 = vadd.f32 %v992_v32, %v954_v62  ;;  %v2206_v29 = vand.u32 4294901760, %v2205_v25 }
  0xf9   : > { %v11271_v35 = vpop.f32.mrf.mxu0  ;;  %2123 = vmatpush.msra.mxu1 %v1932_v6 }
  0xfb   : > { %v1023_v38 = vpop.f32.mrf.mxu3  ;;  %2125 = vmatpush.msra.mxu1 %v1934_v10 }
  0xfc   : > { %1736 = vmatmul.f32.gmra.mxu2 %v11123_v44  ;;  %1806 = vmatmul.f32.gmra.mxu0 %v11106_v27  ;;  %v1024_v10 = vadd.f32 %v1023_v38, %v993_v3 }
  0xfd   : > { %v11277_v42 = vpop.f32.mrf.mxu1 }
  0xff   : > { %v996_v47 = vpop.f32.mrf.mxu2 }
 0x100   : > { %1775 = vmatmul.f32.gmra.mxu3 %v11088_v15  ;;  %1842 = vmatmul.f32.gmra.mxu1 %v11119_v39  ;;  %v997_v63 = vadd.f32 %v996_v47, %v960_v56 }
 0x101   : > { %v11283_v51 = vpop.f32.mrf.mxu0 }
 0x103   : > { %v1027_v55 = vpop.f32.mrf.mxu3 }
 0x104   : > { %1811 = vmatmul.f32.gmra.mxu0 %v11103_v24  ;;  %1875 = vmatmul.f32.vlgmr.msrb.gmra.mxu2 %v11086_v14  ;;  %v1028_v5 = vadd.f32 %v1027_v55, %v997_v63 }
 0x105   : > { %v11291_v57 = vpop.f32.mrf.mxu1  ;;  %2154 = vmatpush.msrb.mxu2 %v11287_v58 }
 0x106   : > { %v2361_v12 = vmax.f32 %v1024_v10, %v1028_v5  ;;  %v1110_v10 = vadd.f32 %v11291_v57, %v11283_v51 }
 0x107   : > { %v1000_v2 = vpop.f32.mrf.mxu2  ;;  %2156 = vmatpush.msrb.mxu2 %v11293_v61 }
 0x108   : > { %1848 = vmatmul.f32.gmra.mxu1 %v11112_v31  ;;  %1906 = vmatmul.f32.vlgmr.msrb.gmra.mxu3 %v11086_v14  ;;  %v1001_v9 = vadd.f32 %v1000_v2, %v966_v1  ;;  %v2376_v1 = vld [vmem:[%s13123_s2] sm:$0xff] }
 0x109   : > { %v11300_v6 = vpop.f32.mrf.mxu0  ;;  %2201 = vmatpush.msrb.mxu3 %v2200_v22 }
 0x10b   : > { %v1031_v11 = vpop.f32.mrf.mxu3  ;;  %2207 = vmatpush.msrb.mxu3 %v2206_v29 }
 0x10c   : > { %v1032_v60 = vadd.f32 %v1031_v11, %v1001_v9  ;;  %1879 = vmatmul.f32.gmra.mxu2 %v11095_v20  ;;  %1941 = vmatmul.f32.vlgmr.msrb.gmra.mxu0 %v11121_v43 }
 0x10d   : > { %v11306_v13 = vpop.f32.mrf.mxu1  ;;  %2237 = vmatpush.msrb.mxu0 %v2197_v7 }
 0x10e   : > { %v11308_v0 = vmax.f32 %v2361_v12, %v1032_v60  ;;  %v1114_v60 = vadd.f32 %v11306_v13, %v11300_v6 }
 0x10f   : > { %v11310_v17 = vpop.f32.mrf.mxu2  ;;  %2240 = vmatpush.msrb.mxu0 %v2203_v8 }
 0x110   : > { %1910 = vmatmul.f32.gmra.mxu3 %v11095_v20  ;;  %1988 = vmatmul.f32.vlgmr.msrb.gmra.mxu1 %v11086_v14  ;;  %v2379_v28 = vmax.f32 %v11252_v4, %v11308_v0 }
 0x111   : > { %v11314_v21 = vpop.f32.mrf.mxu0  ;;  %2272 = vmatpush.msrb.mxu1 %v11287_v58 }
 0x112   : > { %v2411_v34 = vand.u32 4294901760, %v2379_v28 }
 0x113   : > { %v11317_v26 = vpop.f32.mrf.mxu3  ;;  %2274 = vmatpush.msrb.mxu1 %v11293_v61 }
 0x114   : > { %1883 = vmatmul.f32.gmra.mxu2 %v11088_v15  ;;  %1949 = vmatmul.f32.gmra.mxu0 %v11131_v52  ;;  %v2454_v38 = vsub.f32 %v2379_v28, %v2411_v34 }
 0x115   : > { %v11324_v32 = vpop.f32.mrf.mxu1 }
 0x116   : > { %v2455_v45 = vand.u32 4294901760, %v2454_v38 }
 0x117   : > { %v11326_v33 = vpop.f32.mrf.mxu2 }
 0x118   : > { %1914 = vmatmul.f32.gmra.mxu3 %v11088_v15  ;;  %1992 = vmatmul.f32.gmra.mxu1 %v11095_v20  ;;  %v2456_v48 = vsub.f32 %v2454_v38, %v2455_v45 }
 0x119   : > { %v11330_v36 = vpop.f32.mrf.mxu0 }
 0x11a   : > { %v2457_v53 = vand.u32 4294901760, %v2456_v48 }
 0x11b   : > { %v11332_v37 = vpop.f32.mrf.mxu3 }
 0x11c   : > { %1957 = vmatmul.f32.gmra.mxu0 %v11123_v44  ;;  %2022 = vmatmul.f32.vlgmr.msra.gmra.mxu2 %v11100_v23 }
 0x11d   : > { %v11336_v40 = vpop.f32.mrf.mxu1  ;;  %2311 = vmatpush.msra.mxu2 %v2198_v16 }
 0x11f   : > { %v11338_v41 = vpop.f32.mrf.mxu2  ;;  %2315 = vmatpush.msra.mxu2 %v2204_v19 }
 0x120   : > { %1996 = vmatmul.f32.gmra.mxu1 %v11088_v15  ;;  %2057 = vmatmul.f32.vlgmr.msra.gmra.mxu3 %v11109_v30  ;;  %v1150_v18 = vadd.f32 %v11338_v41, %v1114_v60 }
 0x121   : > { %v11342_v46 = vpop.f32.mrf.mxu0  ;;  %2344 = vmatpush.msra.mxu3 %v11287_v58 }
 0x123   : > { %v11345_v47 = vpop.f32.mrf.mxu3  ;;  %2346 = vmatpush.msra.mxu3 %v11293_v61 }
 0x124   : > { %2027 = vmatmul.f32.gmra.mxu2 %v11106_v27  ;;  %2096 = vmatmul.f32.vlgmr.msra.gmra.mxu0 %v11086_v14 }
 0x125   : > { %2412 = vmatpush.msra.mxu0 %v2411_v34  ;;  %v11350_v49 = vpop.f32.mrf.mxu1 }
 0x127   : > { %v1279_v50 = vpop.f32.mrf.mxu2 }
 0x128   : > { %2063 = vmatmul.f32.gmra.mxu3 %v11119_v39  ;;  %2127 = vmatmul.f32.vlgmr.msra.gmra.mxu1 %v11086_v14 }
 0x129   : > { %2458 = vmatpush.msra.mxu1 %v2457_v53  ;;  %v1360_v54 = vpop.f32.mrf.mxu0 }
 0x12b   : > { %v1326_v55 = vpop.f32.mrf.mxu3 }
 0x12c   : > { %2032 = vmatmul.f32.gmra.mxu2 %v11103_v24  ;;  %2100 = vmatmul.f32.gmra.mxu0 %v11095_v20 }
 0x12d   : > { %v11356_v58 = vpop.f32.mrf.mxu1 }
 0x12f   : > { %v1287_v59 = vpop.f32.mrf.mxu2 }
 0x130   : > { %2069 = vmatmul.f32.gmra.mxu3 %v11112_v31  ;;  %2131 = vmatmul.f32.gmra.mxu1 %v11095_v20 }
 0x131   : > { %v1365_v56 = vpop.f32.mrf.mxu0 }
 0x133   : > { %v1330_v61 = vpop.f32.mrf.mxu3 }
 0x134   : > { %2104 = vmatmul.f32.gmra.mxu0 %v11088_v15  ;;  %2162 = vmatmul.f32.vlgmr.msrb.gmra.mxu2 %v11121_v43  ;;  %v2388_v43 = vsel %vm2386_vm1, %v2376_v1, 0  ;;  %v1331_v12 = vadd.f32 %v1330_v61, %v1287_v59 }
 0x135   : > { %2489 = vmatpush.msrb.mxu2 %v2454_v38  ;;  %v1401_v62 = vpop.f32.mrf.mxu1  ;;  %v11370_v9 = vand.u32 4294901760, %v2388_v43 }
 0x136   : > { %v1366_v19 = vadd.f32 %v1365_v56, %v1331_v12 }
 0x137   : > { %v1295_v63 = vpop.f32.mrf.mxu2  ;;  %v11381_v8 = vsub.f32 %v2388_v43, %v11370_v9 }
 0x138   : > { %2135 = vmatmul.f32.gmra.mxu1 %v11088_v15  ;;  %2209 = vmatmul.f32.vlgmr.msrb.gmra.mxu3 %v11086_v14  ;;  %v1402_v41 = vadd.f32 %v1401_v62, %v1366_v19 }
 0x139   : > { %2522 = vmatpush.msrb.mxu3 %v2411_v34  ;;  %v1370_v2 = vpop.f32.mrf.mxu0 }
 0x13b   : > { %v1334_v3 = vpop.f32.mrf.mxu3 }
 0x13c   : > { %2170 = vmatmul.f32.gmra.mxu2 %v11131_v52  ;;  %2243 = vmatmul.f32.vlgmr.msrb.gmra.mxu0 %v11100_v23  ;;  %v1106_v23 = vadd.f32 %v11277_v42, %v11271_v35  ;;  %v2377_v35 = vld [vmem:[%s13123_s2 + $0x8] sm:$0xff]  ;;  %v1327_v42 = vadd.f32 %v1326_v55, %v1279_v50  ;;  %v1335_v22 = vadd.f32 %v1334_v3, %v1295_v63 }
 0x13d   : > { %2560 = vmatpush.msrb.mxu0 %v2455_v45  ;;  %v1407_v5 = vpop.f32.mrf.mxu1  ;;  %v2391_v57 = vsel %vm2386_vm1, %v2377_v35, 0 }
 0x13e   : > { %v1140_v16 = vadd.f32 %v11310_v17, %v1106_v23  ;;  %v1187_v17 = vadd.f32 %v11345_v47, %v1150_v18  ;;  %v1361_v29 = vadd.f32 %v1360_v54, %v1327_v42  ;;  %v1371_v45 = vadd.f32 %v1370_v2, %v1335_v22 }
 0x13f   : > { %v1434_v7 = vpop.f32.mrf.mxu2 }
 0x140   : > { %2213 = vmatmul.f32.gmra.mxu3 %v11095_v20  ;;  %2278 = vmatmul.f32.vlgmr.msrb.gmra.mxu1 %v11109_v30  ;;  %v1145_v30 = vadd.f32 %v11326_v33, %v1110_v10  ;;  %v1175_v25 = vadd.f32 %v11317_v26, %v1140_v16  ;;  %v1222_v47 = vadd.f32 %v11342_v46, %v1187_v17 }
 0x141   : > { %2590 = vmatpush.msrb.mxu1 %v2411_v34  ;;  %v11376_v11 = vpop.f32.mrf.mxu0  ;;  %v1396_v48 = vadd.f32 %v11356_v58, %v1361_v29 }
 0x142   : > { %v1181_v6 = vadd.f32 %v11332_v37, %v1145_v30 }
 0x143   : > { %v1465_v52 = vpop.f32.mrf.mxu3  ;;  %v1435_v56 = vadd.f32 %v1434_v7, %v1396_v48 }
 0x144   : > { %2178 = vmatmul.f32.gmra.mxu2 %v11123_v44  ;;  %2248 = vmatmul.f32.gmra.mxu0 %v11106_v27  ;;  %v11397_v44 = vand.u32 4294901760, %v11381_v8  ;;  %v11399_v27 = vand.u32 4294901760, %v2391_v57  ;;  %v1218_v33 = vadd.f32 %v11330_v36, %v1181_v6  ;;  %v2378_v36 = vld [vmem:[%s13123_s2 + $0x10] sm:$0xff] }
 0x145   : > { %v11388_v51 = vpop.f32.mrf.mxu1  ;;  %v2394_v53 = vsel %vm2386_vm1, %v2378_v36, 0  ;;  %v1466_v63 = vadd.f32 %v1465_v52, %v1435_v56 }
 0x146   : > { %v2416_v37 = vsub.f32 %v11381_v8, %v11397_v44  ;;  %v11412_v38 = vsub.f32 %v2391_v57, %v11399_v27  ;;  %v1249_v54 = vadd.f32 %v11336_v40, %v1218_v33  ;;  %v11433_v46 = vand.u32 4294901760, %v2394_v53 }
 0x147   : > { %v1438_v13 = vpop.f32.mrf.mxu2  ;;  %v1253_v40 = vadd.f32 %v11350_v49, %v1222_v47 }
 0x148   : > { %2217 = vmatmul.f32.gmra.mxu3 %v11088_v15  ;;  %2284 = vmatmul.f32.gmra.mxu1 %v11119_v39  ;;  %v1214_v39 = vadd.f32 %v11314_v21, %v1175_v25  ;;  %v1439_v50 = vadd.f32 %v1438_v13, %v1402_v41  ;;  %v11426_v59 = vand.u32 4294901760, %v2416_v37  ;;  %v1408_v21 = vadd.f32 %v1407_v5, %v1371_v45 }
 0x149   : > { %v11405_v28 = vpop.f32.mrf.mxu0 }
 0x14a   : > { %v1245_v58 = vadd.f32 %v11324_v32, %v1214_v39 }
 0x14b   : > { %v1469_v34 = vpop.f32.mrf.mxu3 }
 0x14c   : > { %2317 = vmatmul.f32.vlgmr.msra.gmra.mxu2 %v11086_v14  ;;  %2253 = vmatmul.f32.gmra.mxu0 %v11103_v24  ;;  %v11429_v24 = vand.u32 4294901760, %v11412_v38  ;;  %v1470_v61 = vadd.f32 %v1469_v34, %v1439_v50  ;;  %v2362_v1 = vmax.f32 %v1245_v58, %v1249_v54 }
 0x14d   : > { %v11417_v26 = vpop.f32.mrf.mxu1 }
 0x14e   : > { %v2424_v43 = vsub.f32 %v11412_v38, %v11429_v24  ;;  %v2363_v5 = vmax.f32 %v1466_v63, %v1470_v61  ;;  %v11448_v32 = vmax.f32 %v2362_v1, %v1253_v40  ;;  %v1552_v40 = vadd.f32 %v11417_v26, %v11405_v28 }
 0x14f   : > { %v1442_v55 = vpop.f32.mrf.mxu2  ;;  %v1548_v63 = vadd.f32 %v11388_v51, %v11376_v11 }
 0x150   : > { %2348 = vmatmul.f32.vlgmr.msra.gmra.mxu3 %v11086_v14  ;;  %2290 = vmatmul.f32.gmra.mxu1 %v11112_v31  ;;  %v1443_v2 = vadd.f32 %v1442_v55, %v1408_v21  ;;  %v11444_v14 = vsub.f32 %v2394_v53, %v11433_v46  ;;  %v11458_v52 = vand.u32 4294901760, %v2424_v43 }
 0x151   : > { %v11436_v62 = vpop.f32.mrf.mxu0 }
 0x152   : > { %v11461_v60 = vand.u32 4294901760, %v11444_v14 }
 0x153   : > { %v1473_v3 = vpop.f32.mrf.mxu3 }
 0x154   : > { %v1474_v7 = vadd.f32 %v1473_v3, %v1443_v2  ;;  %2321 = vmatmul.f32.gmra.mxu2 %v11095_v20  ;;  %2418 = vmatmul.f32.vlgmr.msra.gmra.mxu0 %v11426_v59 }
 0x155   : > { %v11446_v31 = vpop.f32.mrf.mxu1 }
 0x156   : > { %v11450_v49 = vmax.f32 %v2363_v5, %v1474_v7  ;;  %v1556_v1 = vadd.f32 %v11446_v31, %v11436_v62 }
 0x157   : > { %v11452_v10 = vpop.f32.mrf.mxu2 }
 0x158   : > { %13162 = vst [vmem:[#allocation9_spill] sm:$0xff] %v11450_v49  ;;  %2352 = vmatmul.f32.gmra.mxu3 %v11095_v20  ;;  %2460 = vmatmul.f32.vlgmr.msra.gmra.mxu1 %v11370_v9  ;;  %v2380_v23 = vmax.f32 %v11448_v32, %v11450_v49  ;;  %v2432_v20 = vsub.f32 %v11444_v14, %v11461_v60 }
 0x159   : > { %v11463_v12 = vpop.f32.mrf.mxu0 }
 0x15a   : > { %v2383_v30 = vmax.f32 %v2380_v23, %v11308_v0  ;;  %v11475_v18 = vand.u32 4294901760, %v2432_v20  ;;  %v1582_v23 = vadd.f32 %v11452_v10, %v1548_v63 }
 0x15b   : > { %v11466_v35 = vpop.f32.mrf.mxu3 }
 0x15c   : > { %2325 = vmatmul.f32.gmra.mxu2 %v11088_v15  ;;  %v2619_v42 = vand.u32 4294901760, %v2383_v30  ;;  %2426 = vmatmul.f32.gmra.mxu0 %v11458_v52  ;;  %v1617_v62 = vadd.f32 %v11466_v35, %v1582_v23 }
 0x15d   : > { %v11472_v57 = vpop.f32.mrf.mxu1 }
 0x15e   : > { %2620 = vmatpush.msra.mxu2 %v2619_v42  ;;  %2730 = vmatpush.msra.mxu1 %v2619_v42  ;;  %v2662_v16 = vsub.f32 %v2383_v30, %v2619_v42 }
 0x15f   : > { %v1586_v6 = vpop.f32.mrf.mxu2 }
 0x160   : > { %2356 = vmatmul.f32.gmra.mxu3 %v11088_v15  ;;  %2697 = vmatpush.msra.mxu0 %v2662_v16  ;;  %v2663_v13 = vand.u32 4294901760, %v2662_v16  ;;  %v1587_v5 = vadd.f32 %v1586_v6, %v1552_v40 }
 0x161   : > { %v11477_v19 = vpop.f32.mrf.mxu0  ;;  %2464 = vmatmul.f32.gmra.mxu1 %v11399_v27 }
 0x162   : > { %v2664_v22 = vsub.f32 %v2662_v16, %v2663_v13 }
 0x163   : > { %v1622_v25 = vpop.f32.mrf.mxu3 }
 0x164   : > { %2492 = vmatmul.f32.vlgmr.msrb.gmra.mxu2 %v11381_v8  ;;  %v2665_v17 = vand.u32 4294901760, %v2664_v22  ;;  %2434 = vmatmul.f32.gmra.mxu0 %v11475_v18  ;;  %v1623_v28 = vadd.f32 %v1622_v25, %v1587_v5  ;;  %v1656_v25 = vadd.f32 %v11463_v12, %v1617_v62 }
 0x165   : > { %2768 = vmatpush.msrb.mxu2 %v2663_v13  ;;  %v11482_v29 = vpop.f32.mrf.mxu1 }
 0x166   : > { %2666 = vmatpush.msra.mxu3 %v2665_v17  ;;  %v1660_v6 = vadd.f32 %v11477_v19, %v1623_v28 }
 0x167   : > { %v1591_v15 = vpop.f32.mrf.mxu2 }
 0x168   : > { %2526 = vmatmul.f32.vlgmr.msrb.gmra.mxu3 %v11397_v44  ;;  %v1592_v26 = vadd.f32 %v1591_v15, %v1556_v1 }
 0x169   : > { %2798 = vmatpush.msrb.mxu3 %v2619_v42  ;;  %v11485_v33 = vpop.f32.mrf.mxu0  ;;  %2468 = vmatmul.f32.gmra.mxu1 %v11433_v46 }
 0x16b   : > { %v1628_v34 = vpop.f32.mrf.mxu3 }
 0x16c   : > { %2497 = vmatmul.f32.gmra.mxu2 %v11412_v38  ;;  %2562 = vmatmul.f32.vlgmr.msrb.gmra.mxu0 %v11370_v9  ;;  %v1629_v31 = vadd.f32 %v1628_v34, %v1592_v26  ;;  %v1691_v34 = vadd.f32 %v11482_v29, %v1660_v6 }
 0x16d   : > { %v11490_v37 = vpop.f32.mrf.mxu1 }
 0x16e   : > { %v1664_v17 = vadd.f32 %v11485_v33, %v1629_v31 }
 0x16f   : > { %v1721_v41 = vpop.f32.mrf.mxu2 }
 0x170   : > { %2532 = vmatmul.f32.gmra.mxu3 %v11429_v24  ;;  %v1695_v12 = vadd.f32 %v11490_v37, %v1664_v17 }
 0x171   : > { %v1802_v45 = vpop.f32.mrf.mxu0  ;;  %2592 = vmatmul.f32.vlgmr.msrb.gmra.mxu1 %v11370_v9 }
 0x173   : > { %v1768_v39 = vpop.f32.mrf.mxu3 }
 0x174   : > { %2502 = vmatmul.f32.gmra.mxu2 %v11444_v14  ;;  %2566 = vmatmul.f32.gmra.mxu0 %v11399_v27  ;;  %v1769_v7 = vadd.f32 %v1768_v39, %v1721_v41 }
 0x175   : > { %v1837_v36 = vpop.f32.mrf.mxu1 }
 0x176   : > { %v1803_v20 = vadd.f32 %v1802_v45, %v1769_v7 }
 0x177   : > { %v1729_v47 = vpop.f32.mrf.mxu2 }
 0x178   : > { %2538 = vmatmul.f32.gmra.mxu3 %v11461_v60  ;;  %v1838_v15 = vadd.f32 %v1837_v36, %v1803_v20 }
 0x179   : > { %v1807_v48 = vpop.f32.mrf.mxu0  ;;  %2596 = vmatmul.f32.gmra.mxu1 %v11399_v27 }
 0x17b   : > { %v1772_v50 = vpop.f32.mrf.mxu3 }
 0x17c   : > { %2626 = vmatmul.f32.vlgmr.msra.gmra.mxu2 %v11426_v59  ;;  %2570 = vmatmul.f32.gmra.mxu0 %v11433_v46  ;;  %v1773_v3 = vadd.f32 %v1772_v50, %v1729_v47 }
 0x17d   : > { %v1843_v53 = vpop.f32.mrf.mxu1 }
 0x17e   : > { %v1808_v42 = vadd.f32 %v1807_v48, %v1773_v3  ;;  %v1687_v48 = vadd.f32 %v11472_v57, %v1656_v25 }
 0x17f   : > { %v1737_v54 = vpop.f32.mrf.mxu2 }
 0x180   : > { %2668 = vmatmul.f32.vlgmr.msra.gmra.mxu3 %v11370_v9  ;;  %v1844_v13 = vadd.f32 %v1843_v53, %v1808_v42  ;;  %v2364_v53 = vmax.f32 %v1687_v48, %v1691_v34 }
 0x181   : > { %v1812_v55 = vpop.f32.mrf.mxu0  ;;  %2600 = vmatmul.f32.gmra.mxu1 %v11433_v46 }
 0x183   : > { %v1776_v21 = vpop.f32.mrf.mxu3 }
 0x184   : > { %2634 = vmatmul.f32.gmra.mxu2 %v11458_v52  ;;  %2700 = vmatmul.f32.vlgmr.msra.gmra.mxu0 %v11381_v8  ;;  %v1777_v11 = vadd.f32 %v1776_v21, %v1737_v54  ;;  %v11541_v21 = vmax.f32 %v2364_v53, %v1695_v12 }
 0x185   : > { %v1849_v56 = vpop.f32.mrf.mxu1 }
 0x186   : > { %v1813_v10 = vadd.f32 %v1812_v55, %v1777_v11  ;;  %13163 = vst [vmem:[#allocation10_spill] sm:$0xff] %v11541_v21 }
 0x187   : > { %v1876_v61 = vpop.f32.mrf.mxu2 }
 0x188   : > { %2672 = vmatmul.f32.gmra.mxu3 %v11399_v27  ;;  %v1850_v45 = vadd.f32 %v1849_v56, %v1813_v10  ;;  %v1877_v39 = vadd.f32 %v1876_v61, %v1838_v15 }
 0x189   : > { %v11505_v58 = vpop.f32.mrf.mxu0  ;;  %2734 = vmatmul.f32.vlgmr.msra.gmra.mxu1 %v11397_v44 }
 0x18b   : > { %v1907_v2 = vpop.f32.mrf.mxu3 }
 0x18c   : > { %2642 = vmatmul.f32.gmra.mxu2 %v11475_v18  ;;  %2705 = vmatmul.f32.gmra.mxu0 %v11412_v38  ;;  %v1908_v50 = vadd.f32 %v1907_v2, %v1877_v39 }
 0x18d   : > { %v11516_v43 = vpop.f32.mrf.mxu1 }
 0x18f   : > { %v1880_v30 = vpop.f32.mrf.mxu2 }
 0x190   : > { %2676 = vmatmul.f32.gmra.mxu3 %v11433_v46  ;;  %v1881_v41 = vadd.f32 %v1880_v30, %v1844_v13 }
 0x191   : > { %v11520_v51 = vpop.f32.mrf.mxu0  ;;  %2740 = vmatmul.f32.gmra.mxu1 %v11429_v24 }
 0x193   : > { %v1911_v16 = vpop.f32.mrf.mxu3 }
 0x194   : > { %2770 = vmatmul.f32.vlgmr.msrb.gmra.mxu2 %v11370_v9  ;;  %2710 = vmatmul.f32.gmra.mxu0 %v11444_v14  ;;  %v1912_v19 = vadd.f32 %v1911_v16, %v1881_v41 }
 0x195   : > { %v11527_v22 = vpop.f32.mrf.mxu1 }
 0x196   : > { %v2365_v54 = vmax.f32 %v1908_v50, %v1912_v19  ;;  %v1994_v12 = vadd.f32 %v11527_v22, %v11520_v51  ;;  %v1990_v50 = vadd.f32 %v11516_v43, %v11505_v58 }
 0x197   : > { %v1884_v35 = vpop.f32.mrf.mxu2 }
 0x198   : > { %2800 = vmatmul.f32.vlgmr.msrb.gmra.mxu3 %v11370_v9  ;;  %v1885_v33 = vadd.f32 %v1884_v35, %v1850_v45 }
 0x199   : > { %v11533_v47 = vpop.f32.mrf.mxu0  ;;  %2746 = vmatmul.f32.gmra.mxu1 %v11461_v60 }
 0x19b   : > { %v1915_v36 = vpop.f32.mrf.mxu3 }
 0x19c   : > { %v1916_v55 = vadd.f32 %v1915_v36, %v1885_v33  ;;  %2774 = vmatmul.f32.gmra.mxu2 %v11399_v27 }
 0x19d   : > { %v11539_v29 = vpop.f32.mrf.mxu1 }
 0x19e   : > { %v11543_v56 = vmax.f32 %v2365_v54, %v1916_v55  ;;  %v1998_v36 = vadd.f32 %v11539_v29, %v11533_v47 }
 0x19f   : > { %v11545_v61 = vpop.f32.mrf.mxu2 }
 0x1a0   : > { %13164 = vst [vmem:[#allocation11_spill] sm:$0xff] %v11543_v56  ;;  %2804 = vmatmul.f32.gmra.mxu3 %v11399_v27  ;;  %v2381_v57 = vmax.f32 %v11541_v21, %v11543_v56 }
 0x1a1   : > { %v11550_v37 = vpop.f32.mrf.mxu0 }
 0x1a2   : > { %v2384_v40 = vmax.f32 %v2381_v57, %v11450_v49 }
 0x1a3   : > { %v11553_v63 = vpop.f32.mrf.mxu3 }
 0x1a4   : > { %2778 = vmatmul.f32.gmra.mxu2 %v11433_v46  ;;  %v2827_v2 = vand.u32 4294901760, %v2384_v40 }
 0x1a5   : > { %v11556_v1 = vpop.f32.mrf.mxu1 }
 0x1a6   : > { %2828 = vmatpush.msrb.mxu0 %v2827_v2  ;;  %2938 = vmatpush.msra.mxu3 %v2827_v2  ;;  %v2870_v3 = vsub.f32 %v2384_v40, %v2827_v2  ;;  %v2024_v40 = vadd.f32 %v11545_v61, %v1990_v50 }
 0x1a7   : > { %v2028_v5 = vpop.f32.mrf.mxu2  ;;  %2834 = vmatmul.f32.vlgmr.msrb.gmra.mxu0 %v11426_v59 }
 0x1a8   : > { %2808 = vmatmul.f32.gmra.mxu3 %v11433_v46  ;;  %2905 = vmatpush.msra.mxu2 %v2870_v3  ;;  %v2871_v7 = vand.u32 4294901760, %v2870_v3  ;;  %v2029_v55 = vadd.f32 %v2028_v5, %v1994_v12  ;;  %v2059_v58 = vadd.f32 %v11553_v63, %v2024_v40 }
 0x1a9   : > { %v2101_v23 = vpop.f32.mrf.mxu0 }
 0x1aa   : > { %2976 = vmatpush.msra.mxu0 %v2871_v7  ;;  %v2872_v30 = vsub.f32 %v2870_v3, %v2871_v7 }
 0x1ab   : > { %v2064_v28 = vpop.f32.mrf.mxu3 }
 0x1ac   : > { %v2873_v26 = vand.u32 4294901760, %v2872_v30  ;;  %2908 = vmatmul.f32.vlgmr.msra.gmra.mxu2 %v11381_v8  ;;  %v2065_v3 = vadd.f32 %v2064_v28, %v2029_v55 }
 0x1ad   : > { %v11561_v42 = vpop.f32.mrf.mxu1 }
 0x1ae   : > { %2874 = vmatpush.msrb.mxu1 %v2873_v26  ;;  %v2102_v29 = vadd.f32 %v2101_v23, %v2065_v3 }
 0x1af   : > { %v2033_v11 = vpop.f32.mrf.mxu2  ;;  %2842 = vmatmul.f32.gmra.mxu0 %v11458_v52  ;;  %2876 = vmatmul.f32.vlgmr.msrb.gmra.mxu1 %v11370_v9 }
 0x1b0   : > { %3006 = vmatpush.msra.mxu1 %v2827_v2  ;;  %2942 = vmatmul.f32.vlgmr.msra.gmra.mxu3 %v11397_v44  ;;  %v2034_v7 = vadd.f32 %v2033_v11, %v1998_v36 }
 0x1b1   : > { %v2105_v62 = vpop.f32.mrf.mxu0 }
 0x1b3   : > { %v2070_v31 = vpop.f32.mrf.mxu3 }
 0x1b4   : > { %2913 = vmatmul.f32.gmra.mxu2 %v11412_v38  ;;  %v2071_v43 = vadd.f32 %v2070_v31, %v2034_v7 }
 0x1b5   : > { %v2136_v20 = vpop.f32.mrf.mxu1 }
 0x1b6   : > { %v2106_v61 = vadd.f32 %v2105_v62, %v2071_v43 }
 0x1b7   : > { %v2163_v16 = vpop.f32.mrf.mxu2  ;;  %2850 = vmatmul.f32.gmra.mxu0 %v11475_v18  ;;  %2880 = vmatmul.f32.gmra.mxu1 %v11399_v27 }
 0x1b8   : > { %2948 = vmatmul.f32.gmra.mxu3 %v11429_v24  ;;  %v2137_v23 = vadd.f32 %v2136_v20, %v2106_v61 }
 0x1b9   : > { %v2244_v6 = vpop.f32.mrf.mxu0 }
 0x1bb   : > { %v2210_v13 = vpop.f32.mrf.mxu3 }
 0x1bc   : > { %2918 = vmatmul.f32.gmra.mxu2 %v11444_v14  ;;  %v2211_v57 = vadd.f32 %v2210_v13, %v2163_v16  ;;  %v2098_v16 = vadd.f32 %v11550_v37, %v2059_v58 }
 0x1bd   : > { %v2279_v10 = vpop.f32.mrf.mxu1 }
 0x1be   : > { %v2245_v22 = vadd.f32 %v2244_v6, %v2211_v57  ;;  %v2129_v31 = vadd.f32 %v11556_v1, %v2098_v16 }
 0x1bf   : > { %v2171_v25 = vpop.f32.mrf.mxu2  ;;  %2978 = vmatmul.f32.vlgmr.msra.gmra.mxu0 %v11370_v9  ;;  %2884 = vmatmul.f32.gmra.mxu1 %v11433_v46 }
 0x1c0   : > { %2954 = vmatmul.f32.gmra.mxu3 %v11461_v60  ;;  %v2280_v13 = vadd.f32 %v2279_v10, %v2245_v22 }
 0x1c1   : > { %v2249_v17 = vpop.f32.mrf.mxu0 }
 0x1c3   : > { %v2214_v15 = vpop.f32.mrf.mxu3 }
 0x1c4   : > { %v2215_v53 = vadd.f32 %v2214_v15, %v2171_v25  ;;  %v2133_v15 = vadd.f32 %v11561_v42, %v2102_v29 }
 0x1c5   : > { %v2285_v41 = vpop.f32.mrf.mxu1 }
 0x1c6   : > { %v2250_v30 = vadd.f32 %v2249_v17, %v2215_v53  ;;  %v2366_v37 = vmax.f32 %v2129_v31, %v2133_v15 }
 0x1c7   : > { %v2179_v35 = vpop.f32.mrf.mxu2  ;;  %2982 = vmatmul.f32.gmra.mxu0 %v11399_v27  ;;  %3008 = vmatmul.f32.vlgmr.msra.gmra.mxu1 %v11370_v9 }
 0x1c8   : > { %v2286_v25 = vadd.f32 %v2285_v41, %v2250_v30  ;;  %v11600_v50 = vmax.f32 %v2366_v37, %v2137_v23 }
 0x1c9   : > { %v2254_v34 = vpop.f32.mrf.mxu0 }
 0x1ca   : > { %13165 = vst [vmem:[#allocation12_spill] sm:$0xff] %v11600_v50 }
 0x1cb   : > { %v2218_v45 = vpop.f32.mrf.mxu3 }
 0x1cc   : > { %v2219_v26 = vadd.f32 %v2218_v45, %v2179_v35 }
 0x1cd   : > { %v2291_v39 = vpop.f32.mrf.mxu1 }
 0x1ce   : > { %v2255_v5 = vadd.f32 %v2254_v34, %v2219_v26 }
 0x1cf   : > { %v2318_v19 = vpop.f32.mrf.mxu2  ;;  %2986 = vmatmul.f32.gmra.mxu0 %v11433_v46  ;;  %3012 = vmatmul.f32.gmra.mxu1 %v11399_v27 }
 0x1d0   : > { %v2292_v35 = vadd.f32 %v2291_v39, %v2255_v5  ;;  %v2319_v45 = vadd.f32 %v2318_v19, %v2280_v13 }
 0x1d1   : > { %v11578_v48 = vpop.f32.mrf.mxu0 }
 0x1d3   : > { %v2349_v33 = vpop.f32.mrf.mxu3 }
 0x1d4   : > { %v2350_v6 = vadd.f32 %v2349_v33, %v2319_v45 }
 0x1d5   : > { %v11586_v54 = vpop.f32.mrf.mxu1 }
 0x1d7   : > { %v2322_v2 = vpop.f32.mrf.mxu2  ;;  %3016 = vmatmul.f32.gmra.mxu1 %v11433_v46 }
 0x1d8   : > { %v2323_v28 = vadd.f32 %v2322_v2, %v2286_v25 }
 0x1d9   : > { %v11590_v51 = vpop.f32.mrf.mxu0 }
 0x1db   : > { %v2353_v47 = vpop.f32.mrf.mxu3 }
 0x1dc   : > { %v2354_v12 = vadd.f32 %v2353_v47, %v2323_v28 }
 0x1de   : > { %v11594_v11 = vpop.f32.mrf.mxu1  ;;  %v2367_v62 = vmax.f32 %v2350_v6, %v2354_v12 }
 0x1df   : > { %v2326_v17 = vpop.f32.mrf.mxu2 }
 0x1e0   : > { %v2327_v41 = vadd.f32 %v2326_v17, %v2292_v35 }
 0x1e1   : > { %v11597_v63 = vpop.f32.mrf.mxu0 }
 0x1e3   : > { %v2357_v34 = vpop.f32.mrf.mxu3 }
 0x1e4   : > { %v2358_v10 = vadd.f32 %v2357_v34, %v2327_v41 }
 0x1e6   : > { %v11602_v36 = vmax.f32 %v2367_v62, %v2358_v10  ;;  %v2469_v53 = vpop.f32.mrf.mxu1 }
 0x1e7   : > { %v2493_v42 = vpop.f32.mrf.mxu2 }
 0x1e8   : > { %13166 = vst [vmem:[#allocation13_spill] sm:$0xff] %v11602_v36  ;;  %v2382_v39 = vmax.f32 %v11600_v50, %v11602_v36 }
 0x1e9   : > { %v11609_v1 = vpop.f32.mrf.mxu0 }
 0x1ea   : > { %v2385_v19 = vmax.f32 %v2382_v39, %v11543_v56 }
 0x1eb   : > { %v11607_v55 = vpop.f32.mrf.mxu3 }
 0x1ec   : > { %v3035_v20 = vand.u32 4294901760, %v2385_v19 }
 0x1ee   : > { %3036 = vmatpush.msrb.mxu2 %v3035_v20  ;;  %3146 = vmatpush.msrb.mxu1 %v3035_v20  ;;  %v3078_v33 = vsub.f32 %v2385_v19, %v3035_v20  ;;  %v11612_v40 = vpop.f32.mrf.mxu1 }
 0x1ef   : > { %3042 = vmatmul.f32.vlgmr.msrb.gmra.mxu2 %v11426_v59  ;;  %v2498_v57 = vpop.f32.mrf.mxu2  ;;  %3150 = vmatmul.f32.vlgmr.msrb.gmra.mxu1 %v11397_v44 }
 0x1f0   : > { %3113 = vmatpush.msrb.mxu0 %v3078_v33  ;;  %v3079_v2 = vand.u32 4294901760, %v3078_v33 }
 0x1f1   : > { %3116 = vmatmul.f32.vlgmr.msrb.gmra.mxu0 %v11381_v8  ;;  %v2567_v26 = vpop.f32.mrf.mxu0 }
 0x1f2   : > { %3184 = vmatpush.msra.mxu2 %v3079_v2  ;;  %v3080_v3 = vsub.f32 %v3078_v33, %v3079_v2  ;;  %v3237_v33 = vld [vmem:[%s13124_s3 + $0x8] sm:$0xff] }
 0x1f3   : > { %v2533_v7 = vpop.f32.mrf.mxu3 }
 0x1f4   : > { %v3081_v30 = vand.u32 4294901760, %v3080_v3 }
 0x1f6   : > { %3082 = vmatpush.msrb.mxu3 %v3081_v30  ;;  %v2597_v58 = vpop.f32.mrf.mxu1 }
 0x1f7   : > { %3050 = vmatmul.f32.gmra.mxu2 %v11458_v52  ;;  %3084 = vmatmul.f32.vlgmr.msrb.gmra.mxu3 %v11370_v9  ;;  %v2503_v59 = vpop.f32.mrf.mxu2 }
 0x1f8   : > { %3214 = vmatpush.msra.mxu3 %v3035_v20  ;;  %3156 = vmatmul.f32.gmra.mxu1 %v11429_v24 }
 0x1f9   : > { %3121 = vmatmul.f32.gmra.mxu0 %v11412_v38  ;;  %v2571_v43 = vpop.f32.mrf.mxu0 }
 0x1fb   : > { %v2539_v44 = vpop.f32.mrf.mxu3 }
 0x1fe   : > { %v2601_v22 = vpop.f32.mrf.mxu1 }
 0x1ff   : > { %3058 = vmatmul.f32.gmra.mxu2 %v11475_v18  ;;  %3088 = vmatmul.f32.gmra.mxu3 %v11399_v27  ;;  %v2627_v8 = vpop.f32.mrf.mxu2 }
 0x200   : > { %3162 = vmatmul.f32.gmra.mxu1 %v11461_v60  ;;  %v2466_v60 = vadd.f32 %v11594_v11, %v11590_v51 }
 0x201   : > { %3126 = vmatmul.f32.gmra.mxu0 %v11444_v14  ;;  %v2701_v47 = vpop.f32.mrf.mxu0  ;;  %v2462_v14 = vadd.f32 %v11586_v54, %v11578_v48  ;;  %v3236_v48 = vld [vmem:[%s13124_s3] sm:$0xff] }
 0x202   : > { %v2499_v15 = vadd.f32 %v2498_v57, %v2466_v60 }
 0x203   : > { %v2669_v52 = vpop.f32.mrf.mxu3  ;;  %v2494_v17 = vadd.f32 %v2493_v42, %v2462_v14 }
 0x204   : > { %v2670_v16 = vadd.f32 %v2669_v52, %v2627_v8  ;;  %v2534_v51 = vadd.f32 %v2533_v7, %v2499_v15 }
 0x205   : > { %v2528_v54 = vadd.f32 %v11607_v55, %v2494_v17 }
 0x206   : > { %v2735_v29 = vpop.f32.mrf.mxu1  ;;  %v2702_v35 = vadd.f32 %v2701_v47, %v2670_v16  ;;  %v2568_v62 = vadd.f32 %v2567_v26, %v2534_v51  ;;  %v3247_v26 = vsel %vm3242_vm2, %v3237_v33, 0 }
 0x207   : > { %3092 = vmatmul.f32.gmra.mxu3 %v11433_v46  ;;  %3186 = vmatmul.f32.vlgmr.msra.gmra.mxu2 %v11370_v9  ;;  %v2635_v24 = vpop.f32.mrf.mxu2  ;;  %v2564_v37 = vadd.f32 %v11609_v1, %v2528_v54  ;;  %v11655_v47 = vand.u32 4294901760, %v3247_v26 }
 0x208   : > { %v2736_v23 = vadd.f32 %v2735_v29, %v2702_v35  ;;  %v2598_v57 = vadd.f32 %v2597_v58, %v2568_v62 }
 0x209   : > { %v2706_v5 = vpop.f32.mrf.mxu0 }
 0x20b   : > { %v2673_v38 = vpop.f32.mrf.mxu3 }
 0x20c   : > { %v2674_v61 = vadd.f32 %v2673_v38, %v2635_v24 }
 0x20e   : > { %v2741_v28 = vpop.f32.mrf.mxu1  ;;  %v2707_v45 = vadd.f32 %v2706_v5, %v2674_v61 }
 0x20f   : > { %3190 = vmatmul.f32.gmra.mxu2 %v11399_v27  ;;  %3216 = vmatmul.f32.vlgmr.msra.gmra.mxu3 %v11370_v9  ;;  %v2643_v18 = vpop.f32.mrf.mxu2  ;;  %v2470_v9 = vadd.f32 %v2469_v53, %v11597_v63  ;;  %v3244_v63 = vsel %vm3242_vm2, %v3236_v48, 0 }
 0x210   : > { %v2742_v6 = vadd.f32 %v2741_v28, %v2707_v45  ;;  %v11642_v19 = vand.u32 4294901760, %v3244_v63 }
 0x211   : > { %v2711_v11 = vpop.f32.mrf.mxu0 }
 0x212   : > { %v11649_v1 = vsub.f32 %v3244_v63, %v11642_v19 }
 0x213   : > { %v2677_v25 = vpop.f32.mrf.mxu3 }
 0x214   : > { %v2678_v31 = vadd.f32 %v2677_v25, %v2643_v18  ;;  %v11653_v24 = vand.u32 4294901760, %v11649_v1 }
 0x216   : > { %v2712_v34 = vadd.f32 %v2711_v11, %v2678_v31  ;;  %v2747_v10 = vpop.f32.mrf.mxu1  ;;  %v3276_v18 = vsub.f32 %v11649_v1, %v11653_v24 }
 0x217   : > { %3194 = vmatmul.f32.gmra.mxu2 %v11433_v46  ;;  %3220 = vmatmul.f32.gmra.mxu3 %v11399_v27  ;;  %v2771_v13 = vpop.f32.mrf.mxu2  ;;  %v2504_v27 = vadd.f32 %v2503_v59, %v2470_v9 }
 0x218   : > { %v2772_v42 = vadd.f32 %v2771_v13, %v2736_v23  ;;  %v2748_v20 = vadd.f32 %v2747_v10, %v2712_v34  ;;  %v11673_v60 = vand.u32 4294901760, %v3276_v18 }
 0x219   : > { %v2540_v53 = vadd.f32 %v2539_v44, %v2504_v27 }
 0x21b   : > { %v2801_v12 = vpop.f32.mrf.mxu3  ;;  %v2572_v2 = vadd.f32 %v2571_v43, %v2540_v53  ;;  %v3238_v43 = vld [vmem:[%s13124_s3 + $0x10] sm:$0xff] }
 0x21c   : > { %v2802_v3 = vadd.f32 %v2801_v12, %v2772_v42  ;;  %v3250_v25 = vsel %vm3242_vm2, %v3238_v43, 0 }
 0x21d   : > { %v2602_v8 = vadd.f32 %v2601_v22, %v2572_v2  ;;  %v11667_v22 = vsub.f32 %v3247_v26, %v11655_v47  ;;  %v11678_v61 = vand.u32 4294901760, %v3250_v25 }
 0x21f   : > { %3224 = vmatmul.f32.gmra.mxu3 %v11433_v46  ;;  %v2775_v41 = vpop.f32.mrf.mxu2  ;;  %v2594_v46 = vadd.f32 %v11612_v40, %v2564_v37  ;;  %v11676_v16 = vand.u32 4294901760, %v11667_v22  ;;  %v11684_v15 = vsub.f32 %v3250_v25, %v11678_v61 }
 0x220   : > { %v2776_v39 = vadd.f32 %v2775_v41, %v2742_v6 }
 0x221   : > { %v3228_v44 = vmax.f32 %v2594_v46, %v2598_v57  ;;  %v3284_v17 = vsub.f32 %v11667_v22, %v11676_v16  ;;  %v11691_v12 = vand.u32 4294901760, %v11684_v15 }
 0x223   : > { %v2805_v55 = vpop.f32.mrf.mxu3  ;;  %v11660_v38 = vmax.f32 %v3228_v44, %v2602_v8  ;;  %v11688_v45 = vand.u32 4294901760, %v3284_v17  ;;  %v3292_v48 = vsub.f32 %v11684_v15, %v11691_v12 }
 0x224   : > { %v2806_v7 = vadd.f32 %v2805_v55, %v2776_v39  ;;  %v2835_v51 = vpop.f32.mrf.mxu0 }
 0x225   : > { %v11699_v54 = vand.u32 4294901760, %v3292_v48 }
 0x226   : > { %v3229_v52 = vmax.f32 %v2802_v3, %v2806_v7 }
 0x227   : > { %v2779_v30 = vpop.f32.mrf.mxu2 }
 0x228   : > { %v2780_v59 = vadd.f32 %v2779_v30, %v2748_v20 }
 0x22b   : > { %v2809_v40 = vpop.f32.mrf.mxu3 }
 0x22c   : > { %v2810_v58 = vadd.f32 %v2809_v40, %v2780_v59  ;;  %v2877_v11 = vpop.f32.mrf.mxu1  ;;  %v2843_v27 = vpop.f32.mrf.mxu0 }
 0x22e   : > { %v11662_v29 = vmax.f32 %v3229_v52, %v2810_v58  ;;  %v2878_v52 = vadd.f32 %v2877_v11, %v2835_v51 }
 0x22f   : > { %v2909_v23 = vpop.f32.mrf.mxu2 }
 0x230   : > { %v3239_v5 = vmax.f32 %v11660_v38, %v11662_v29  ;;  %v2910_v43 = vadd.f32 %v2909_v23, %v2878_v52 }
 0x232   : > { %v3254_v14 = vsel %vm3252_vm3, %v3239_v5, 0 }
 0x233   : > { %v3271_v13 = vand.u32 4294901760, %v3254_v14  ;;  %v2943_v41 = vpop.f32.mrf.mxu3 }
 0x234   : > { %v2881_v6 = vpop.f32.mrf.mxu1  ;;  %v2851_v63 = vpop.f32.mrf.mxu0 }
 0x235   : > { %3272 = vmatpush.msra.mxu0 %v3271_v13  ;;  %3382 = vmatpush.msrb.mxu3 %v3271_v13  ;;  %v3314_v28 = vsub.f32 %v3254_v14, %v3271_v13  ;;  %v2882_v40 = vadd.f32 %v2881_v6, %v2843_v27 }
 0x236   : > { %3278 = vmatmul.f32.vlgmr.msra.gmra.mxu0 %v11673_v60  ;;  %3386 = vmatmul.f32.vlgmr.msrb.gmra.mxu3 %v11653_v24 }
 0x237   : > { %3349 = vmatpush.msrb.mxu2 %v3314_v28  ;;  %v3315_v9 = vand.u32 4294901760, %v3314_v28  ;;  %v2914_v34 = vpop.f32.mrf.mxu2 }
 0x238   : > { %3352 = vmatmul.f32.vlgmr.msrb.gmra.mxu2 %v11649_v1  ;;  %v2915_v25 = vadd.f32 %v2914_v34, %v2882_v40 }
 0x239   : > { %3420 = vmatpush.msrb.mxu0 %v3315_v9  ;;  %v3316_v35 = vsub.f32 %v3314_v28, %v3315_v9  ;;  %v2944_v28 = vadd.f32 %v2943_v41, %v2910_v43 }
 0x23b   : > { %v3317_v31 = vand.u32 4294901760, %v3316_v35  ;;  %v2949_v62 = vpop.f32.mrf.mxu3 }
 0x23c   : > { %v2885_v37 = vpop.f32.mrf.mxu1  ;;  %v2979_v10 = vpop.f32.mrf.mxu0  ;;  %v2950_v9 = vadd.f32 %v2949_v62, %v2915_v25 }
 0x23d   : > { %3318 = vmatpush.msra.mxu1 %v3317_v31  ;;  %v2886_v18 = vadd.f32 %v2885_v37, %v2851_v63  ;;  %v2980_v56 = vadd.f32 %v2979_v10, %v2944_v28 }
 0x23e   : > { %3320 = vmatmul.f32.vlgmr.msra.gmra.mxu1 %v11642_v19  ;;  %3286 = vmatmul.f32.gmra.mxu0 %v11688_v45 }
 0x23f   : > { %3450 = vmatpush.msrb.mxu1 %v3271_v13  ;;  %3392 = vmatmul.f32.gmra.mxu3 %v11676_v16  ;;  %v2919_v53 = vpop.f32.mrf.mxu2 }
 0x240   : > { %3357 = vmatmul.f32.gmra.mxu2 %v11667_v22  ;;  %v2920_v35 = vadd.f32 %v2919_v53, %v2886_v18 }
 0x243   : > { %v2955_v39 = vpop.f32.mrf.mxu3 }
 0x244   : > { %v3009_v42 = vpop.f32.mrf.mxu1  ;;  %v2983_v55 = vpop.f32.mrf.mxu0  ;;  %v2956_v21 = vadd.f32 %v2955_v39, %v2920_v35 }
 0x245   : > { %v2984_v49 = vadd.f32 %v2983_v55, %v2950_v9  ;;  %v3010_v6 = vadd.f32 %v3009_v42, %v2980_v56  ;;  %v3679_v9 = vld [vmem:[%s13125_s4] sm:$0xf] }
 0x246   : > { %3324 = vmatmul.f32.gmra.mxu1 %v11655_v47  ;;  %3294 = vmatmul.f32.gmra.mxu0 %v11699_v54 }
 0x247   : > { %3398 = vmatmul.f32.gmra.mxu3 %v11691_v12 }
 0x248   : > { %3362 = vmatmul.f32.gmra.mxu2 %v11684_v15 }
 0x24c   : > { %v3013_v33 = vpop.f32.mrf.mxu1  ;;  %v2987_v2 = vpop.f32.mrf.mxu0 }
 0x24d   : > { %v3014_v34 = vadd.f32 %v3013_v33, %v2984_v49  ;;  %v2988_v37 = vadd.f32 %v2987_v2, %v2956_v21 }
 0x24e   : > { %3328 = vmatmul.f32.gmra.mxu1 %v11678_v61  ;;  %3422 = vmatmul.f32.vlgmr.msrb.gmra.mxu0 %v11642_v19 }
 0x254   : > { %v3017_v3 = vpop.f32.mrf.mxu1 }
 0x256   : > { %3452 = vmatmul.f32.vlgmr.msrb.gmra.mxu1 %v11642_v19  ;;  %3426 = vmatmul.f32.gmra.mxu0 %v11655_v47 }
 0x25e   : > { %3456 = vmatmul.f32.gmra.mxu1 %v11655_v47  ;;  %3430 = vmatmul.f32.gmra.mxu0 %v11678_v61 }
 0x266   : > { %3460 = vmatmul.f32.gmra.mxu1 %v11678_v61 }
 0x26c   : > { %v3151_v59 = vpop.f32.mrf.mxu1 }
 0x26e   : > { %v3117_v26 = vpop.f32.mrf.mxu0 }
 0x272   : > { %v3043_v20 = vpop.f32.mrf.mxu2 }
 0x275   : > { %v3157_v5 = vpop.f32.mrf.mxu1 }
 0x276   : > { %v3122_v58 = vpop.f32.mrf.mxu0 }
 0x27a   : > { %v3051_v46 = vpop.f32.mrf.mxu2  ;;  %v3085_v57 = vpop.f32.mrf.mxu3 }
 0x27b   : > { %v3086_v31 = vadd.f32 %v3085_v57, %v3043_v20  ;;  %v3230_v57 = vmax.f32 %v3010_v6, %v3014_v34 }
 0x27d   : > { %v3118_v51 = vadd.f32 %v3117_v26, %v3086_v31  ;;  %v3163_v63 = vpop.f32.mrf.mxu1  ;;  %v3710_v31 = vsel %vm3708_vm4, %v3679_v9, 0 }
 0x27e   : > { %v3127_v50 = vpop.f32.mrf.mxu0 }
 0x282   : > { %v3059_v7 = vpop.f32.mrf.mxu2  ;;  %v3089_v30 = vpop.f32.mrf.mxu3 }
 0x283   : > { %v3090_v13 = vadd.f32 %v3089_v30, %v3051_v46  ;;  %v3152_v46 = vadd.f32 %v3151_v59, %v3118_v51 }
 0x285   : > { %v3123_v48 = vadd.f32 %v3122_v58, %v3090_v13 }
 0x287   : > { %v3158_v27 = vadd.f32 %v3157_v5, %v3123_v48 }
 0x28a   : > { %v3093_v44 = vpop.f32.mrf.mxu3  ;;  %v3187_v8 = vpop.f32.mrf.mxu2 }
 0x28b   : > { %v3094_v36 = vadd.f32 %v3093_v44, %v3059_v7  ;;  %v3188_v62 = vadd.f32 %v3187_v8, %v3152_v46  ;;  %v3018_v7 = vadd.f32 %v3017_v3, %v2988_v37 }
 0x28d   : > { %v3128_v23 = vadd.f32 %v3127_v50, %v3094_v36  ;;  %v11712_v52 = vmax.f32 %v3230_v57, %v3018_v7 }
 0x28f   : > { %v3164_v53 = vadd.f32 %v3163_v63, %v3128_v23  ;;  %v11740_v23 = vand.u32 4294901760, %v3710_v31 }
 0x291   : > { %v11744_v46 = vsub.f32 %v3710_v31, %v11740_v23 }
 0x292   : > { %v3217_v14 = vpop.f32.mrf.mxu3  ;;  %v3191_v17 = vpop.f32.mrf.mxu2 }
 0x293   : > { %v3192_v41 = vadd.f32 %v3191_v17, %v3158_v27  ;;  %v3218_v10 = vadd.f32 %v3217_v14, %v3188_v62  ;;  %v11747_v62 = vand.u32 4294901760, %v11744_v46 }
 0x295   : > { %v3736_v7 = vsub.f32 %v11744_v46, %v11747_v62 }
 0x29a   : > { %v3221_v11 = vpop.f32.mrf.mxu3  ;;  %v3195_v30 = vpop.f32.mrf.mxu2 }
 0x29b   : > { %v3222_v20 = vadd.f32 %v3221_v11, %v3192_v41  ;;  %v3196_v44 = vadd.f32 %v3195_v30, %v3164_v53 }
 0x29d   : > { %v3231_v39 = vmax.f32 %v3218_v10, %v3222_v20 }
 0x2a2   : > { %v3225_v55 = vpop.f32.mrf.mxu3 }
 0x2a3   : > { %v3226_v26 = vadd.f32 %v3225_v55, %v3196_v44  ;;  %v11752_v44 = vand.u32 4294901760, %v3736_v7 }
 0x2a5   : > { %v11714_v50 = vmax.f32 %v3231_v39, %v3226_v26 }
 0x2a7   : > { %v3240_v49 = vmax.f32 %v11712_v52, %v11714_v50 }
 0x2a9   : > { %v3241_v21 = vmax.f32 %v3240_v49, %v11662_v29 }
 0x2ab   : > { %v3465_v56 = vsel %vm3252_vm3, %v3241_v21, 0 }
 0x2ac   : > { %v3482_v36 = vand.u32 4294901760, %v3465_v56 }
 0x2ae   : > { %3483 = vmatpush.msra.mxu2 %v3482_v36  ;;  %3593 = vmatpush.msra.mxu1 %v3482_v36  ;;  %v3525_v42 = vsub.f32 %v3465_v56, %v3482_v36 }
 0x2af   : > { %3489 = vmatmul.f32.vlgmr.msra.gmra.mxu2 %v11673_v60  ;;  %3597 = vmatmul.f32.vlgmr.msra.gmra.mxu1 %v11653_v24 }
 0x2b0   : > { %3560 = vmatpush.msra.mxu0 %v3525_v42  ;;  %v3526_v33 = vand.u32 4294901760, %v3525_v42 }
 0x2b1   : > { %3563 = vmatmul.f32.vlgmr.msra.gmra.mxu0 %v11649_v1 }
 0x2b2   : > { %3631 = vmatpush.msrb.mxu2 %v3526_v33  ;;  %v3527_v2 = vsub.f32 %v3525_v42, %v3526_v33 }
 0x2b3   : > { %v3279_v3 = vpop.f32.mrf.mxu0 }
 0x2b4   : > { %v3528_v59 = vand.u32 4294901760, %v3527_v2 }
 0x2b6   : > { %3529 = vmatpush.msra.mxu3 %v3528_v59 }
 0x2b7   : > { %3531 = vmatmul.f32.vlgmr.msra.gmra.mxu3 %v11642_v19  ;;  %3497 = vmatmul.f32.gmra.mxu2 %v11688_v45 }
 0x2b8   : > { %3661 = vmatpush.msrb.mxu3 %v3482_v36  ;;  %3603 = vmatmul.f32.gmra.mxu1 %v11676_v16 }
 0x2b9   : > { %3568 = vmatmul.f32.gmra.mxu0 %v11667_v22  ;;  %v3387_v58 = vpop.f32.mrf.mxu3 }
 0x2bb   : > { %v3321_v60 = vpop.f32.mrf.mxu1  ;;  %v3287_v24 = vpop.f32.mrf.mxu0 }
 0x2bc   : > { %v3353_v1 = vpop.f32.mrf.mxu2  ;;  %v3322_v43 = vadd.f32 %v3321_v60, %v3279_v3 }
 0x2bf   : > { %3535 = vmatmul.f32.gmra.mxu3 %v11655_v47  ;;  %3505 = vmatmul.f32.gmra.mxu2 %v11699_v54 }
 0x2c0   : > { %3609 = vmatmul.f32.gmra.mxu1 %v11691_v12  ;;  %v3354_v12 = vadd.f32 %v3353_v1, %v3322_v43 }
 0x2c1   : > { %3573 = vmatmul.f32.gmra.mxu0 %v11684_v15 }
 0x2c2   : > { %v3393_v54 = vpop.f32.mrf.mxu3  ;;  %v3388_v28 = vadd.f32 %v3387_v58, %v3354_v12 }
 0x2c3   : > { %v3325_v8 = vpop.f32.mrf.mxu1  ;;  %v3295_v40 = vpop.f32.mrf.mxu0 }
 0x2c4   : > { %v3358_v16 = vpop.f32.mrf.mxu2  ;;  %v3326_v18 = vadd.f32 %v3325_v8, %v3287_v24 }
 0x2c6   : > { %v3359_v25 = vadd.f32 %v3358_v16, %v3326_v18 }
 0x2c7   : > { %3539 = vmatmul.f32.gmra.mxu3 %v11678_v61  ;;  %3633 = vmatmul.f32.vlgmr.msrb.gmra.mxu2 %v11642_v19 }
 0x2c8   : > { %v3394_v17 = vadd.f32 %v3393_v54, %v3359_v25 }
 0x2ca   : > { %v3399_v35 = vpop.f32.mrf.mxu3 }
 0x2cb   : > { %v3329_v22 = vpop.f32.mrf.mxu1  ;;  %v3423_v45 = vpop.f32.mrf.mxu0 }
 0x2cc   : > { %v3330_v14 = vadd.f32 %v3329_v22, %v3295_v40  ;;  %v3363_v13 = vpop.f32.mrf.mxu2  ;;  %v3424_v48 = vadd.f32 %v3423_v45, %v3388_v28 }
 0x2cf   : > { %3663 = vmatmul.f32.vlgmr.msrb.gmra.mxu3 %v11642_v19  ;;  %3637 = vmatmul.f32.gmra.mxu2 %v11655_v47  ;;  %v3364_v19 = vadd.f32 %v3363_v13, %v3330_v14 }
 0x2d1   : > { %v3400_v27 = vadd.f32 %v3399_v35, %v3364_v19 }
 0x2d3   : > { %v3453_v15 = vpop.f32.mrf.mxu1  ;;  %v3427_v5 = vpop.f32.mrf.mxu0 }
 0x2d4   : > { %v3428_v51 = vadd.f32 %v3427_v5, %v3394_v17  ;;  %v3454_v63 = vadd.f32 %v3453_v15, %v3424_v48 }
 0x2d7   : > { %3667 = vmatmul.f32.gmra.mxu3 %v11655_v47  ;;  %3641 = vmatmul.f32.gmra.mxu2 %v11678_v61 }
 0x2db   : > { %v3457_v11 = vpop.f32.mrf.mxu1  ;;  %v3431_v6 = vpop.f32.mrf.mxu0 }
 0x2dc   : > { %v3458_v34 = vadd.f32 %v3457_v11, %v3428_v51  ;;  %v3432_v37 = vadd.f32 %v3431_v6, %v3400_v27 }
 0x2de   : > { %v3675_v47 = vmax.f32 %v3454_v63, %v3458_v34 }
 0x2df   : > { %3671 = vmatmul.f32.gmra.mxu3 %v11678_v61 }
 0x2e3   : > { %v3461_v41 = vpop.f32.mrf.mxu1 }
 0x2e4   : > { %v3462_v30 = vadd.f32 %v3461_v41, %v3432_v37 }
 0x2e6   : > { %v3677_v53 = vmax.f32 %v3675_v47, %v3462_v30 }
 0x2e8   : > { %v3700_v20 = vmul.f32 0.25, %v3677_v53  ;;  %v3701_v57 = vmul.f32 0.75, %v3677_v53 }
 0x2ea   : > { %v3703_v10 = vadd.f32 %v3701_v57, %v3700_v20 }
 0x2ec   : > { %v3714_v61 = vsel %vm3712_vm5, %v3703_v10, 0 }
 0x2ed   : > { %v3731_v55 = vand.u32 4294901760, %v3714_v61 }
 0x2ef   : > { %v3758_v39 = vsub.f32 %v3714_v61, %v3731_v55  ;;  %3732 = vmatpush.msrb.mxu0 %v3731_v55  ;;  %3808 = vmatpush.msra.mxu3 %v3731_v55 }
 0x2f0   : > { %3738 = vmatmul.f32.vlgmr.msrb.gmra.mxu0 %v11752_v44  ;;  %3812 = vmatmul.f32.vlgmr.msra.gmra.mxu3 %v11747_v62 }
 0x2f1   : > { %3785 = vmatpush.msra.mxu2 %v3758_v39  ;;  %v3759_v26 = vand.u32 4294901760, %v3758_v39 }
 0x2f2   : > { %3788 = vmatmul.f32.vlgmr.msra.gmra.mxu2 %v11744_v46 }
 0x2f3   : > { %v3760_v49 = vsub.f32 %v3758_v39, %v3759_v26  ;;  %3834 = vmatpush.msra.mxu0 %v3759_v26 }
 0x2f5   : > { %v3761_v21 = vand.u32 4294901760, %v3760_v49 }
 0x2f7   : > { %3762 = vmatpush.msrb.mxu1 %v3761_v21 }
 0x2f8   : > { %3764 = vmatmul.f32.vlgmr.msrb.gmra.mxu1 %v11740_v23  ;;  %3836 = vmatmul.f32.vlgmr.msra.gmra.mxu0 %v11740_v23 }
 0x2f9   : > { %3856 = vmatpush.msra.mxu1 %v3731_v55 }
 0x300   : > { %3858 = vmatmul.f32.vlgmr.msra.gmra.mxu1 %v11740_v23 }
 0x32c   : > { %v3598_v59 = vpop.f32.mrf.mxu1 }
 0x32e   : > { %v3564_v3 = vpop.f32.mrf.mxu0 }
 0x332   : > { %v3490_v56 = vpop.f32.mrf.mxu2 }
 0x335   : > { %v3604_v40 = vpop.f32.mrf.mxu1 }
 0x336   : > { %v3569_v1 = vpop.f32.mrf.mxu0 }
 0x33a   : > { %v3532_v36 = vpop.f32.mrf.mxu3  ;;  %v3498_v42 = vpop.f32.mrf.mxu2 }
 0x33b   : > { %v3533_v22 = vadd.f32 %v3532_v36, %v3490_v56 }
 0x33d   : > { %v3565_v54 = vadd.f32 %v3564_v3, %v3533_v22  ;;  %v3610_v5 = vpop.f32.mrf.mxu1 }
 0x33e   : > { %v3574_v18 = vpop.f32.mrf.mxu0 }
 0x33f   : > { %v3599_v14 = vadd.f32 %v3598_v59, %v3565_v54  ;;  %v3687_v54 = vld [vmem:[%s13130_s9 + $0x38] sm:$0xff] }
 0x342   : > { %v3536_v33 = vpop.f32.mrf.mxu3  ;;  %v3506_v2 = vpop.f32.mrf.mxu2 }
 0x343   : > { %v3537_v58 = vadd.f32 %v3536_v33, %v3498_v42 }
 0x345   : > { %v3570_v43 = vadd.f32 %v3569_v1, %v3537_v58 }
 0x347   : > { %v3605_v25 = vadd.f32 %v3604_v40, %v3570_v43 }
 0x34a   : > { %v3540_v60 = vpop.f32.mrf.mxu3  ;;  %v3634_v24 = vpop.f32.mrf.mxu2 }
 0x34b   : > { %v3541_v45 = vadd.f32 %v3540_v60, %v3506_v2  ;;  %v3635_v17 = vadd.f32 %v3634_v24, %v3599_v14 }
 0x34d   : > { %v3575_v15 = vadd.f32 %v3574_v18, %v3541_v45 }
 0x34f   : > { %v3611_v19 = vadd.f32 %v3610_v5, %v3575_v15  ;;  %v3685_v5 = vld [vmem:[%s13130_s9 + $0x28] sm:$0xff] }
 0x352   : > { %v3664_v8 = vpop.f32.mrf.mxu3  ;;  %v3638_v16 = vpop.f32.mrf.mxu2 }
 0x353   : > { %v3639_v13 = vadd.f32 %v3638_v16, %v3605_v25  ;;  %v3665_v35 = vadd.f32 %v3664_v8, %v3635_v17  ;;  %v11807_v17 = vand.u32 4294901760, %v3685_v5 }
 0x35a   : > { %v3668_v12 = vpop.f32.mrf.mxu3  ;;  %v3642_v28 = vpop.f32.mrf.mxu2 }
 0x35b   : > { %v3669_v9 = vadd.f32 %v3668_v12, %v3639_v13  ;;  %v3643_v31 = vadd.f32 %v3642_v28, %v3611_v19  ;;  %v11788_v12 = vand.u32 4294901760, %v3687_v54 }
 0x35d   : > { %v3676_v51 = vmax.f32 %v3665_v35, %v3669_v9  ;;  %v3684_v9 = vld [vmem:[%s13130_s9 + $0x20] sm:$0xff] }
 0x362   : > { %v3672_v48 = vpop.f32.mrf.mxu3 }
 0x363   : > { %v3673_v11 = vadd.f32 %v3672_v48, %v3643_v31  ;;  %v11820_v48 = vsub.f32 %v3685_v5, %v11807_v17 }
 0x365   : > { %v3678_v27 = vmax.f32 %v3676_v51, %v3673_v11  ;;  %v11824_v11 = vand.u32 4294901760, %v3684_v9 }
 0x367   : > { %v3702_v6 = vmul.f32 0.75, %v3678_v27  ;;  %v3705_v63 = vmul.f32 0.25, %v3678_v27  ;;  %v3683_v27 = vld [vmem:[%s13130_s9 + $0x18] sm:$0xff] }
 0x369   : > { %v3704_v34 = vadd.f32 %v3702_v6, %v3700_v20  ;;  %v3706_v37 = vadd.f32 %v3705_v63, %v3701_v57  ;;  %v3707_v47 = vadd.f32 %v3705_v63, %v3702_v6 }
 0x36b   : > { %v3863_v41 = vsel %vm3712_vm5, %v3706_v37, 0  ;;  %v4012_v30 = vsel %vm3712_vm5, %v3704_v34, 0  ;;  %v4161_v53 = vsel %vm3712_vm5, %v3707_v47, 0  ;;  %v4388_v37 = vand.u32 4294901760, %v11820_v48 }
 0x36c   : > { %v3880_v7 = vand.u32 4294901760, %v3863_v41  ;;  %v4029_v10 = vand.u32 4294901760, %v4012_v30  ;;  %v4178_v39 = vand.u32 4294901760, %v4161_v53  ;;  %v11836_v47 = vsub.f32 %v3684_v9, %v11824_v11 }
 0x36d   : > { %v3739_v20 = vpop.f32.mrf.mxu0 }
 0x36e   : > { %3881 = vmatpush.msrb.mxu2 %v3880_v7  ;;  %3957 = vmatpush.msrb.mxu1 %v3880_v7  ;;  %v3907_v61 = vsub.f32 %v3863_v41, %v3880_v7  ;;  %v4056_v55 = vsub.f32 %v4012_v30, %v4029_v10  ;;  %v4205_v56 = vsub.f32 %v4161_v53, %v4178_v39  ;;  %v11838_v41 = vand.u32 4294901760, %v3683_v27  ;;  %v3682_v30 = vld [vmem:[%s13130_s9 + $0x10] sm:$0xff] }
 0x36f   : > { %3887 = vmatmul.f32.vlgmr.msrb.gmra.mxu2 %v11752_v44  ;;  %3961 = vmatmul.f32.vlgmr.msrb.gmra.mxu1 %v11747_v62 }
 0x370   : > { %3934 = vmatpush.msrb.mxu0 %v3907_v61  ;;  %v3908_v57 = vand.u32 4294901760, %v3907_v61  ;;  %v4057_v26 = vand.u32 4294901760, %v4056_v55  ;;  %v4206_v59 = vand.u32 4294901760, %v4205_v56 }
 0x371   : > { %3937 = vmatmul.f32.vlgmr.msrb.gmra.mxu0 %v11744_v46 }
 0x372   : > { %4030 = vmatpush.msra.mxu0 %v4029_v10  ;;  %3983 = vmatpush.msra.mxu2 %v3908_v57  ;;  %v3909_v49 = vsub.f32 %v3907_v61, %v3908_v57  ;;  %v4058_v21 = vsub.f32 %v4056_v55, %v4057_v26  ;;  %v4207_v40 = vsub.f32 %v4205_v56, %v4206_v59  ;;  %v11848_v61 = vand.u32 4294901760, %v3682_v30 }
 0x373   : > { %v3813_v60 = vpop.f32.mrf.mxu3  ;;  %v11852_v57 = vsub.f32 %v3683_v27, %v11838_v41 }
 0x374   : > { %4132 = vmatpush.msrb.mxu0 %v4057_v26  ;;  %4083 = vmatpush.msrb.mxu2 %v4056_v55  ;;  %v3910_v36 = vand.u32 4294901760, %v3909_v49  ;;  %v4059_v42 = vand.u32 4294901760, %v4058_v21  ;;  %v4208_v22 = vand.u32 4294901760, %v4207_v40  ;;  %v3681_v26 = vld [vmem:[%s13130_s9 + $0x8] sm:$0xff] }
 0x375   : > { %v3765_v33 = vpop.f32.mrf.mxu1  ;;  %v3789_v2 = vpop.f32.mrf.mxu2 }
 0x376   : > { %v3766_v3 = vadd.f32 %v3765_v33, %v3739_v20  ;;  %3911 = vmatpush.msrb.mxu3 %v3910_v36  ;;  %4060 = vmatpush.msra.mxu1 %v4059_v42  ;;  %v3837_v1 = vpop.f32.mrf.mxu0  ;;  %v4394_v20 = vand.u32 4294901760, %v11836_v47  ;;  %v4400_v33 = vand.u32 4294901760, %v11852_v57 }
 0x377   : > { %3913 = vmatmul.f32.vlgmr.msrb.gmra.mxu3 %v11740_v23  ;;  %3985 = vmatmul.f32.vlgmr.msra.gmra.mxu2 %v11740_v23 }
 0x378   : > { %v3790_v24 = vadd.f32 %v3789_v2, %v3766_v3  ;;  %4005 = vmatpush.msra.mxu3 %v3880_v7  ;;  %4154 = vmatpush.msrb.mxu1 %v4029_v10  ;;  %v4395_v42 = vsub.f32 %v11836_v47, %v4394_v20  ;;  %v11863_v2 = vand.u32 4294901760, %v3681_v26  ;;  %v3680_v3 = vld [vmem:[%s13130_s9] sm:$0xff] }
 0x379   : > { %4179 = vmatpush.msra.mxu2 %v4178_v39  ;;  %4062 = vmatmul.f32.vlgmr.msra.gmra.mxu1 %v11740_v23 }
 0x37a   : > { %4106 = vmatpush.msrb.mxu3 %v4029_v10  ;;  %4255 = vmatpush.msra.mxu1 %v4178_v39  ;;  %v3814_v8 = vadd.f32 %v3813_v60, %v3790_v24  ;;  %v4389_v10 = vsub.f32 %v11820_v48, %v4388_v37  ;;  %v11871_v24 = vand.u32 4294901760, %v3680_v3  ;;  %v4411_v40 = vsub.f32 %v3681_v26, %v11863_v2 }
 0x37b   : > { %4036 = vmatmul.f32.vlgmr.msra.gmra.mxu0 %v11752_v44 }
 0x37c   : > { %4232 = vmatpush.msra.mxu0 %v4205_v56  ;;  %v3838_v58 = vadd.f32 %v3837_v1, %v3814_v8  ;;  %v4390_v21 = vand.u32 4294901760, %v4389_v10  ;;  %v4405_v56 = vsub.f32 %v3682_v30, %v11848_v61  ;;  %v4396_v1 = vand.u32 4294901760, %v4395_v42 }
 0x37d   : > { %v3859_v16 = vpop.f32.mrf.mxu1  ;;  %v4401_v8 = vsub.f32 %v11852_v57, %v4400_v33 }
 0x37e   : > { %v11772_v45 = vadd.f32 %v3859_v16, %v3838_v58  ;;  %v4406_v60 = vand.u32 4294901760, %v4405_v56  ;;  %v4417_v16 = vsub.f32 %v3680_v3, %v11871_v24 }
 0x37f   : > { %4007 = vmatmul.f32.vlgmr.msra.gmra.mxu3 %v11740_v23  ;;  %4086 = vmatmul.f32.vlgmr.msrb.gmra.mxu2 %v11744_v46 }
 0x380   : > { %4209 = vmatpush.msra.mxu3 %v4208_v22  ;;  %4281 = vmatpush.msrb.mxu2 %v4206_v59  ;;  %v4407_v58 = vsub.f32 %v4405_v56, %v4406_v60 }
 0x381   : > { %4156 = vmatmul.f32.vlgmr.msrb.gmra.mxu1 %v11740_v23  ;;  %5050 = vrot.lane.b32.xlu2 %v11772_v45, %s10910_s26 }
 0x383   : > { %4134 = vmatmul.f32.vlgmr.msrb.gmra.mxu0 %v11740_v23 }
 0x384   : > { %4342 = vmatpush.msrb.mxu0 %v11788_v12 }
 0x387   : > { %4110 = vmatmul.f32.vlgmr.msrb.gmra.mxu3 %v11747_v62  ;;  %4185 = vmatmul.f32.vlgmr.msra.gmra.mxu2 %v11752_v44 }
 0x388   : > { %4303 = vmatpush.msrb.mxu3 %v4178_v39 }
 0x389   : > { %4259 = vmatmul.f32.vlgmr.msra.gmra.mxu1 %v11747_v62  ;;  %v3686_v62 = vld [vmem:[%s13130_s9 + $0x30] sm:$0xff] }
 0x38a   : > { %v11796_v25 = vand.u32 4294901760, %v3686_v62 }
 0x38b   : > { %4235 = vmatmul.f32.vlgmr.msra.gmra.mxu0 %v11744_v46  ;;  %v11794_v46 = vsub.f32 %v3687_v54, %v11788_v12 }
 0x38c   : > { %v11805_v28 = vsub.f32 %v3686_v62, %v11796_v25  ;;  %4344 = vmatpush.msrb.mxu0 %v11796_v25  ;;  %v4418_v62 = vand.u32 4294901760, %v4417_v16 }
 0x38d   : > { %v4376_v13 = vand.u32 4294901760, %v11794_v46  ;;  %4437 = vmatpush.msra.mxu2 %v11794_v46 }
 0x38e   : > { %v4382_v31 = vand.u32 4294901760, %v11805_v28  ;;  %4346 = vmatpush.msrb.mxu0 %v11807_v17  ;;  %v4419_v9 = vsub.f32 %v4417_v16, %v4418_v62 }
 0x38f   : > { %4211 = vmatmul.f32.vlgmr.msra.gmra.mxu3 %v11740_v23  ;;  %4283 = vmatmul.f32.vlgmr.msrb.gmra.mxu2 %v11740_v23  ;;  %v4377_v35 = vsub.f32 %v11794_v46, %v4376_v13 }
 0x390   : > { %4474 = vmatpush.msra.mxu3 %v11788_v12  ;;  %4440 = vmatpush.msra.mxu2 %v11805_v28  ;;  %v4383_v34 = vsub.f32 %v11805_v28, %v4382_v31 }
 0x391   : > { %v4378_v63 = vand.u32 4294901760, %v4377_v35  ;;  %4348 = vmatpush.msrb.mxu0 %v11824_v11 }
 0x392   : > { %4476 = vmatpush.msra.mxu3 %v11796_v25  ;;  %4443 = vmatpush.msra.mxu2 %v11820_v48  ;;  %v4384_v7 = vand.u32 4294901760, %v4383_v34 }
 0x393   : > { %4379 = vmatpush.msrb.mxu1 %v4378_v63  ;;  %4350 = vmatpush.msrb.mxu0 %v11838_v41 }
 0x394   : > { %4478 = vmatpush.msra.mxu3 %v11807_v17  ;;  %4446 = vmatpush.msra.mxu2 %v11836_v47 }
 0x395   : > { %4385 = vmatpush.msrb.mxu1 %v4384_v7  ;;  %4352 = vmatpush.msrb.mxu0 %v11848_v61 }
 0x396   : > { %4480 = vmatpush.msra.mxu3 %v11824_v11  ;;  %4449 = vmatpush.msra.mxu2 %v11852_v57 }
 0x397   : > { %4305 = vmatmul.f32.vlgmr.msrb.gmra.mxu3 %v11740_v23  ;;  %4391 = vmatpush.msrb.mxu1 %v4390_v21 }
 0x398   : > { %4482 = vmatpush.msra.mxu3 %v11838_v41  ;;  %4452 = vmatpush.msra.mxu2 %v4405_v56 }
 0x399   : > { %4354 = vmatpush.msrb.mxu0 %v11863_v2  ;;  %4397 = vmatpush.msrb.mxu1 %v4396_v1 }
 0x39a   : > { %4484 = vmatpush.msra.mxu3 %v11848_v61  ;;  %4455 = vmatpush.msra.mxu2 %v4411_v40 }
 0x39b   : > { %4356 = vmatpush.msrb.mxu0 %v11871_v24 }
 0x39c   : > { %4486 = vmatpush.msra.mxu3 %v11863_v2  ;;  %4458 = vmatpush.msra.mxu2 %v4417_v16  ;;  %v3689_v16 = vld [vmem:[%s13131_s10 + $0x8] sm:$0xff] }
 0x39d   : > { %4507 = vmatpush.msra.mxu0 %v4376_v13 }
 0x39e   : > { %4488 = vmatpush.msra.mxu3 %v11871_v24 }
 0x39f   : > { %4511 = vmatpush.msra.mxu0 %v4382_v31 }
 0x3a1   : > { %4515 = vmatpush.msra.mxu0 %v4388_v37 }
 0x3a3   : > { %4519 = vmatpush.msra.mxu0 %v4394_v20 }
 0x3a5   : > { %4523 = vmatpush.msra.mxu0 %v4400_v33 }
 0x3a7   : > { %4527 = vmatpush.msra.mxu0 %v4406_v60 }
 0x3ec   : > { %v3962_v44 = vpop.f32.mrf.mxu1 }
 0x3ee   : > { %v3938_v18 = vpop.f32.mrf.mxu0 }
 0x3f2   : > { %v3888_v43 = vpop.f32.mrf.mxu2 }
 0x3f6   : > { %v4063_v39 = vpop.f32.mrf.mxu1 }
 0x3f8   : > { %v4037_v51 = vpop.f32.mrf.mxu0 }
 0x3f9   : > { %v4064_v59 = vadd.f32 %v4063_v39, %v4037_v51  ;;  %v4420_v51 = vand.u32 4294901760, %v4419_v9 }
 0x3fa   : > { %v3914_v23 = vpop.f32.mrf.mxu3  ;;  %v3986_v15 = vpop.f32.mrf.mxu2 }
 0x3fb   : > { %v3915_v14 = vadd.f32 %v3914_v23, %v3888_v43  ;;  %v4402_v43 = vand.u32 4294901760, %v4401_v8  ;;  %v3690_v8 = vld [vmem:[%s13131_s10 + $0x10] sm:$0xff] }
 0x3fd   : > { %v3939_v19 = vadd.f32 %v3938_v18, %v3915_v14  ;;  %v4412_v18 = vand.u32 4294901760, %v4411_v40  ;;  %4403 = vmatpush.msrb.mxu1 %v4402_v43 }
 0x3ff   : > { %v3963_v6 = vadd.f32 %v3962_v44, %v3939_v19  ;;  %v4408_v44 = vand.u32 4294901760, %v4407_v58  ;;  %v4413_v5 = vsub.f32 %v4411_v40, %v4412_v18  ;;  %4531 = vmatpush.msra.mxu0 %v4412_v18  ;;  %v4588_v58 = vand.u32 4294901760, %v3690_v8 }
 0x400   : > { %v4135_v22 = vpop.f32.mrf.mxu0  ;;  %v4590_v18 = vand.u32 4294901760, %v3689_v16 }
 0x401   : > { %v3987_v53 = vadd.f32 %v3986_v15, %v3963_v6  ;;  %v4157_v15 = vpop.f32.mrf.mxu1  ;;  %4409 = vmatpush.msrb.mxu1 %v4408_v44  ;;  %v4414_v35 = vand.u32 4294901760, %v4413_v5  ;;  %4535 = vmatpush.msra.mxu0 %v4418_v62  ;;  %v4622_v43 = vsub.f32 %v3690_v8, %v4588_v58 }
 0x402   : > { %v4008_v55 = vpop.f32.mrf.mxu3  ;;  %v4087_v36 = vpop.f32.mrf.mxu2 }
 0x403   : > { %v4009_v49 = vadd.f32 %v4008_v55, %v3987_v53  ;;  %v4088_v54 = vadd.f32 %v4087_v36, %v4064_v59  ;;  %4415 = vmatpush.msrb.mxu1 %v4414_v35  ;;  %v4623_v62 = vand.u32 4294901760, %v4622_v43 }
 0x405   : > { %5052 = vrot.lane.b32.xlu2 %v4009_v49, %s10910_s26  ;;  %4421 = vmatpush.msrb.mxu1 %v4420_v51  ;;  %v4310_v28 = vadd.f32 %v4009_v49, %v11662_v29 }
 0x407   : > { %4550 = vmatpush.msra.mxu1 %v11788_v12  ;;  %v4309_v12 = vadd.f32 %v11772_v45, %v11660_v38 }
 0x408   : > { %v4236_v13 = vpop.f32.mrf.mxu0 }
 0x409   : > { %4552 = vmatpush.msra.mxu1 %v11796_v25  ;;  %v4260_v34 = vpop.f32.mrf.mxu1  ;;  %v4315_v25 = vsel %vm4313_vm6, %v4310_v28, 0.0  ;;  %v4314_v53 = vsel %vm4313_vm6, %v4309_v12, 0.0 }
 0x40a   : > { %v4111_v23 = vpop.f32.mrf.mxu3  ;;  %v4186_v19 = vpop.f32.mrf.mxu2  ;;  %v4316_v10 = vadd.f32 %v4315_v25, %v4314_v53 }
 0x40b   : > { %v4112_v14 = vadd.f32 %v4111_v23, %v4088_v54  ;;  %4554 = vmatpush.msra.mxu1 %v11807_v17  ;;  %v3688_v54 = vld [vmem:[%s13131_s10] sm:$0xff]  ;;  %v4628_v23 = vsub.f32 %v3689_v16, %v4590_v18 }
 0x40d   : > { %v4136_v27 = vadd.f32 %v4135_v22, %v4112_v14  ;;  %4556 = vmatpush.msra.mxu1 %v11824_v11  ;;  %v4624_v14 = vsub.f32 %v4622_v43, %v4623_v62  ;;  %v4629_v9 = vand.u32 4294901760, %v4628_v23 }
 0x40f   : > { %v11888_v6 = vadd.f32 %v4157_v15, %v4136_v27  ;;  %4558 = vmatpush.msra.mxu1 %v11838_v41  ;;  %v4592_v15 = vand.u32 4294901760, %v3688_v54  ;;  %v4625_v35 = vand.u32 4294901760, %v4624_v14  ;;  %v4630_v51 = vsub.f32 %v4628_v23, %v4629_v9 }
 0x411   : > { %v4311_v37 = vadd.f32 %v11888_v6, %v11712_v52  ;;  %4560 = vmatpush.msra.mxu1 %v11848_v61 }
 0x412   : > { %v4212_v46 = vpop.f32.mrf.mxu3  ;;  %v4284_v48 = vpop.f32.mrf.mxu2 }
 0x413   : > { %v4213_v63 = vadd.f32 %v4212_v46, %v4186_v19  ;;  %v4317_v7 = vsel %vm4313_vm6, %v4311_v37, 0.0  ;;  %4562 = vmatpush.msra.mxu1 %v11863_v2  ;;  %v4634_v19 = vsub.f32 %v3688_v54, %v4592_v15  ;;  %v4631_v46 = vand.u32 4294901760, %v4630_v51 }
 0x414   : > { %v4318_v55 = vadd.f32 %v4317_v7, %v4316_v10 }
 0x415   : > { %v4237_v31 = vadd.f32 %v4236_v13, %v4213_v63  ;;  %4564 = vmatpush.msra.mxu1 %v11871_v24  ;;  %v3691_v24 = vld [vmem:[%s13131_s10 + $0x18] sm:$0xff]  ;;  %v4635_v27 = vand.u32 4294901760, %v4634_v19 }
 0x416   : > { %v4586_v1 = vand.u32 4294901760, %v3691_v24 }
 0x417   : > { %v4261_v47 = vadd.f32 %v4260_v34, %v4237_v31  ;;  %v4636_v13 = vsub.f32 %v4634_v19, %v4635_v27 }
 0x418   : > { %v4616_v40 = vsub.f32 %v3691_v24, %v4586_v1  ;;  %4587 = vmatpush.msrb.mxu2 %v4586_v1  ;;  %v3695_v24 = vld [vmem:[%s13132_s11 + $0x18] sm:$0xff] }
 0x419   : > { %v4285_v30 = vadd.f32 %v4284_v48, %v4261_v47  ;;  %v4637_v63 = vand.u32 4294901760, %v4636_v13  ;;  %v4778_v16 = vand.u32 4294901760, %v3695_v24 }
 0x41a   : > { %v4306_v17 = vpop.f32.mrf.mxu3  ;;  %v4617_v22 = vand.u32 4294901760, %v4616_v40  ;;  %4589 = vmatpush.msrb.mxu2 %v4588_v58 }
 0x41b   : > { %v11902_v45 = vadd.f32 %v4306_v17, %v4285_v30 }
 0x41c   : > { %v4618_v44 = vsub.f32 %v4616_v40, %v4617_v22  ;;  %4591 = vmatpush.msrb.mxu2 %v4590_v18 }
 0x41d   : > { %v4312_v11 = vadd.f32 %v11902_v45, %v11714_v50 }
 0x41e   : > { %v4619_v5 = vand.u32 4294901760, %v4618_v44  ;;  %4593 = vmatpush.msrb.mxu2 %v4592_v15 }
 0x41f   : > { %v4319_v39 = vsel %vm4313_vm6, %v4312_v11, 0.0 }
 0x420   : > { %v4320_v41 = vadd.f32 %v4319_v39, %v4318_v55  ;;  %4620 = vmatpush.msrb.mxu3 %v4619_v5 }
 0x422   : > { %v4321_v20 = vsel %vm4313_vm6, %v4320_v41, 0.0  ;;  %4626 = vmatpush.msrb.mxu3 %v4625_v35  ;;  %v3692_v35 = vld [vmem:[%s13132_s11] sm:$0xff] }
 0x423   : > { %v4322_v57 = vrot.slane %v4321_v20, 4  ;;  %v4784_v13 = vand.u32 4294901760, %v3692_v35 }
 0x424   : > { %4632 = vmatpush.msrb.mxu3 %v4631_v46 }
 0x425   : > { %v4323_v26 = vadd.f32 %v4322_v57, %v4321_v20  ;;  %v3699_v20 = vld [vmem:[%s13132_s11 + $0x38] sm:$0xff] }
 0x426   : > { %4638 = vmatpush.msrb.mxu3 %v4637_v63  ;;  %v11928_v57 = vand.u32 4294901760, %v3699_v20 }
 0x427   : > { %v4324_v49 = vrot.slane %v4323_v26, 2 }
 0x429   : > { %v4325_v21 = vadd.f32 %v4324_v49, %v4323_v26  ;;  %v3698_v26 = vld [vmem:[%s13132_s11 + $0x30] sm:$0xff]  ;;  %v11934_v49 = vsub.f32 %v3699_v20, %v11928_v57 }
 0x42b   : > { %v4326_v56 = vrot.slane %v4325_v21, 1 }
 0x42d   : > { %v4327_v61 = vadd.f32 %v4326_v56, %v4325_v21  ;;  %v11936_v21 = vand.u32 4294901760, %v3698_v26  ;;  %v3697_v56 = vld [vmem:[%s13132_s11 + $0x28] sm:$0xff] }
 0x42f   : > { %v4328_v36 = vmul.f32 0.0625, %v4327_v61  ;;  %v4805_v61 = vand.u32 4294901760, %v11934_v49 }
 0x431   : > { %v4331_v42 = vsel %vm4329_vm7, %v4328_v36, 0  ;;  %v11945_v36 = vsub.f32 %v3698_v26, %v11936_v21 }
 0x432   : > { %v4357_v33 = vand.u32 4294901760, %v4331_v42 }
 0x434   : > { %4423 = vmatmul.f32.vlgmr.msrb.gmra.mxu1 %v4357_v33  ;;  %v4358_v2 = vsub.f32 %v4331_v42, %v4357_v33  ;;  %v11947_v42 = vand.u32 4294901760, %v3697_v56 }
 0x435   : > { %4747 = vmatpush.msrb.mxu1 %v4586_v1 }
 0x436   : > { %4461 = vmatmul.f32.vlgmr.msra.gmra.mxu2 %v4358_v2  ;;  %v4359_v3 = vand.u32 4294901760, %v4358_v2 }
 0x437   : > { %4749 = vmatpush.msrb.mxu1 %v4588_v58  ;;  %4658 = vmatpush.msra.mxu2 %v4616_v40 }
 0x438   : > { %4492 = vmatmul.f32.vlgmr.msra.gmra.mxu3 %v4359_v3  ;;  %v4360_v59 = vsub.f32 %v4358_v2, %v4359_v3  ;;  %v4806_v2 = vsub.f32 %v11934_v49, %v4805_v61  ;;  %v4811_v3 = vand.u32 4294901760, %v11945_v36 }
 0x439   : > { %4751 = vmatpush.msrb.mxu1 %v4590_v18  ;;  %4661 = vmatpush.msra.mxu2 %v4622_v43 }
 0x43a   : > { %v4361_v60 = vand.u32 4294901760, %v4360_v59  ;;  %4687 = vmatpush.msra.mxu3 %v4586_v1  ;;  %v11958_v59 = vsub.f32 %v3697_v56, %v11947_v42  ;;  %v4807_v1 = vand.u32 4294901760, %v4806_v2  ;;  %v4812_v8 = vsub.f32 %v11945_v36, %v4811_v3 }
 0x43b   : > { %4753 = vmatpush.msrb.mxu1 %v4592_v15  ;;  %4664 = vmatpush.msra.mxu2 %v4628_v23  ;;  %v3693_v23 = vld [vmem:[%s13132_s11 + $0x8] sm:$0xff] }
 0x43c   : > { %4362 = vmatmul.f32.vlgmr.msrb.gmra.mxu0 %v4361_v60  ;;  %4566 = vmatmul.f32.vlgmr.msra.gmra.mxu1 %v4357_v33  ;;  %v4817_v40 = vand.u32 4294901760, %v11958_v59  ;;  %v4813_v43 = vand.u32 4294901760, %v4812_v8 }
 0x43d   : > { %4716 = vmatpush.msrb.mxu0 %v4617_v22  ;;  %4667 = vmatpush.msra.mxu2 %v4634_v19  ;;  %v3694_v22 = vld [vmem:[%s13132_s11 + $0x10] sm:$0xff] }
 0x43e   : > { %4689 = vmatpush.msra.mxu3 %v4588_v58  ;;  %4903 = vmatpush.msra.mxu1 %v11928_v57  ;;  %v4780_v44 = vand.u32 4294901760, %v3694_v22 }
 0x43f   : > { %4720 = vmatpush.msrb.mxu0 %v4623_v62  ;;  %v4828_v62 = vsub.f32 %v3695_v24, %v4778_v16 }
 0x440   : > { %4691 = vmatpush.msra.mxu3 %v4590_v18  ;;  %4905 = vmatpush.msra.mxu1 %v11936_v21  ;;  %v4818_v18 = vsub.f32 %v11958_v59, %v4817_v40  ;;  %v4834_v14 = vsub.f32 %v3694_v22, %v4780_v44 }
 0x441   : > { %4724 = vmatpush.msrb.mxu0 %v4629_v9  ;;  %v4782_v9 = vand.u32 4294901760, %v3693_v23  ;;  %v4829_v19 = vand.u32 4294901760, %v4828_v62 }
 0x442   : > { %4693 = vmatpush.msra.mxu3 %v4592_v15  ;;  %4907 = vmatpush.msra.mxu1 %v11947_v42  ;;  %v4819_v15 = vand.u32 4294901760, %v4818_v18 }
 0x443   : > { %4728 = vmatpush.msrb.mxu0 %v4635_v27  ;;  %v4835_v27 = vand.u32 4294901760, %v4834_v14  ;;  %v4840_v46 = vsub.f32 %v3693_v23, %v4782_v9  ;;  %v4830_v63 = vsub.f32 %v4828_v62, %v4829_v19 }
 0x444   : > { %4537 = vmatmul.f32.vlgmr.msra.gmra.mxu0 %v4357_v33  ;;  %v3696_v33 = vld [vmem:[%s13132_s11 + $0x20] sm:$0xff] }
 0x445   : > { %4866 = vmatpush.msra.mxu0 %v11934_v49  ;;  %v11960_v60 = vand.u32 4294901760, %v3696_v33 }
 0x447   : > { %4869 = vmatpush.msra.mxu0 %v11945_v36  ;;  %v4822_v58 = vsub.f32 %v3696_v33, %v11960_v60  ;;  %4909 = vmatpush.msra.mxu1 %v11960_v60 }
 0x449   : > { %4872 = vmatpush.msra.mxu0 %v11958_v59  ;;  %v4823_v54 = vand.u32 4294901760, %v4822_v58  ;;  %4911 = vmatpush.msra.mxu1 %v4778_v16 }
 0x44b   : > { %4875 = vmatpush.msra.mxu0 %v4822_v58  ;;  %v4824_v5 = vsub.f32 %v4822_v58, %v4823_v54  ;;  %4913 = vmatpush.msra.mxu1 %v4780_v44 }
 0x44d   : > { %4878 = vmatpush.msra.mxu0 %v4828_v62  ;;  %v4825_v51 = vand.u32 4294901760, %v4824_v5  ;;  %4915 = vmatpush.msra.mxu1 %v4782_v9 }
 0x44f   : > { %4881 = vmatpush.msra.mxu0 %v4834_v14  ;;  %4917 = vmatpush.msra.mxu1 %v4784_v13 }
 0x451   : > { %4884 = vmatpush.msra.mxu0 %v4840_v46 }
 0x4b1   : > { %v4424_v34 = vpop.f32.mrf.mxu1 }
 0x4b9   : > { %v4363_v28 = vpop.f32.mrf.mxu0  ;;  %v4462_v48 = vpop.f32.mrf.mxu2 }
 0x4ba   : > { %v4425_v31 = vadd.f32 %v4424_v34, %v4363_v28  ;;  %v4567_v17 = vpop.f32.mrf.mxu1  ;;  %v4836_v34 = vsub.f32 %v4834_v14, %v4835_v27  ;;  %v4841_v28 = vand.u32 4294901760, %v4840_v46 }
 0x4bb   : > { %v4493_v37 = vpop.f32.mrf.mxu3 }
 0x4bc   : > { %v4463_v12 = vadd.f32 %v4462_v48, %v4425_v31  ;;  %v4846_v31 = vsub.f32 %v3692_v35, %v4784_v13  ;;  %v4831_v48 = vand.u32 4294901760, %v4830_v63 }
 0x4be   : > { %v4494_v47 = vadd.f32 %v4493_v37, %v4463_v12  ;;  %v4837_v12 = vand.u32 4294901760, %v4836_v34  ;;  %v4842_v37 = vsub.f32 %v4840_v46, %v4841_v28  ;;  %4887 = vmatpush.msra.mxu0 %v4846_v31 }
 0x4c1   : > { %v4538_v25 = vpop.f32.mrf.mxu0 }
 0x4c2   : > { %v4539_v30 = vadd.f32 %v4538_v25, %v4494_v47  ;;  %v4847_v47 = vand.u32 4294901760, %v4846_v31  ;;  %v4843_v25 = vand.u32 4294901760, %v4842_v37 }
 0x4c4   : > { %v4568_v53 = vadd.f32 %v4567_v17, %v4539_v30  ;;  %v4848_v30 = vsub.f32 %v4846_v31, %v4847_v47 }
 0x4c6   : > { %v4572_v7 = vsel %vm4570_vm8, %v4568_v53, 0  ;;  %v4849_v17 = vand.u32 4294901760, %v4848_v30 }
 0x4c7   : > { %v4594_v10 = vand.u32 4294901760, %v4572_v7 }
 0x4c9   : > { %v4595_v11 = vsub.f32 %v4572_v7, %v4594_v10  ;;  %4640 = vmatmul.f32.vlgmr.msrb.gmra.mxu3 %v4594_v10  ;;  %4730 = vmatmul.f32.vlgmr.msrb.gmra.mxu0 %v4594_v10 }
 0x4ca   : > { %4755 = vmatmul.f32.vlgmr.msrb.gmra.mxu1 %v4594_v10  ;;  %4808 = vmatpush.msrb.mxu3 %v4807_v1 }
 0x4cb   : > { %v4596_v55 = vand.u32 4294901760, %v4595_v11 }
 0x4cc   : > { %4814 = vmatpush.msrb.mxu3 %v4813_v43 }
 0x4cd   : > { %v4597_v39 = vsub.f32 %v4595_v11, %v4596_v55 }
 0x4ce   : > { %4820 = vmatpush.msrb.mxu3 %v4819_v15 }
 0x4cf   : > { %v4598_v41 = vand.u32 4294901760, %v4597_v39 }
 0x4d0   : > { %4826 = vmatpush.msrb.mxu3 %v4825_v51 }
 0x4d1   : > { %4599 = vmatmul.f32.vlgmr.msrb.gmra.mxu2 %v4598_v41  ;;  %4697 = vmatmul.f32.vlgmr.msra.gmra.mxu3 %v4596_v55 }
 0x4d2   : > { %4771 = vmatpush.msrb.mxu2 %v11928_v57  ;;  %4832 = vmatpush.msrb.mxu3 %v4831_v48  ;;  %v5051_v48 = vpop.permute.xlu2 %5050 }
 0x4d4   : > { %4773 = vmatpush.msrb.mxu2 %v11936_v21  ;;  %4838 = vmatpush.msrb.mxu3 %v4837_v12 }
 0x4d6   : > { %4775 = vmatpush.msrb.mxu2 %v11947_v42  ;;  %4844 = vmatpush.msrb.mxu3 %v4843_v25 }
 0x4d8   : > { %4777 = vmatpush.msrb.mxu2 %v11960_v60  ;;  %4850 = vmatpush.msrb.mxu3 %v4849_v17 }
 0x4d9   : > { %4670 = vmatmul.f32.vlgmr.msra.gmra.mxu2 %v4595_v11 }
 0x4da   : > { %4779 = vmatpush.msrb.mxu2 %v4778_v16  ;;  %4979 = vmatpush.msra.mxu3 %v11928_v57  ;;  %v5053_v30 = vpop.permute.xlu2 %5052 }
 0x4dc   : > { %4781 = vmatpush.msrb.mxu2 %v4780_v44  ;;  %4981 = vmatpush.msra.mxu3 %v11936_v21 }
 0x4de   : > { %4783 = vmatpush.msrb.mxu2 %v4782_v9  ;;  %4983 = vmatpush.msra.mxu3 %v11947_v42 }
 0x4e0   : > { %4785 = vmatpush.msrb.mxu2 %v4784_v13  ;;  %4985 = vmatpush.msra.mxu3 %v11960_v60 }
 0x4e2   : > { %4936 = vmatpush.msra.mxu2 %v4805_v61  ;;  %4987 = vmatpush.msra.mxu3 %v4778_v16 }
 0x4e4   : > { %4940 = vmatpush.msra.mxu2 %v4811_v3  ;;  %4989 = vmatpush.msra.mxu3 %v4780_v44 }
 0x4e6   : > { %4944 = vmatpush.msra.mxu2 %v4817_v40  ;;  %4991 = vmatpush.msra.mxu3 %v4782_v9 }
 0x4e8   : > { %4948 = vmatpush.msra.mxu2 %v4823_v54  ;;  %4993 = vmatpush.msra.mxu3 %v4784_v13 }
 0x4ea   : > { %4952 = vmatpush.msra.mxu2 %v4829_v19 }
 0x4ec   : > { %4956 = vmatpush.msra.mxu2 %v4835_v27 }
 0x4ee   : > { %4960 = vmatpush.msra.mxu2 %v4841_v28 }
 0x4f0   : > { %4964 = vmatpush.msra.mxu2 %v4847_v47 }
 0x546   : > { %v4731_v20 = vpop.f32.mrf.mxu0 }
 0x547   : > { %v4756_v26 = vpop.f32.mrf.mxu1 }
 0x54c   : > { %v4641_v53 = vpop.f32.mrf.mxu3 }
 0x554   : > { %v4600_v7 = vpop.f32.mrf.mxu2  ;;  %v4698_v39 = vpop.f32.mrf.mxu3 }
 0x555   : > { %v4642_v10 = vadd.f32 %v4641_v53, %v4600_v7 }
 0x55c   : > { %v4671_v11 = vpop.f32.mrf.mxu2 }
 0x55d   : > { %v4672_v55 = vadd.f32 %v4671_v11, %v4642_v10 }
 0x55f   : > { %v4699_v41 = vadd.f32 %v4698_v39, %v4672_v55  ;;  %v5086_v55 = vld [vmem:[%s13126_s5] sm:$0xf] }
 0x560   : > { %v5127_v39 = vsel %vm3242_vm2, %v5086_v55, 0 }
 0x561   : > { %v4732_v57 = vadd.f32 %v4731_v20, %v4699_v41  ;;  %v12005_v41 = vand.u32 4294901760, %v5127_v39 }
 0x563   : > { %v4757_v49 = vadd.f32 %v4756_v26, %v4732_v57  ;;  %v12010_v57 = vsub.f32 %v5127_v39, %v12005_v41 }
 0x565   : > { %v4760_v21 = vsel %vm4329_vm7, %v4757_v49, 0 }
 0x566   : > { %v4786_v56 = vand.u32 4294901760, %v4760_v21 }
 0x568   : > { %v4787_v61 = vsub.f32 %v4760_v21, %v4786_v56  ;;  %4852 = vmatmul.f32.vlgmr.msrb.gmra.mxu3 %v4786_v56  ;;  %v12015_v21 = vand.u32 4294901760, %v12010_v57 }
 0x56a   : > { %4890 = vmatmul.f32.vlgmr.msra.gmra.mxu0 %v4787_v61  ;;  %v4788_v36 = vand.u32 4294901760, %v4787_v61 }
 0x56c   : > { %4921 = vmatmul.f32.vlgmr.msra.gmra.mxu1 %v4788_v36  ;;  %v4789_v42 = vsub.f32 %v4787_v61, %v4788_v36 }
 0x56e   : > { %v4790_v33 = vand.u32 4294901760, %v4789_v42 }
 0x570   : > { %4791 = vmatmul.f32.vlgmr.msrb.gmra.mxu2 %v4790_v33  ;;  %4995 = vmatmul.f32.vlgmr.msra.gmra.mxu3 %v4786_v56  ;;  %v5152_v33 = vsub.f32 %v12010_v57, %v12015_v21 }
 0x578   : > { %4966 = vmatmul.f32.vlgmr.msra.gmra.mxu2 %v4786_v56 }
 0x5e7   : > { %v4891_v60 = vpop.f32.mrf.mxu0 }
 0x5e9   : > { %v4922_v1 = vpop.f32.mrf.mxu1 }
 0x5eb   : > { %v4853_v2 = vpop.f32.mrf.mxu3 }
 0x5f3   : > { %v4792_v3 = vpop.f32.mrf.mxu2  ;;  %v4996_v16 = vpop.f32.mrf.mxu3 }
 0x5f4   : > { %v4854_v59 = vadd.f32 %v4853_v2, %v4792_v3 }
 0x5f6   : > { %v4892_v24 = vadd.f32 %v4891_v60, %v4854_v59 }
 0x5f8   : > { %v4923_v8 = vadd.f32 %v4922_v1, %v4892_v24 }
 0x5fb   : > { %v4967_v40 = vpop.f32.mrf.mxu2 }
 0x5fc   : > { %v4968_v58 = vadd.f32 %v4967_v40, %v4923_v8 }
 0x5fe   : > { %v4997_v22 = vadd.f32 %v4996_v16, %v4968_v58  ;;  %v12026_v16 = vand.u32 4294901760, %v5152_v33 }
 0x600   : > { %5000 = vrot.lane.b32.xlu0 %v4997_v22, %s10910_s26 }
 0x672   : > { %v5001_v43 = vpop.permute.xlu0 %5000 }
 0x673   : > { %v5003_v18 = vmax.f32 %v4997_v22, %v5001_v43 }
 0x675   : > { %5008 = vrot.lane.b32.xlu0 %v5003_v18, %s10910_s26  ;;  %v5004_v15 = vsub.f32 %v4997_v22, %v5003_v18 }
 0x677   : > { %v5005_v5 = vmul.f32 1.442695, %v5004_v15 }
 0x67d   : > { %5054 = vrot.lane.b32.xlu0 %v11888_v6, %s10910_s26 }
 0x685   : > { %5056 = vrot.lane.b32.xlu0 %v11902_v45, %s10910_s26 }
 0x6e7   : > { %v5009_v54 = vpop.permute.xlu0 %5008 }
 0x6e8   : > { %v5011_v44 = vsub.f32 %v4997_v22, %v5009_v54 }
 0x6ea   : > { %v5012_v62 = vmul.f32 1.442695, %v5011_v44 }
 0x6ec   : > { %10830 = vpow2.f32 %v5012_v62 }
 0x6ed   : > { %10832 = vpow2.f32 %v5005_v5 }
 0x6ef   : > { %v5055_v47 = vpop.permute.xlu0 %5054 }
 0x6f2   : > { %v10831_v23 = vpop.eup %10830 }
 0x6f3   : > { %5015 = vrot.lane.b32.xlu1 %v10831_v23, %s10910_s26  ;;  %v10833_v14 = vpop.eup %10832 }
 0x6f7   : > { %v5057_v7 = vpop.permute.xlu0 %5056 }
 0x765   : > { %v5016_v9 = vpop.permute.xlu1 %5015 }
 0x766   : > { %v5018_v19 = vadd.f32 %v10833_v14, %v5016_v9 }
 0x768   : > { %10834 = vrcp.f32 %v5018_v19  ;;  %v5030_v27 = vand.u32 2147483648, %v5018_v19  ;;  %v5028_v45 = vand.u32 2147483647, %v5018_v19  ;;  %vm5024_vm10 = vweird.f32 %v5018_v19 }
 0x76a   : > { %v5031_v63 = vor.u32 1.1754944e-38, %v5030_v27  ;;  %vm5029_vm12 = vcmp.eq.f32.partialorder %v5028_v45, 8.507059e+37 }
 0x76e   : > { %v10835_v35 = vpop.eup %10834 }
 0x76f   : > { %v5020_v51 = vmul.f32 %v10835_v35, %v5018_v19  ;;  %vm5025_vm9 = vweird.f32 %v10835_v35 }
 0x770   : > { %vm5026_vm11 = vmor %vm5024_vm10, %vm5025_vm9 }
 0x771   : > { %v5021_v6 = vsub.f32 1.0, %v5020_v51 }
 0x773   : > { %v5022_v46 = vmul.f32 %v10835_v35, %v5021_v6 }
 0x775   : > { %v5023_v13 = vadd.f32 %v10835_v35, %v5022_v46 }
 0x777   : > { %v5027_v34 = vsel %vm5026_vm11, %v10835_v35, %v5023_v13 }
 0x778   : > { %v5032_v28 = vsel %vm5029_vm12, %v5031_v63, %v5027_v34 }
 0x779   : > { %5036 = vrot.lane.b32.xlu1 %v5032_v28, %s10910_s26  ;;  %v5034_v31 = vmul.f32 %v10833_v14, %v5032_v28 }
 0x77b   : > { %v12007_v20 = vperm.slane %v5034_v31, 0 }
 0x77d   : > { %v5042_v49 = vmul.f32 %v12007_v20, %v11662_v29  ;;  %v5041_v61 = vmul.f32 %v12007_v20, %v11660_v38  ;;  %v5043_v29 = vmul.f32 %v12007_v20, %v11712_v52 }
 0x7eb   : > { %v5037_v12 = vpop.permute.xlu1 %5036 }
 0x7ec   : > { %v5039_v37 = vmul.f32 %v10831_v23, %v5037_v12 }
 0x7ee   : > { %v5045_v25 = vperm.slane %v5039_v37, 0 }
 0x7f0   : > { %v5063_v17 = vmul.f32 %v5053_v30, %v5045_v25  ;;  %v5062_v53 = vmul.f32 %v5051_v48, %v5045_v25  ;;  %v5065_v10 = vmul.f32 %v5057_v7, %v5045_v25  ;;  %v5064_v11 = vmul.f32 %v5055_v47, %v5045_v25 }
 0x7f1   : > { %v5044_v25 = vmul.f32 %v12007_v20, %v11714_v50 }
 0x7f2   : > { %5072 = vrot.lane.b32.xlu2 %v5063_v17, %s10910_s26  ;;  %5070 = vrot.lane.b32.xlu1 %v5062_v53, %s10910_s26 }
 0x7fa   : > { %5076 = vrot.lane.b32.xlu2 %v5065_v10, %s10910_s26  ;;  %5074 = vrot.lane.b32.xlu1 %v5064_v11, %s10910_s26 }
 0x84c   : > { %v5073_v26 = vpop.permute.xlu2 %5072 }
 0x84d   : > { %v5083_v56 = vadd.f32 %v5073_v26, %v5042_v49 }
 0x84f   : > { %v5111_v2 = vmul.f32 0.25, %v5083_v56  ;;  %v5114_v3 = vmul.f32 0.75, %v5083_v56 }
 0x854   : > { %v5077_v37 = vpop.permute.xlu2 %5076 }
 0x855   : > { %v5085_v17 = vadd.f32 %v5077_v37, %v5044_v25 }
 0x857   : > { %v5116_v50 = vmul.f32 0.75, %v5085_v17  ;;  %v5121_v39 = vmul.f32 0.25, %v5085_v17 }
 0x864   : > { %v5071_v36 = vpop.permute.xlu1 %5070 }
 0x865   : > { %v5082_v42 = vadd.f32 %v5071_v36, %v5041_v61 }
 0x867   : > { %v5110_v59 = vmul.f32 0.25, %v5082_v42  ;;  %v5113_v60 = vmul.f32 0.75, %v5082_v42 }
 0x869   : > { %v5117_v24 = vadd.f32 %v5113_v60, %v5110_v59  ;;  %v5118_v1 = vadd.f32 %v5114_v3, %v5110_v59  ;;  %v5122_v8 = vadd.f32 %v5113_v60, %v5111_v2 }
 0x86b   : > { %v5130_v40 = vsel %vm3252_vm3, %v5117_v24, 0  ;;  %v5279_v58 = vsel %vm3252_vm3, %v5122_v8, 0  ;;  %v5428_v38 = vsel %vm3252_vm3, %v5118_v1, 0  ;;  %v5125_v1 = vadd.f32 %v5121_v39, %v5116_v50 }
 0x86c   : > { %v12028_v22 = vand.u32 4294901760, %v5130_v40  ;;  %v12030_v43 = vand.u32 4294901760, %v5279_v58  ;;  %v12032_v18 = vand.u32 4294901760, %v5428_v38  ;;  %v5075_v54 = vpop.permute.xlu1 %5074 }
 0x86d   : > { %v5084_v44 = vadd.f32 %v5075_v54, %v5043_v29  ;;  %v6173_v29 = vsel %vm3252_vm3, %v5125_v1, 0 }
 0x86e   : > { %v12035_v62 = vsub.f32 %v5428_v38, %v12032_v18  ;;  %5148 = vmatpush.msrb.mxu0 %v12028_v22  ;;  %5272 = vmatpush.msrb.mxu3 %v12028_v22  ;;  %v12040_v52 = vsub.f32 %v5130_v40, %v12028_v22  ;;  %v12043_v23 = vsub.f32 %v5279_v58, %v12030_v43  ;;  %v12193_v40 = vand.u32 4294901760, %v6173_v29  ;;  %v5087_v58 = vld [vmem:[%s13127_s6] sm:$0xf] }
 0x86f   : > { %v12045_v15 = vmul.f32 0.75, %v5084_v44  ;;  %5154 = vmatmul.f32.vlgmr.msrb.gmra.mxu0 %v12026_v16  ;;  %5274 = vmatmul.f32.vlgmr.msrb.gmra.mxu3 %v12005_v41  ;;  %v5112_v6 = vmul.f32 0.25, %v5084_v44  ;;  %v6322_v54 = vsel %vm3242_vm2, %v5087_v58, 0 }
 0x870   : > { %5373 = vmatpush.msra.mxu3 %v12030_v43  ;;  %5201 = vmatpush.msra.mxu0 %v12040_v52  ;;  %v12052_v5 = vand.u32 4294901760, %v12040_v52  ;;  %v12055_v14 = vand.u32 4294901760, %v12035_v62  ;;  %v12060_v19 = vand.u32 4294901760, %v12043_v23  ;;  %v12205_v38 = vsub.f32 %v6173_v29, %v12193_v40 }
 0x871   : > { %v5119_v9 = vadd.f32 %v12045_v15, %v5111_v2  ;;  %v5123_v63 = vadd.f32 %v5114_v3, %v5112_v6  ;;  %v5120_v11 = vadd.f32 %v5116_v50, %v5112_v6  ;;  %v5124_v26 = vadd.f32 %v5121_v39, %v12045_v15 }
 0x872   : > { %5297 = vmatpush.msrb.mxu0 %v12030_v43  ;;  %5250 = vmatpush.msrb.mxu2 %v12052_v5  ;;  %v5176_v35 = vsub.f32 %v12040_v52, %v12052_v5  ;;  %v5474_v51 = vsub.f32 %v12035_v62, %v12055_v14  ;;  %v5325_v13 = vsub.f32 %v12043_v23, %v12060_v19  ;;  %v12210_v44 = vand.u32 4294901760, %v6322_v54 }
 0x873   : > { %5252 = vmatmul.f32.vlgmr.msrb.gmra.mxu2 %v12005_v41  ;;  %v5726_v27 = vsel %vm3252_vm3, %v5119_v9, 0  ;;  %v5577_v31 = vsel %vm3252_vm3, %v5123_v63, 0  ;;  %v6024_v20 = vsel %vm3252_vm3, %v5120_v11, 0  ;;  %v5875_v61 = vsel %vm3252_vm3, %v5124_v26, 0 }
 0x874   : > { %5350 = vmatpush.msra.mxu2 %v12043_v23  ;;  %v12071_v46 = vand.u32 4294901760, %v5176_v35  ;;  %v12073_v45 = vand.u32 4294901760, %v5474_v51  ;;  %v12079_v34 = vand.u32 4294901760, %v5726_v27  ;;  %v12085_v28 = vand.u32 4294901760, %v5325_v13 }
 0x875   : > { %v12096_v12 = vand.u32 4294901760, %v5577_v31  ;;  %v12135_v56 = vand.u32 4294901760, %v6024_v20  ;;  %v12149_v42 = vand.u32 4294901760, %v5875_v61  ;;  %v12213_v15 = vand.u32 4294901760, %v12205_v38 }
 0x876   : > { %5446 = vmatpush.msrb.mxu2 %v12032_v18  ;;  %5178 = vmatpush.msrb.mxu1 %v12071_v46  ;;  %v12093_v48 = vsub.f32 %v5726_v27, %v12079_v34  ;;  %v12222_v9 = vsub.f32 %v6322_v54, %v12210_v44 }
 0x877   : > { %5476 = vmatpush.msrb.mxu3 %v12073_v45  ;;  %5180 = vmatmul.f32.vlgmr.msrb.gmra.mxu1 %v12005_v41  ;;  %v12110_v30 = vsub.f32 %v5577_v31, %v12096_v12  ;;  %v12146_v36 = vsub.f32 %v6024_v20, %v12135_v56  ;;  %v12161_v2 = vsub.f32 %v5875_v61, %v12149_v42 }
 0x878   : > { %5204 = vmatmul.f32.vlgmr.msra.gmra.mxu0 %v12010_v57  ;;  %5224 = vmatpush.msra.mxu1 %v12028_v22  ;;  %v12101_v47 = vand.u32 4294901760, %v12093_v48  ;;  %v6219_v35 = vsub.f32 %v12205_v38, %v12213_v15  ;;  %v12231_v6 = vand.u32 4294901760, %v12222_v9 }
 0x879   : > { %5377 = vmatmul.f32.vlgmr.msra.gmra.mxu3 %v12015_v21  ;;  %5399 = vmatpush.msra.mxu0 %v12060_v19  ;;  %v12117_v7 = vand.u32 4294901760, %v12110_v30  ;;  %v12154_v33 = vand.u32 4294901760, %v12146_v36  ;;  %v12168_v59 = vand.u32 4294901760, %v12161_v2 }
 0x87a   : > { %5570 = vmatpush.msra.mxu3 %v12032_v18  ;;  %5327 = vmatpush.msrb.mxu1 %v12085_v28  ;;  %v5772_v53 = vsub.f32 %v12093_v48, %v12101_v47  ;;  %v12228_v51 = vand.u32 4294901760, %v6219_v35  ;;  %v6344_v27 = vsub.f32 %v12222_v9, %v12231_v6 }
 0x87b   : > { %5353 = vmatmul.f32.vlgmr.msra.gmra.mxu2 %v12010_v57  ;;  %v5623_v55 = vsub.f32 %v12110_v30, %v12117_v7  ;;  %v6070_v3 = vsub.f32 %v12146_v36, %v12154_v33  ;;  %v5921_v24 = vsub.f32 %v12161_v2, %v12168_v59 }
 0x87c   : > { %5548 = vmatpush.msra.mxu2 %v12055_v14  ;;  %v12121_v10 = vand.u32 4294901760, %v5772_v53 }
 0x87d   : > { %v12133_v49 = vand.u32 4294901760, %v5623_v55  ;;  %v12172_v60 = vand.u32 4294901760, %v6070_v3  ;;  %v12182_v8 = vand.u32 4294901760, %v5921_v24 }
 0x87f   : > { %5228 = vmatmul.f32.vlgmr.msra.gmra.mxu1 %v12015_v21 }
 0x880   : > { %5303 = vmatmul.f32.vlgmr.msrb.gmra.mxu0 %v12026_v16  ;;  %5421 = vmatpush.msra.mxu1 %v12030_v43 }
 0x881   : > { %5478 = vmatmul.f32.vlgmr.msrb.gmra.mxu3 %v12005_v41  ;;  %5499 = vmatpush.msrb.mxu0 %v12035_v62 }
 0x882   : > { %5671 = vmatpush.msrb.mxu3 %v12096_v12 }
 0x883   : > { %5452 = vmatmul.f32.vlgmr.msrb.gmra.mxu2 %v12026_v16 }
 0x884   : > { %5648 = vmatpush.msrb.mxu2 %v12110_v30 }
 0x887   : > { %5329 = vmatmul.f32.vlgmr.msrb.gmra.mxu1 %v12005_v41 }
 0x888   : > { %5401 = vmatmul.f32.vlgmr.msra.gmra.mxu0 %v12005_v41  ;;  %5522 = vmatpush.msrb.mxu1 %v12032_v18 }
 0x889   : > { %5572 = vmatmul.f32.vlgmr.msra.gmra.mxu3 %v12005_v41  ;;  %5595 = vmatpush.msra.mxu0 %v12096_v12 }
 0x88a   : > { %5774 = vmatpush.msra.mxu3 %v12121_v10 }
 0x88b   : > { %5550 = vmatmul.f32.vlgmr.msra.gmra.mxu2 %v12005_v41 }
 0x88c   : > { %5744 = vmatpush.msra.mxu2 %v12079_v34 }
 0x88f   : > { %5423 = vmatmul.f32.vlgmr.msra.gmra.mxu1 %v12005_v41 }
 0x890   : > { %5502 = vmatmul.f32.vlgmr.msrb.gmra.mxu0 %v12010_v57  ;;  %5625 = vmatpush.msra.mxu1 %v12133_v49 }
 0x891   : > { %5675 = vmatmul.f32.vlgmr.msrb.gmra.mxu3 %v12015_v21  ;;  %5697 = vmatpush.msrb.mxu0 %v12117_v7 }
 0x892   : > { %5868 = vmatpush.msrb.mxu3 %v12079_v34 }
 0x893   : > { %5651 = vmatmul.f32.vlgmr.msrb.gmra.mxu2 %v12010_v57 }
 0x894   : > { %5846 = vmatpush.msrb.mxu2 %v12101_v47 }
 0x897   : > { %5526 = vmatmul.f32.vlgmr.msrb.gmra.mxu1 %v12015_v21 }
 0x898   : > { %5601 = vmatmul.f32.vlgmr.msra.gmra.mxu0 %v12026_v16  ;;  %5719 = vmatpush.msrb.mxu1 %v12096_v12 }
 0x899   : > { %5776 = vmatmul.f32.vlgmr.msra.gmra.mxu3 %v12005_v41  ;;  %5797 = vmatpush.msra.mxu0 %v12093_v48 }
 0x89a   : > { %5969 = vmatpush.msra.mxu3 %v12149_v42 }
 0x89b   : > { %5750 = vmatmul.f32.vlgmr.msra.gmra.mxu2 %v12026_v16 }
 0x89c   : > { %5946 = vmatpush.msra.mxu2 %v12161_v2 }
 0x89f   : > { %5627 = vmatmul.f32.vlgmr.msra.gmra.mxu1 %v12005_v41 }
 0x8a0   : > { %5699 = vmatmul.f32.vlgmr.msrb.gmra.mxu0 %v12005_v41  ;;  %5820 = vmatpush.msra.mxu1 %v12079_v34 }
 0x8a1   : > { %5870 = vmatmul.f32.vlgmr.msrb.gmra.mxu3 %v12005_v41  ;;  %5893 = vmatpush.msrb.mxu0 %v12149_v42 }
 0x8a2   : > { %6072 = vmatpush.msrb.mxu3 %v12172_v60 }
 0x8a3   : > { %5848 = vmatmul.f32.vlgmr.msrb.gmra.mxu2 %v12005_v41 }
 0x8a4   : > { %6042 = vmatpush.msrb.mxu2 %v12135_v56 }
 0x8a7   : > { %5721 = vmatmul.f32.vlgmr.msrb.gmra.mxu1 %v12005_v41 }
 0x8a8   : > { %5800 = vmatmul.f32.vlgmr.msra.gmra.mxu0 %v12010_v57  ;;  %5923 = vmatpush.msrb.mxu1 %v12182_v8 }
 0x8a9   : > { %5973 = vmatmul.f32.vlgmr.msra.gmra.mxu3 %v12015_v21  ;;  %5995 = vmatpush.msra.mxu0 %v12168_v59 }
 0x8aa   : > { %6166 = vmatpush.msra.mxu3 %v12135_v56 }
 0x8ab   : > { %5949 = vmatmul.f32.vlgmr.msra.gmra.mxu2 %v12010_v57 }
 0x8ac   : > { %6144 = vmatpush.msra.mxu2 %v12154_v33 }
 0x8af   : > { %5824 = vmatmul.f32.vlgmr.msra.gmra.mxu1 %v12015_v21 }
 0x8b0   : > { %5899 = vmatmul.f32.vlgmr.msrb.gmra.mxu0 %v12026_v16  ;;  %6017 = vmatpush.msra.mxu1 %v12149_v42 }
 0x8b1   : > { %6074 = vmatmul.f32.vlgmr.msrb.gmra.mxu3 %v12005_v41  ;;  %6095 = vmatpush.msrb.mxu0 %v12146_v36 }
 0x8b2   : > { %6267 = vmatpush.msrb.mxu3 %v12193_v40 }
 0x8b3   : > { %6048 = vmatmul.f32.vlgmr.msrb.gmra.mxu2 %v12026_v16 }
 0x8b4   : > { %6244 = vmatpush.msrb.mxu2 %v12205_v38 }
 0x8b7   : > { %5925 = vmatmul.f32.vlgmr.msrb.gmra.mxu1 %v12005_v41 }
 0x8b8   : > { %5997 = vmatmul.f32.vlgmr.msra.gmra.mxu0 %v12005_v41  ;;  %6118 = vmatpush.msrb.mxu1 %v12135_v56 }
 0x8b9   : > { %6168 = vmatmul.f32.vlgmr.msra.gmra.mxu3 %v12005_v41  ;;  %6191 = vmatpush.msra.mxu0 %v12193_v40 }
 0x8ba   : > { %6370 = vmatpush.msra.mxu3 %v12071_v46  ;;  %v12243_v46 = vand.u32 4294901760, %v6344_v27 }
 0x8bb   : > { %6146 = vmatmul.f32.vlgmr.msra.gmra.mxu2 %v12005_v41 }
 0x8bc   : > { %6340 = vmatpush.msra.mxu2 %v12028_v22 }
 0x8bf   : > { %6019 = vmatmul.f32.vlgmr.msra.gmra.mxu1 %v12005_v41 }
 0x8c0   : > { %6098 = vmatmul.f32.vlgmr.msrb.gmra.mxu0 %v12010_v57  ;;  %6221 = vmatpush.msra.mxu1 %v12228_v51 }
 0x8c1   : > { %6271 = vmatmul.f32.vlgmr.msrb.gmra.mxu3 %v12015_v21  ;;  %6293 = vmatpush.msrb.mxu0 %v12213_v15 }
 0x8c2   : > { %6464 = vmatpush.msrb.mxu3 %v12028_v22 }
 0x8c3   : > { %6247 = vmatmul.f32.vlgmr.msrb.gmra.mxu2 %v12010_v57 }
 0x8c4   : > { %6442 = vmatpush.msrb.mxu2 %v12052_v5 }
 0x8c7   : > { %6122 = vmatmul.f32.vlgmr.msrb.gmra.mxu1 %v12015_v21 }
 0x8c8   : > { %6197 = vmatmul.f32.vlgmr.msra.gmra.mxu0 %v12026_v16  ;;  %6315 = vmatpush.msrb.mxu1 %v12193_v40 }
 0x8c9   : > { %6372 = vmatmul.f32.vlgmr.msra.gmra.mxu3 %v12210_v44  ;;  %6393 = vmatpush.msra.mxu0 %v12040_v52 }
 0x8ca   : > { %6562 = vmatpush.msra.mxu3 %v12030_v43 }
 0x8cb   : > { %6346 = vmatmul.f32.vlgmr.msra.gmra.mxu2 %v12243_v46 }
 0x8cc   : > { %6539 = vmatpush.msra.mxu2 %v12043_v23 }
 0x8cf   : > { %6223 = vmatmul.f32.vlgmr.msra.gmra.mxu1 %v12005_v41 }
 0x8d0   : > { %6295 = vmatmul.f32.vlgmr.msrb.gmra.mxu0 %v12005_v41  ;;  %6416 = vmatpush.msra.mxu1 %v12028_v22 }
 0x8d1   : > { %6466 = vmatmul.f32.vlgmr.msrb.gmra.mxu3 %v12210_v44  ;;  %6486 = vmatpush.msrb.mxu0 %v12030_v43 }
 0x8d2   : > { %6662 = vmatpush.msrb.mxu3 %v12073_v45 }
 0x8d3   : > { %6444 = vmatmul.f32.vlgmr.msrb.gmra.mxu2 %v12210_v44 }
 0x8d4   : > { %6632 = vmatpush.msrb.mxu2 %v12032_v18 }
 0x8d7   : > { %6317 = vmatmul.f32.vlgmr.msrb.gmra.mxu1 %v12005_v41 }
 0x8d8   : > { %6396 = vmatmul.f32.vlgmr.msra.gmra.mxu0 %v12222_v9  ;;  %6516 = vmatpush.msrb.mxu1 %v12085_v28 }
 0x8d9   : > { %6566 = vmatmul.f32.vlgmr.msra.gmra.mxu3 %v12231_v6  ;;  %6588 = vmatpush.msra.mxu0 %v12060_v19 }
 0x8da   : > { %6756 = vmatpush.msra.mxu3 %v12032_v18 }
 0x8db   : > { %6542 = vmatmul.f32.vlgmr.msra.gmra.mxu2 %v12222_v9 }
 0x8dc   : > { %6734 = vmatpush.msra.mxu2 %v12055_v14 }
 0x8df   : > { %6420 = vmatmul.f32.vlgmr.msra.gmra.mxu1 %v12231_v6 }
 0x8e0   : > { %6492 = vmatmul.f32.vlgmr.msrb.gmra.mxu0 %v12243_v46  ;;  %6610 = vmatpush.msra.mxu1 %v12030_v43 }
 0x8e1   : > { %6664 = vmatmul.f32.vlgmr.msrb.gmra.mxu3 %v12210_v44  ;;  %6685 = vmatpush.msrb.mxu0 %v12035_v62 }
 0x8e2   : > { %6854 = vmatpush.msrb.mxu3 %v12096_v12 }
 0x8e3   : > { %6638 = vmatmul.f32.vlgmr.msrb.gmra.mxu2 %v12243_v46 }
 0x8e4   : > { %6831 = vmatpush.msrb.mxu2 %v12110_v30 }
 0x8e7   : > { %6518 = vmatmul.f32.vlgmr.msrb.gmra.mxu1 %v12210_v44 }
 0x8e8   : > { %6590 = vmatmul.f32.vlgmr.msra.gmra.mxu0 %v12210_v44  ;;  %6708 = vmatpush.msrb.mxu1 %v12032_v18 }
 0x8e9   : > { %6758 = vmatmul.f32.vlgmr.msra.gmra.mxu3 %v12210_v44  ;;  %6778 = vmatpush.msra.mxu0 %v12096_v12 }
 0x8ea   : > { %6954 = vmatpush.msra.mxu3 %v12121_v10 }
 0x8eb   : > { %6736 = vmatmul.f32.vlgmr.msra.gmra.mxu2 %v12210_v44 }
 0x8ec   : > { %6924 = vmatpush.msra.mxu2 %v12079_v34  ;;  %v5155_v41 = vpop.f32.mrf.mxu0 }
 0x8ef   : > { %6612 = vmatmul.f32.vlgmr.msra.gmra.mxu1 %v12210_v44 }
 0x8f0   : > { %6688 = vmatmul.f32.vlgmr.msrb.gmra.mxu0 %v12222_v9  ;;  %6808 = vmatpush.msra.mxu1 %v12133_v49 }
 0x8f1   : > { %6858 = vmatmul.f32.vlgmr.msrb.gmra.mxu3 %v12231_v6  ;;  %6880 = vmatpush.msrb.mxu0 %v12117_v7 }
 0x8f2   : > { %7048 = vmatpush.msrb.mxu3 %v12079_v34  ;;  %v5275_v57 = vpop.f32.mrf.mxu3 }
 0x8f3   : > { %6834 = vmatmul.f32.vlgmr.msrb.gmra.mxu2 %v12222_v9 }
 0x8f4   : > { %7026 = vmatpush.msrb.mxu2 %v12101_v47  ;;  %v5181_v21 = vpop.f32.mrf.mxu1 }
 0x8f5   : > { %v5205_v16 = vpop.f32.mrf.mxu0  ;;  %v5182_v22 = vadd.f32 %v5181_v21, %v5155_v41 }
 0x8f6   : > { %v5253_v43 = vpop.f32.mrf.mxu2 }
 0x8f7   : > { %6712 = vmatmul.f32.vlgmr.msrb.gmra.mxu1 %v12231_v6  ;;  %v5206_v18 = vadd.f32 %v5205_v16, %v5182_v22  ;;  %v12389_v16 = vand.u32 4294901760, %v11308_v0 }
 0x8f8   : > { %6784 = vmatmul.f32.vlgmr.msra.gmra.mxu0 %v12243_v46  ;;  %6902 = vmatpush.msrb.mxu1 %v12096_v12 }
 0x8f9   : > { %6956 = vmatmul.f32.vlgmr.msra.gmra.mxu3 %v12210_v44  ;;  %6977 = vmatpush.msra.mxu0 %v12093_v48 }
 0x8fa   : > { %7146 = vmatpush.msra.mxu3 %v12149_v42 }
 0x8fb   : > { %6930 = vmatmul.f32.vlgmr.msra.gmra.mxu2 %v12243_v46 }
 0x8fc   : > { %7123 = vmatpush.msra.mxu2 %v12161_v2  ;;  %v5378_v62 = vpop.f32.mrf.mxu3  ;;  %v5229_v52 = vpop.f32.mrf.mxu1 }
 0x8fd   : > { %v5304_v23 = vpop.f32.mrf.mxu0  ;;  %v5230_v5 = vadd.f32 %v5229_v52, %v5206_v18 }
 0x8fe   : > { %v5354_v14 = vpop.f32.mrf.mxu2 }
 0x8ff   : > { %v5254_v19 = vadd.f32 %v5253_v43, %v5230_v5  ;;  %6810 = vmatmul.f32.vlgmr.msra.gmra.mxu1 %v12210_v44  ;;  %v12404_v43 = vsub.f32 %v11308_v0, %v12389_v16 }
 0x900   : > { %6882 = vmatmul.f32.vlgmr.msrb.gmra.mxu0 %v12210_v44  ;;  %7000 = vmatpush.msra.mxu1 %v12079_v34  ;;  %v12312_v34 = vand.u32 4294901760, %v11252_v4 }
 0x901   : > { %7050 = vmatmul.f32.vlgmr.msrb.gmra.mxu3 %v12210_v44  ;;  %7070 = vmatpush.msrb.mxu0 %v12149_v42  ;;  %v12307_v45 = vadd.f32 %v5275_v57, %v5254_v19  ;;  %v12411_v5 = vand.u32 4294901760, %v12404_v43 }
 0x902   : > { %7246 = vmatpush.msrb.mxu3 %v12172_v60  ;;  %v12323_v25 = vsub.f32 %v11252_v4, %v12312_v34  ;;  %v5088_v4 = vld [vmem:[%s13128_s7] sm:$0xf] }
 0x903   : > { %7028 = vmatmul.f32.vlgmr.msrb.gmra.mxu2 %v12210_v44  ;;  %v7533_v11 = vsel %vm2386_vm1, %v5088_v4, 0 }
 0x904   : > { %7216 = vmatpush.msrb.mxu2 %v12135_v56  ;;  %v5479_v13 = vpop.f32.mrf.mxu3  ;;  %v5330_v63 = vpop.f32.mrf.mxu1  ;;  %v12333_v10 = vand.u32 4294901760, %v12323_v25 }
 0x905   : > { %v5402_v28 = vpop.f32.mrf.mxu0  ;;  %v5331_v31 = vadd.f32 %v5330_v63, %v5304_v23 }
 0x906   : > { %v5453_v48 = vpop.f32.mrf.mxu2  ;;  %v7579_v39 = vsub.f32 %v12323_v25, %v12333_v10 }
 0x907   : > { %v5480_v12 = vadd.f32 %v5479_v13, %v5453_v48  ;;  %v5355_v37 = vadd.f32 %v5354_v14, %v5331_v31  ;;  %6904 = vmatmul.f32.vlgmr.msrb.gmra.mxu1 %v12210_v44  ;;  %v7725_v13 = vsub.f32 %v12404_v43, %v12411_v5 }
 0x908   : > { %6980 = vmatmul.f32.vlgmr.msra.gmra.mxu0 %v12222_v9  ;;  %7100 = vmatpush.msrb.mxu1 %v12182_v8  ;;  %v12351_v2 = vand.u32 4294901760, %v7579_v39 }
 0x909   : > { %7150 = vmatmul.f32.vlgmr.msra.gmra.mxu3 %v12231_v6  ;;  %7172 = vmatpush.msra.mxu0 %v12168_v59  ;;  %v5379_v47 = vadd.f32 %v5378_v62, %v5355_v37  ;;  %v12427_v37 = vand.u32 4294901760, %v7725_v13 }
 0x90a   : > { %7340 = vmatpush.msra.mxu3 %v12135_v56 }
 0x90b   : > { %7126 = vmatmul.f32.vlgmr.msra.gmra.mxu2 %v12222_v9  ;;  %v12325_v30 = vadd.f32 %v5402_v28, %v5379_v47 }
 0x90c   : > { %7318 = vmatpush.msra.mxu2 %v12154_v33  ;;  %v5573_v17 = vpop.f32.mrf.mxu3  ;;  %v12328_v53 = vpop.f32.mrf.mxu1  ;;  %v12347_v33 = vand.u32 4294901760, %v7533_v11 }
 0x90d   : > { %v5503_v50 = vpop.f32.mrf.mxu0 }
 0x90e   : > { %v5551_v7 = vpop.f32.mrf.mxu2  ;;  %v5504_v55 = vadd.f32 %v5503_v50, %v5480_v12  ;;  %v12361_v59 = vsub.f32 %v7533_v11, %v12347_v33 }
 0x90f   : > { %7004 = vmatmul.f32.vlgmr.msra.gmra.mxu1 %v12231_v6 }
 0x910   : > { %7076 = vmatmul.f32.vlgmr.msrb.gmra.mxu0 %v12243_v46  ;;  %7194 = vmatpush.msra.mxu1 %v12149_v42  ;;  %v12365_v58 = vand.u32 4294901760, %v12361_v59 }
 0x911   : > { %7248 = vmatmul.f32.vlgmr.msrb.gmra.mxu3 %v12210_v44  ;;  %7269 = vmatpush.msrb.mxu0 %v12146_v36 }
 0x912   : > { %7438 = vmatpush.msrb.mxu3 %v12193_v40  ;;  %v7555_v27 = vsub.f32 %v12361_v59, %v12365_v58 }
 0x913   : > { %7222 = vmatmul.f32.vlgmr.msrb.gmra.mxu2 %v12243_v46 }
 0x914   : > { %7415 = vmatpush.msrb.mxu2 %v12205_v38  ;;  %v5676_v20 = vpop.f32.mrf.mxu3  ;;  %v5527_v26 = vpop.f32.mrf.mxu1  ;;  %v12368_v38 = vand.u32 4294901760, %v11448_v32 }
 0x915   : > { %v5602_v49 = vpop.f32.mrf.mxu0  ;;  %v5528_v61 = vadd.f32 %v5527_v26, %v5504_v55  ;;  %v13168_v26 = vld [vmem:[#allocation9_spill] sm:$0xff] }
 0x916   : > { %v5652_v42 = vpop.f32.mrf.mxu2  ;;  %v12381_v41 = vsub.f32 %v11448_v32, %v12368_v38 }
 0x917   : > { %v5552_v36 = vadd.f32 %v5551_v7, %v5528_v61  ;;  %7102 = vmatmul.f32.vlgmr.msrb.gmra.mxu1 %v12210_v44 }
 0x918   : > { %7174 = vmatmul.f32.vlgmr.msra.gmra.mxu0 %v12210_v44  ;;  %7292 = vmatpush.msrb.mxu1 %v12135_v56  ;;  %v12396_v32 = vand.u32 4294901760, %v12381_v41 }
 0x919   : > { %7342 = vmatmul.f32.vlgmr.msra.gmra.mxu3 %v12210_v44  ;;  %7362 = vmatpush.msra.mxu0 %v12193_v40  ;;  %v12357_v3 = vadd.f32 %v5573_v17, %v5552_v36  ;;  %v13167_v17 = vld [vmem:[#allocation10_spill] sm:$0xff] }
 0x91a   : > { %7581 = vmatpush.msra.mxu3 %v12351_v2  ;;  %v12430_v50 = vand.u32 4294901760, %v13167_v17 }
 0x91b   : > { %7320 = vmatmul.f32.vlgmr.msra.gmra.mxu2 %v12210_v44 }
 0x91c   : > { %7551 = vmatpush.msra.mxu2 %v12312_v34  ;;  %v5777_v60 = vpop.f32.mrf.mxu3  ;;  %v5628_v24 = vpop.f32.mrf.mxu1  ;;  %v12441_v11 = vsub.f32 %v13167_v17, %v12430_v50  ;;  %v13170_v17 = vld [vmem:[#allocation11_spill] sm:$0xff] }
 0x91d   : > { %v5700_v1 = vpop.f32.mrf.mxu0  ;;  %v5629_v8 = vadd.f32 %v5628_v24, %v5602_v49  ;;  %v12449_v49 = vand.u32 4294901760, %v13168_v26 }
 0x91e   : > { %v5751_v56 = vpop.f32.mrf.mxu2 }
 0x91f   : > { %v5778_v29 = vadd.f32 %v5777_v60, %v5751_v56  ;;  %v5653_v54 = vadd.f32 %v5652_v42, %v5629_v8  ;;  %7196 = vmatmul.f32.vlgmr.msra.gmra.mxu1 %v12210_v44  ;;  %v12454_v42 = vand.u32 4294901760, %v12441_v11  ;;  %v12462_v36 = vsub.f32 %v13168_v26, %v12449_v49 }
 0x920   : > { %7272 = vmatmul.f32.vlgmr.msrb.gmra.mxu0 %v12222_v9  ;;  %7392 = vmatpush.msra.mxu1 %v12228_v51 }
 0x921   : > { %7442 = vmatmul.f32.vlgmr.msrb.gmra.mxu3 %v12231_v6  ;;  %7464 = vmatpush.msrb.mxu0 %v12213_v15  ;;  %v5677_v35 = vadd.f32 %v5676_v20, %v5653_v54  ;;  %v8163_v24 = vsub.f32 %v12441_v11, %v12454_v42 }
 0x922   : > { %7675 = vmatpush.msrb.mxu3 %v12312_v34 }
 0x923   : > { %7418 = vmatmul.f32.vlgmr.msrb.gmra.mxu2 %v12222_v9  ;;  %v12383_v57 = vadd.f32 %v5700_v1, %v5677_v35  ;;  %v12391_v9 = vand.u32 4294901760, %v7555_v27  ;;  %v12469_v35 = vand.u32 4294901760, %v12462_v36 }
 0x924   : > { %7653 = vmatpush.msrb.mxu2 %v12333_v10  ;;  %v5871_v51 = vpop.f32.mrf.mxu3  ;;  %v12386_v21 = vpop.f32.mrf.mxu1 }
 0x925   : > { %v5801_v15 = vpop.f32.mrf.mxu0 }
 0x926   : > { %v5849_v22 = vpop.f32.mrf.mxu2 }
 0x927   : > { %7296 = vmatmul.f32.vlgmr.msrb.gmra.mxu1 %v12231_v6  ;;  %v5802_v6 = vadd.f32 %v5801_v15, %v5778_v29 }
 0x928   : > { %7368 = vmatmul.f32.vlgmr.msra.gmra.mxu0 %v12243_v46  ;;  %7486 = vmatpush.msrb.mxu1 %v12193_v40  ;;  %v7871_v46 = vsub.f32 %v12381_v41, %v12396_v32 }
 0x929   : > { %7583 = vmatmul.f32.vlgmr.msra.gmra.mxu3 %v12347_v33  ;;  %7604 = vmatpush.msra.mxu0 %v12323_v25 }
 0x92a   : > { %7773 = vmatpush.msra.mxu3 %v12389_v16  ;;  %v12415_v0 = vand.u32 4294901760, %v7871_v46 }
 0x92b   : > { %7557 = vmatmul.f32.vlgmr.msra.gmra.mxu2 %v12391_v9 }
 0x92c   : > { %7750 = vmatpush.msra.mxu2 %v12404_v43  ;;  %v5974_v18 = vpop.f32.mrf.mxu3  ;;  %v5825_v40 = vpop.f32.mrf.mxu1 }
 0x92d   : > { %v5900_v62 = vpop.f32.mrf.mxu0  ;;  %v5826_v52 = vadd.f32 %v5825_v40, %v5802_v6 }
 0x92e   : > { %v5950_v23 = vpop.f32.mrf.mxu2 }
 0x92f   : > { %v5850_v14 = vadd.f32 %v5849_v22, %v5826_v52  ;;  %7394 = vmatmul.f32.vlgmr.msra.gmra.mxu1 %v12210_v44  ;;  %v8017_v22 = vsub.f32 %v12462_v36, %v12469_v35 }
 0x930   : > { %7466 = vmatmul.f32.vlgmr.msrb.gmra.mxu0 %v12210_v44  ;;  %7627 = vmatpush.msra.mxu1 %v12312_v34 }
 0x931   : > { %7677 = vmatmul.f32.vlgmr.msrb.gmra.mxu3 %v12347_v33  ;;  %7697 = vmatpush.msrb.mxu0 %v12389_v16  ;;  %v12421_v19 = vadd.f32 %v5871_v51, %v5850_v14  ;;  %v12473_v51 = vand.u32 4294901760, %v8163_v24  ;;  %v12485_v52 = vand.u32 4294901760, %v8017_v22 }
 0x932   : > { %7873 = vmatpush.msrb.mxu3 %v12415_v0 }
 0x933   : > { %7655 = vmatmul.f32.vlgmr.msrb.gmra.mxu2 %v12347_v33 }
 0x934   : > { %7843 = vmatpush.msrb.mxu2 %v12368_v38  ;;  %v6075_v63 = vpop.f32.mrf.mxu3  ;;  %v5926_v28 = vpop.f32.mrf.mxu1 }
 0x935   : > { %v5998_v31 = vpop.f32.mrf.mxu0  ;;  %v5927_v48 = vadd.f32 %v5926_v28, %v5900_v62 }
 0x936   : > { %v6049_v12 = vpop.f32.mrf.mxu2 }
 0x937   : > { %v6076_v47 = vadd.f32 %v6075_v63, %v6049_v12  ;;  %v5951_v7 = vadd.f32 %v5950_v23, %v5927_v48  ;;  %7488 = vmatmul.f32.vlgmr.msrb.gmra.mxu1 %v12210_v44  ;;  %v13169_v23 = vld [vmem:[#allocation12_spill] sm:$0xff] }
 0x938   : > { %7607 = vmatmul.f32.vlgmr.msra.gmra.mxu0 %v12361_v59  ;;  %7727 = vmatpush.msrb.mxu1 %v12427_v37  ;;  %v12488_v14 = vand.u32 4294901760, %v13169_v23 }
 0x939   : > { %7777 = vmatmul.f32.vlgmr.msra.gmra.mxu3 %v12365_v58  ;;  %7799 = vmatpush.msra.mxu0 %v12411_v5  ;;  %v5975_v4 = vadd.f32 %v5974_v18, %v5951_v7  ;;  %v12507_v7 = vand.u32 4294901760, %v13170_v17 }
 0x93a   : > { %7967 = vmatpush.msra.mxu3 %v12368_v38  ;;  %v12499_v28 = vsub.f32 %v13169_v23, %v12488_v14 }
 0x93b   : > { %7753 = vmatmul.f32.vlgmr.msra.gmra.mxu2 %v12361_v59  ;;  %v12443_v55 = vadd.f32 %v5998_v31, %v5975_v4  ;;  %v12520_v26 = vsub.f32 %v13170_v17, %v12507_v7 }
 0x93c   : > { %7945 = vmatpush.msra.mxu2 %v12396_v32  ;;  %v6169_v44 = vpop.f32.mrf.mxu3  ;;  %v12446_v39 = vpop.f32.mrf.mxu1 }
 0x93d   : > { %v6099_v20 = vpop.f32.mrf.mxu0 }
 0x93e   : > { %v6147_v61 = vpop.f32.mrf.mxu2  ;;  %v6100_v60 = vadd.f32 %v6099_v20, %v6076_v47  ;;  %v12512_v20 = vand.u32 4294901760, %v12499_v28 }
 0x93f   : > { %7631 = vmatmul.f32.vlgmr.msra.gmra.mxu1 %v12365_v58 }
 0x940   : > { %7703 = vmatmul.f32.vlgmr.msrb.gmra.mxu0 %v12391_v9  ;;  %7821 = vmatpush.msra.mxu1 %v12389_v16 }
 0x941   : > { %7875 = vmatmul.f32.vlgmr.msrb.gmra.mxu3 %v12347_v33  ;;  %7896 = vmatpush.msrb.mxu0 %v12381_v41 }
 0x942   : > { %8065 = vmatpush.msrb.mxu3 %v12449_v49 }
 0x943   : > { %7849 = vmatmul.f32.vlgmr.msrb.gmra.mxu2 %v12391_v9 }
 0x944   : > { %8042 = vmatpush.msrb.mxu2 %v12462_v36  ;;  %v6272_v1 = vpop.f32.mrf.mxu3  ;;  %v6123_v8 = vpop.f32.mrf.mxu1 }
 0x945   : > { %v6198_v56 = vpop.f32.mrf.mxu0  ;;  %v6124_v29 = vadd.f32 %v6123_v8, %v6100_v60  ;;  %v8455_v60 = vsub.f32 %v12499_v28, %v12512_v20 }
 0x946   : > { %v6248_v54 = vpop.f32.mrf.mxu2 }
 0x947   : > { %v6148_v27 = vadd.f32 %v6147_v61, %v6124_v29  ;;  %7729 = vmatmul.f32.vlgmr.msrb.gmra.mxu1 %v12347_v33  ;;  %v12531_v22 = vand.u32 4294901760, %v8455_v60  ;;  %v13171_v60 = vld [vmem:[#allocation13_spill] sm:$0xff] }
 0x948   : > { %7801 = vmatmul.f32.vlgmr.msra.gmra.mxu0 %v12347_v33  ;;  %7919 = vmatpush.msrb.mxu1 %v12368_v38 }
 0x949   : > { %7969 = vmatmul.f32.vlgmr.msra.gmra.mxu3 %v12347_v33  ;;  %7989 = vmatpush.msra.mxu0 %v12449_v49  ;;  %v12479_v15 = vadd.f32 %v6169_v44, %v6148_v27 }
 0x94a   : > { %8165 = vmatpush.msra.mxu3 %v12473_v51 }
 0x94b   : > { %7947 = vmatmul.f32.vlgmr.msra.gmra.mxu2 %v12347_v33 }
 0x94c   : > { %8135 = vmatpush.msra.mxu2 %v12430_v50  ;;  %v6373_v6 = vpop.f32.mrf.mxu3  ;;  %v6224_v46 = vpop.f32.mrf.mxu1 }
 0x94d   : > { %v6296_v18 = vpop.f32.mrf.mxu0  ;;  %v6225_v40 = vadd.f32 %v6224_v46, %v6198_v56 }
 0x94e   : > { %v6347_v62 = vpop.f32.mrf.mxu2 }
 0x94f   : > { %v6249_v13 = vadd.f32 %v6248_v54, %v6225_v40  ;;  %7823 = vmatmul.f32.vlgmr.msra.gmra.mxu1 %v12347_v33  ;;  %v6374_v44 = vadd.f32 %v6373_v6, %v6347_v62  ;;  %v12527_v54 = vand.u32 4294901760, %v12520_v26 }
 0x950   : > { %7899 = vmatmul.f32.vlgmr.msrb.gmra.mxu0 %v12361_v59  ;;  %8019 = vmatpush.msra.mxu1 %v12485_v52 }
 0x951   : > { %8069 = vmatmul.f32.vlgmr.msrb.gmra.mxu3 %v12365_v58  ;;  %8091 = vmatpush.msrb.mxu0 %v12469_v35  ;;  %v6273_v63 = vadd.f32 %v6272_v1, %v6249_v13  ;;  %v8309_v46 = vsub.f32 %v12520_v26, %v12527_v54 }
 0x952   : > { %8259 = vmatpush.msrb.mxu3 %v12430_v50 }
 0x953   : > { %8045 = vmatmul.f32.vlgmr.msrb.gmra.mxu2 %v12361_v59  ;;  %v12501_v31 = vadd.f32 %v6296_v18, %v6273_v63  ;;  %v12542_v63 = vand.u32 4294901760, %v8309_v46 }
 0x954   : > { %8237 = vmatpush.msrb.mxu2 %v12454_v42  ;;  %v6467_v48 = vpop.f32.mrf.mxu3  ;;  %v12504_v12 = vpop.f32.mrf.mxu1 }
 0x955   : > { %v6397_v47 = vpop.f32.mrf.mxu0 }
 0x956   : > { %v6445_v4 = vpop.f32.mrf.mxu2  ;;  %v6398_v61 = vadd.f32 %v6397_v47, %v6374_v44 }
 0x957   : > { %7923 = vmatmul.f32.vlgmr.msrb.gmra.mxu1 %v12365_v58 }
 0x958   : > { %7995 = vmatmul.f32.vlgmr.msra.gmra.mxu0 %v12391_v9  ;;  %8113 = vmatpush.msrb.mxu1 %v12449_v49 }
 0x959   : > { %8167 = vmatmul.f32.vlgmr.msra.gmra.mxu3 %v12347_v33  ;;  %8188 = vmatpush.msra.mxu0 %v12441_v11 }
 0x95a   : > { %8357 = vmatpush.msra.mxu3 %v12507_v7 }
 0x95b   : > { %8141 = vmatmul.f32.vlgmr.msra.gmra.mxu2 %v12391_v9 }
 0x95c   : > { %8334 = vmatpush.msra.mxu2 %v12520_v26  ;;  %v6567_v24 = vpop.f32.mrf.mxu3  ;;  %v6421_v1 = vpop.f32.mrf.mxu1 }
 0x95d   : > { %v6493_v8 = vpop.f32.mrf.mxu0  ;;  %v6422_v56 = vadd.f32 %v6421_v1, %v6398_v61  ;;  %v12553_v1 = vand.u32 4294901760, %v13171_v60 }
 0x95e   : > { %v6543_v29 = vpop.f32.mrf.mxu2 }
 0x95f   : > { %v6446_v27 = vadd.f32 %v6445_v4, %v6422_v56  ;;  %8021 = vmatmul.f32.vlgmr.msra.gmra.mxu1 %v12347_v33 }
 0x960   : > { %8093 = vmatmul.f32.vlgmr.msrb.gmra.mxu0 %v12347_v33  ;;  %8211 = vmatpush.msra.mxu1 %v12430_v50 }
 0x961   : > { %8261 = vmatmul.f32.vlgmr.msrb.gmra.mxu3 %v12347_v33  ;;  %8281 = vmatpush.msrb.mxu0 %v12507_v7  ;;  %v6468_v6 = vadd.f32 %v6467_v48, %v6446_v27  ;;  %v12566_v27 = vsub.f32 %v13171_v60, %v12553_v1 }
 0x962   : > { %8457 = vmatpush.msrb.mxu3 %v12531_v22 }
 0x963   : > { %8239 = vmatmul.f32.vlgmr.msrb.gmra.mxu2 %v12347_v33  ;;  %7500 = vrot.lane.b32.xlu0 %v6468_v6, %s10910_s26 }
 0x964   : > { %8427 = vmatpush.msrb.mxu2 %v12488_v14  ;;  %v6665_v18 = vpop.f32.mrf.mxu3  ;;  %v6519_v40 = vpop.f32.mrf.mxu1 }
 0x965   : > { %v6591_v62 = vpop.f32.mrf.mxu0  ;;  %v6520_v23 = vadd.f32 %v6519_v40, %v6493_v8 }
 0x966   : > { %v6639_v13 = vpop.f32.mrf.mxu2 }
 0x967   : > { %v6544_v47 = vadd.f32 %v6543_v29, %v6520_v23  ;;  %8115 = vmatmul.f32.vlgmr.msrb.gmra.mxu1 %v12347_v33  ;;  %v6666_v29 = vadd.f32 %v6665_v18, %v6639_v13 }
 0x968   : > { %8191 = vmatmul.f32.vlgmr.msra.gmra.mxu0 %v12361_v59  ;;  %8311 = vmatpush.msrb.mxu1 %v12542_v63 }
 0x969   : > { %8361 = vmatmul.f32.vlgmr.msra.gmra.mxu3 %v12365_v58  ;;  %8383 = vmatpush.msra.mxu0 %v12527_v54  ;;  %v6568_v48 = vadd.f32 %v6567_v24, %v6544_v47  ;;  %v5089_v24 = vld [vmem:[%s13129_s8] sm:$0xf] }
 0x96a   : > { %8551 = vmatpush.msra.mxu3 %v12488_v14  ;;  %v8704_v6 = vsel %vm2386_vm1, %v5089_v24, 0 }
 0x96b   : > { %8337 = vmatmul.f32.vlgmr.msra.gmra.mxu2 %v12361_v59  ;;  %v6592_v17 = vadd.f32 %v6591_v62, %v6568_v48  ;;  %v12572_v47 = vand.u32 4294901760, %v8704_v6  ;;  %v12575_v48 = vand.u32 4294901760, %v12566_v27 }
 0x96c   : > { %8529 = vmatpush.msra.mxu2 %v12512_v20  ;;  %v6759_v4 = vpop.f32.mrf.mxu3  ;;  %v6613_v44 = vpop.f32.mrf.mxu1 }
 0x96d   : > { %v6689_v61 = vpop.f32.mrf.mxu0  ;;  %v6614_v56 = vadd.f32 %v6613_v44, %v6592_v17  ;;  %v12587_v60 = vsub.f32 %v8704_v6, %v12572_v47 }
 0x96e   : > { %v6737_v8 = vpop.f32.mrf.mxu2  ;;  %v6690_v46 = vadd.f32 %v6689_v61, %v6666_v29  ;;  %v8601_v61 = vsub.f32 %v12566_v27, %v12575_v48 }
 0x96f   : > { %8215 = vmatmul.f32.vlgmr.msra.gmra.mxu1 %v12365_v58  ;;  %7502 = vrot.lane.b32.xlu1 %v6614_v56, %s10910_s26 }
 0x970   : > { %8287 = vmatmul.f32.vlgmr.msrb.gmra.mxu0 %v12391_v9  ;;  %8405 = vmatpush.msra.mxu1 %v12507_v7 }
 0x971   : > { %8459 = vmatmul.f32.vlgmr.msrb.gmra.mxu3 %v12347_v33  ;;  %8480 = vmatpush.msrb.mxu0 %v12499_v28 }
 0x972   : > { %8649 = vmatpush.msrb.mxu3 %v12553_v1 }
 0x973   : > { %8433 = vmatmul.f32.vlgmr.msrb.gmra.mxu2 %v12391_v9 }
 0x974   : > { %8626 = vmatpush.msrb.mxu2 %v12566_v27  ;;  %v6859_v18 = vpop.f32.mrf.mxu3  ;;  %v6713_v40 = vpop.f32.mrf.mxu1 }
 0x975   : > { %v6785_v62 = vpop.f32.mrf.mxu0  ;;  %v6714_v23 = vadd.f32 %v6713_v40, %v6690_v46  ;;  %v12591_v40 = vand.u32 4294901760, %v8601_v61 }
 0x976   : > { %v6835_v13 = vpop.f32.mrf.mxu2 }
 0x977   : > { %v6738_v17 = vadd.f32 %v6737_v8, %v6714_v23  ;;  %8313 = vmatmul.f32.vlgmr.msrb.gmra.mxu1 %v12347_v33 }
 0x978   : > { %8385 = vmatmul.f32.vlgmr.msra.gmra.mxu0 %v12347_v33  ;;  %8503 = vmatpush.msrb.mxu1 %v12488_v14 }
 0x979   : > { %8553 = vmatmul.f32.vlgmr.msra.gmra.mxu3 %v12347_v33  ;;  %8573 = vmatpush.msra.mxu0 %v12553_v1  ;;  %v6760_v44 = vadd.f32 %v6759_v4, %v6738_v17 }
 0x97a   : > { %8752 = vmatpush.msra.mxu3 %v12351_v2  ;;  %v12594_v2 = vand.u32 4294901760, %v12587_v60 }
 0x97b   : > { %8531 = vmatmul.f32.vlgmr.msra.gmra.mxu2 %v12347_v33  ;;  %7504 = vrot.lane.b32.xlu1 %v6760_v44, %s10910_s26 }
 0x97c   : > { %8722 = vmatpush.msra.mxu2 %v12312_v34  ;;  %v6957_v8 = vpop.f32.mrf.mxu3  ;;  %v6811_v56 = vpop.f32.mrf.mxu1 }
 0x97d   : > { %v6883_v29 = vpop.f32.mrf.mxu0  ;;  %v6812_v24 = vadd.f32 %v6811_v56, %v6785_v62  ;;  %v8726_v62 = vsub.f32 %v12587_v60, %v12594_v2 }
 0x97e   : > { %v6931_v46 = vpop.f32.mrf.mxu2 }
 0x97f   : > { %v6836_v4 = vadd.f32 %v6835_v13, %v6812_v24  ;;  %8407 = vmatmul.f32.vlgmr.msra.gmra.mxu1 %v12347_v33  ;;  %v12606_v24 = vand.u32 4294901760, %v8726_v62 }
 0x980   : > { %8483 = vmatmul.f32.vlgmr.msrb.gmra.mxu0 %v12361_v59  ;;  %8603 = vmatpush.msra.mxu1 %v12591_v40 }
 0x981   : > { %8653 = vmatmul.f32.vlgmr.msrb.gmra.mxu3 %v12365_v58  ;;  %8675 = vmatpush.msrb.mxu0 %v12575_v48  ;;  %v6860_v6 = vadd.f32 %v6859_v18, %v6836_v4  ;;  %v6958_v18 = vadd.f32 %v6957_v8, %v6931_v46 }
 0x982   : > { %8846 = vmatpush.msrb.mxu3 %v12312_v34 }
 0x983   : > { %8629 = vmatmul.f32.vlgmr.msrb.gmra.mxu2 %v12361_v59  ;;  %v6884_v23 = vadd.f32 %v6883_v29, %v6860_v6 }
 0x984   : > { %8824 = vmatpush.msrb.mxu2 %v12333_v10  ;;  %v7051_v13 = vpop.f32.mrf.mxu3  ;;  %v6905_v17 = vpop.f32.mrf.mxu1 }
 0x985   : > { %v6981_v44 = vpop.f32.mrf.mxu0  ;;  %v6906_v56 = vadd.f32 %v6905_v17, %v6884_v23 }
 0x986   : > { %v7029_v61 = vpop.f32.mrf.mxu2  ;;  %v6982_v10 = vadd.f32 %v6981_v44, %v6958_v18 }
 0x987   : > { %8507 = vmatmul.f32.vlgmr.msrb.gmra.mxu1 %v12365_v58  ;;  %7506 = vrot.lane.b32.xlu0 %v6906_v56, %s10910_s26 }
 0x988   : > { %8579 = vmatmul.f32.vlgmr.msra.gmra.mxu0 %v12391_v9  ;;  %8697 = vmatpush.msrb.mxu1 %v12553_v1 }
 0x989   : > { %8754 = vmatmul.f32.vlgmr.msra.gmra.mxu3 %v12572_v47  ;;  %8775 = vmatpush.msra.mxu0 %v12323_v25 }
 0x98a   : > { %8944 = vmatpush.msra.mxu3 %v12389_v16 }
 0x98b   : > { %8728 = vmatmul.f32.vlgmr.msra.gmra.mxu2 %v12606_v24 }
 0x98c   : > { %8921 = vmatpush.msra.mxu2 %v12404_v43  ;;  %v7151_v59 = vpop.f32.mrf.mxu3  ;;  %v7005_v58 = vpop.f32.mrf.mxu1 }
 0x98d   : > { %v7077_v29 = vpop.f32.mrf.mxu0  ;;  %v7006_v9 = vadd.f32 %v7005_v58, %v6982_v10 }
 0x98e   : > { %v7127_v8 = vpop.f32.mrf.mxu2 }
 0x98f   : > { %v7030_v46 = vadd.f32 %v7029_v61, %v7006_v9  ;;  %8605 = vmatmul.f32.vlgmr.msra.gmra.mxu1 %v12347_v33 }
 0x990   : > { %8677 = vmatmul.f32.vlgmr.msrb.gmra.mxu0 %v12347_v33  ;;  %8798 = vmatpush.msra.mxu1 %v12312_v34 }
 0x991   : > { %8848 = vmatmul.f32.vlgmr.msrb.gmra.mxu3 %v12572_v47  ;;  %8868 = vmatpush.msrb.mxu0 %v12389_v16  ;;  %v7052_v25 = vadd.f32 %v7051_v13, %v7030_v46 }
 0x992   : > { %9044 = vmatpush.msrb.mxu3 %v12415_v0 }
 0x993   : > { %8826 = vmatmul.f32.vlgmr.msrb.gmra.mxu2 %v12572_v47  ;;  %7508 = vrot.lane.b32.xlu2 %v7052_v25, %s10910_s26 }
 0x994   : > { %9014 = vmatpush.msrb.mxu2 %v12368_v38  ;;  %v7249_v43 = vpop.f32.mrf.mxu3  ;;  %v7103_v4 = vpop.f32.mrf.mxu1 }
 0x995   : > { %v7175_v6 = vpop.f32.mrf.mxu0  ;;  %v7104_v62 = vadd.f32 %v7103_v4, %v7077_v29 }
 0x996   : > { %v7223_v23 = vpop.f32.mrf.mxu2 }
 0x997   : > { %v7128_v17 = vadd.f32 %v7127_v8, %v7104_v62  ;;  %8699 = vmatmul.f32.vlgmr.msrb.gmra.mxu1 %v12347_v33 }
 0x998   : > { %8778 = vmatmul.f32.vlgmr.msra.gmra.mxu0 %v12587_v60  ;;  %8898 = vmatpush.msrb.mxu1 %v12427_v37  ;;  %v7250_v37 = vadd.f32 %v7249_v43, %v7223_v23 }
 0x999   : > { %8948 = vmatmul.f32.vlgmr.msra.gmra.mxu3 %v12594_v2  ;;  %8970 = vmatpush.msra.mxu0 %v12411_v5  ;;  %v7152_v34 = vadd.f32 %v7151_v59, %v7128_v17 }
 0x99a   : > { %9138 = vmatpush.msra.mxu3 %v12368_v38 }
 0x99b   : > { %8924 = vmatmul.f32.vlgmr.msra.gmra.mxu2 %v12587_v60  ;;  %v7176_v0 = vadd.f32 %v7175_v6, %v7152_v34 }
 0x99c   : > { %9116 = vmatpush.msra.mxu2 %v12396_v32  ;;  %v7343_v13 = vpop.f32.mrf.mxu3  ;;  %v7197_v44 = vpop.f32.mrf.mxu1 }
 0x99d   : > { %v7273_v61 = vpop.f32.mrf.mxu0  ;;  %v7198_v56 = vadd.f32 %v7197_v44, %v7176_v0 }
 0x99e   : > { %v7321_v33 = vpop.f32.mrf.mxu2  ;;  %v7274_v32 = vadd.f32 %v7273_v61, %v7250_v37 }
 0x99f   : > { %8802 = vmatmul.f32.vlgmr.msra.gmra.mxu1 %v12594_v2  ;;  %7510 = vrot.lane.b32.xlu1 %v7198_v56, %s10910_s26 }
 0x9a0   : > { %8874 = vmatmul.f32.vlgmr.msrb.gmra.mxu0 %v12606_v24  ;;  %8992 = vmatpush.msra.mxu1 %v12389_v16 }
 0x9a1   : > { %9046 = vmatmul.f32.vlgmr.msrb.gmra.mxu3 %v12572_v47  ;;  %9067 = vmatpush.msrb.mxu0 %v12381_v41 }
 0x9a2   : > { %9236 = vmatpush.msrb.mxu3 %v12449_v49 }
 0x9a3   : > { %9020 = vmatmul.f32.vlgmr.msrb.gmra.mxu2 %v12606_v24 }
 0x9a4   : > { %9213 = vmatpush.msrb.mxu2 %v12462_v36  ;;  %v7443_v5 = vpop.f32.mrf.mxu3  ;;  %v7297_v18 = vpop.f32.mrf.mxu1 }
 0x9a5   : > { %v7369_v10 = vpop.f32.mrf.mxu0  ;;  %v7298_v59 = vadd.f32 %v7297_v18, %v7274_v32 }
 0x9a6   : > { %v7419_v58 = vpop.f32.mrf.mxu2 }
 0x9a7   : > { %v7322_v29 = vadd.f32 %v7321_v33, %v7298_v59  ;;  %8900 = vmatmul.f32.vlgmr.msrb.gmra.mxu1 %v12572_v47 }
 0x9a8   : > { %8972 = vmatmul.f32.vlgmr.msra.gmra.mxu0 %v12572_v47  ;;  %9090 = vmatpush.msrb.mxu1 %v12368_v38 }
 0x9a9   : > { %9140 = vmatmul.f32.vlgmr.msra.gmra.mxu3 %v12572_v47  ;;  %9160 = vmatpush.msra.mxu0 %v12449_v49  ;;  %v7344_v41 = vadd.f32 %v7343_v13, %v7322_v29 }
 0x9aa   : > { %9336 = vmatpush.msra.mxu3 %v12473_v51 }
 0x9ab   : > { %9118 = vmatmul.f32.vlgmr.msra.gmra.mxu2 %v12572_v47  ;;  %7512 = vrot.lane.b32.xlu0 %v7344_v41, %s10910_s26 }
 0x9ac   : > { %9306 = vmatpush.msra.mxu2 %v12430_v50  ;;  %v12652_v16 = vpop.f32.mrf.mxu3  ;;  %v7395_v36 = vpop.f32.mrf.mxu1 }
 0x9ad   : > { %v7467_v9 = vpop.f32.mrf.mxu0  ;;  %v7396_v8 = vadd.f32 %v7395_v36, %v7369_v10 }
 0x9ae   : > { %v12654_v46 = vpop.f32.mrf.mxu2 }
 0x9af   : > { %v7420_v38 = vadd.f32 %v7419_v58, %v7396_v8  ;;  %8994 = vmatmul.f32.vlgmr.msra.gmra.mxu1 %v12572_v47 }
 0x9b0   : > { %9070 = vmatmul.f32.vlgmr.msrb.gmra.mxu0 %v12587_v60  ;;  %9190 = vmatpush.msra.mxu1 %v12485_v52 }
 0x9b1   : > { %9240 = vmatmul.f32.vlgmr.msrb.gmra.mxu3 %v12594_v2  ;;  %9262 = vmatpush.msrb.mxu0 %v12469_v35  ;;  %v7444_v51 = vadd.f32 %v7443_v5, %v7420_v38 }
 0x9b2   : > { %9430 = vmatpush.msrb.mxu3 %v12430_v50 }
 0x9b3   : > { %9216 = vmatmul.f32.vlgmr.msrb.gmra.mxu2 %v12587_v60  ;;  %v12663_v25 = vadd.f32 %v7467_v9, %v7444_v51 }
 0x9b4   : > { %9408 = vmatpush.msrb.mxu2 %v12454_v42  ;;  %v12666_v43 = vpop.f32.mrf.mxu3  ;;  %v12668_v4 = vpop.f32.mrf.mxu1 }
 0x9b5   : > { %v12670_v6 = vpop.f32.mrf.mxu0 }
 0x9b6   : > { %v12672_v52 = vpop.f32.mrf.mxu2 }
 0x9b7   : > { %9094 = vmatmul.f32.vlgmr.msrb.gmra.mxu1 %v12594_v2 }
 0x9b8   : > { %9166 = vmatmul.f32.vlgmr.msra.gmra.mxu0 %v12606_v24  ;;  %9284 = vmatpush.msrb.mxu1 %v12449_v49 }
 0x9b9   : > { %9338 = vmatmul.f32.vlgmr.msra.gmra.mxu3 %v12572_v47  ;;  %9359 = vmatpush.msra.mxu0 %v12441_v11 }
 0x9ba   : > { %9528 = vmatpush.msra.mxu3 %v12507_v7 }
 0x9bb   : > { %9312 = vmatmul.f32.vlgmr.msra.gmra.mxu2 %v12606_v24 }
 0x9bc   : > { %9505 = vmatpush.msra.mxu2 %v12520_v26  ;;  %v12682_v42 = vpop.f32.mrf.mxu3  ;;  %v12684_v35 = vpop.f32.mrf.mxu1 }
 0x9bd   : > { %v12686_v62 = vpop.f32.mrf.mxu0 }
 0x9be   : > { %v12688_v23 = vpop.f32.mrf.mxu2 }
 0x9bf   : > { %9192 = vmatmul.f32.vlgmr.msra.gmra.mxu1 %v12572_v47 }
 0x9c0   : > { %9264 = vmatmul.f32.vlgmr.msrb.gmra.mxu0 %v12572_v47  ;;  %9382 = vmatpush.msra.mxu1 %v12430_v50 }
 0x9c1   : > { %9432 = vmatmul.f32.vlgmr.msrb.gmra.mxu3 %v12572_v47  ;;  %9452 = vmatpush.msrb.mxu0 %v12507_v7 }
 0x9c2   : > { %9628 = vmatpush.msrb.mxu3 %v12531_v22 }
 0x9c3   : > { %9410 = vmatmul.f32.vlgmr.msrb.gmra.mxu2 %v12572_v47 }
 0x9c4   : > { %9598 = vmatpush.msrb.mxu2 %v12488_v14  ;;  %v7876_v11 = vpop.f32.mrf.mxu3  ;;  %v12698_v49 = vpop.f32.mrf.mxu1 }
 0x9c5   : > { %v12700_v26 = vpop.f32.mrf.mxu0 }
 0x9c6   : > { %v7850_v17 = vpop.f32.mrf.mxu2 }
 0x9c7   : > { %9286 = vmatmul.f32.vlgmr.msrb.gmra.mxu1 %v12572_v47 }
 0x9c8   : > { %9362 = vmatmul.f32.vlgmr.msra.gmra.mxu0 %v12587_v60  ;;  %9482 = vmatpush.msrb.mxu1 %v12542_v63  ;;  %v7877_v63 = vadd.f32 %v7876_v11, %v7850_v17 }
 0x9c9   : > { %9532 = vmatmul.f32.vlgmr.msra.gmra.mxu3 %v12594_v2  ;;  %9554 = vmatpush.msra.mxu0 %v12527_v54 }
 0x9ca   : > { %9722 = vmatpush.msra.mxu3 %v12488_v14 }
 0x9cb   : > { %9508 = vmatmul.f32.vlgmr.msra.gmra.mxu2 %v12587_v60 }
 0x9cc   : > { %9700 = vmatpush.msra.mxu2 %v12512_v20  ;;  %v7970_v50 = vpop.f32.mrf.mxu3  ;;  %v12710_v22 = vpop.f32.mrf.mxu1 }
 0x9cd   : > { %v7900_v34 = vpop.f32.mrf.mxu0 }
 0x9ce   : > { %v7948_v0 = vpop.f32.mrf.mxu2  ;;  %v7901_v20 = vadd.f32 %v7900_v34, %v7877_v63 }
 0x9cf   : > { %9386 = vmatmul.f32.vlgmr.msra.gmra.mxu1 %v12594_v2 }
 0x9d0   : > { %9458 = vmatmul.f32.vlgmr.msrb.gmra.mxu0 %v12606_v24  ;;  %9576 = vmatpush.msra.mxu1 %v12507_v7 }
 0x9d1   : > { %9630 = vmatmul.f32.vlgmr.msrb.gmra.mxu3 %v12572_v47  ;;  %9651 = vmatpush.msrb.mxu0 %v12499_v28 }
 0x9d2   : > { %9820 = vmatpush.msrb.mxu3 %v12553_v1 }
 0x9d3   : > { %9604 = vmatmul.f32.vlgmr.msrb.gmra.mxu2 %v12606_v24 }
 0x9d4   : > { %9797 = vmatpush.msrb.mxu2 %v12566_v27  ;;  %v8070_v54 = vpop.f32.mrf.mxu3  ;;  %v7924_v13 = vpop.f32.mrf.mxu1 }
 0x9d5   : > { %v7996_v44 = vpop.f32.mrf.mxu0  ;;  %v7925_v61 = vadd.f32 %v7924_v13, %v7901_v20 }
 0x9d6   : > { %v8046_v33 = vpop.f32.mrf.mxu2 }
 0x9d7   : > { %v7949_v56 = vadd.f32 %v7948_v0, %v7925_v61  ;;  %9484 = vmatmul.f32.vlgmr.msrb.gmra.mxu1 %v12572_v47 }
 0x9d8   : > { %9556 = vmatmul.f32.vlgmr.msra.gmra.mxu0 %v12572_v47  ;;  %9674 = vmatpush.msrb.mxu1 %v12488_v14 }
 0x9d9   : > { %9744 = vmatpush.msra.mxu0 %v12553_v1  ;;  %v12724_v28 = vadd.f32 %v7970_v50, %v7949_v56  ;;  %9724 = vmatmul.f32.vlgmr.msra.gmra.mxu3 %v12572_v47 }
 0x9db   : > { %9702 = vmatmul.f32.vlgmr.msra.gmra.mxu2 %v12572_v47 }
 0x9dc   : > { %v8168_v7 = vpop.f32.mrf.mxu3  ;;  %v8022_v27 = vpop.f32.mrf.mxu1 }
 0x9dd   : > { %v8094_v37 = vpop.f32.mrf.mxu0  ;;  %v8023_v32 = vadd.f32 %v8022_v27, %v7996_v44 }
 0x9de   : > { %v8142_v5 = vpop.f32.mrf.mxu2 }
 0x9df   : > { %v8169_v18 = vadd.f32 %v8168_v7, %v8142_v5  ;;  %v8047_v10 = vadd.f32 %v8046_v33, %v8023_v32  ;;  %9578 = vmatmul.f32.vlgmr.msra.gmra.mxu1 %v12572_v47 }
 0x9e0   : > { %9654 = vmatmul.f32.vlgmr.msrb.gmra.mxu0 %v12587_v60  ;;  %9774 = vmatpush.msra.mxu1 %v12591_v40 }
 0x9e1   : > { %9846 = vmatpush.msrb.mxu0 %v12575_v48  ;;  %v8071_v14 = vadd.f32 %v8070_v54, %v8047_v10  ;;  %9824 = vmatmul.f32.vlgmr.msrb.gmra.mxu3 %v12594_v2 }
 0x9e3   : > { %9800 = vmatmul.f32.vlgmr.msrb.gmra.mxu2 %v12587_v60  ;;  %v8095_v59 = vadd.f32 %v8094_v37, %v8071_v14 }
 0x9e4   : > { %v8262_v58 = vpop.f32.mrf.mxu3  ;;  %v8116_v29 = vpop.f32.mrf.mxu1 }
 0x9e5   : > { %v12734_v41 = vadd.f32 %v8116_v29, %v8095_v59  ;;  %v8192_v36 = vpop.f32.mrf.mxu0 }
 0x9e6   : > { %v8240_v9 = vpop.f32.mrf.mxu2  ;;  %v8193_v8 = vadd.f32 %v8192_v36, %v8169_v18 }
 0x9e7   : > { %9678 = vmatmul.f32.vlgmr.msrb.gmra.mxu1 %v12594_v2 }
 0x9e8   : > { %9750 = vmatmul.f32.vlgmr.msra.gmra.mxu0 %v12606_v24  ;;  %9868 = vmatpush.msrb.mxu1 %v12553_v1 }
 0x9ec   : > { %v8362_v48 = vpop.f32.mrf.mxu3  ;;  %v8216_v40 = vpop.f32.mrf.mxu1 }
 0x9ed   : > { %v8217_v38 = vadd.f32 %v8216_v40, %v8193_v8  ;;  %v8288_v51 = vpop.f32.mrf.mxu0 }
 0x9ee   : > { %v8338_v11 = vpop.f32.mrf.mxu2 }
 0x9ef   : > { %v8241_v60 = vadd.f32 %v8240_v9, %v8217_v38  ;;  %9776 = vmatmul.f32.vlgmr.msra.gmra.mxu1 %v12572_v47 }
 0x9f0   : > { %9848 = vmatmul.f32.vlgmr.msrb.gmra.mxu0 %v12572_v47 }
 0x9f1   : > { %v12741_v17 = vadd.f32 %v8262_v58, %v8241_v60 }
 0x9f4   : > { %v8460_v50 = vpop.f32.mrf.mxu3  ;;  %v8314_v34 = vpop.f32.mrf.mxu1 }
 0x9f5   : > { %v8315_v0 = vadd.f32 %v8314_v34, %v8288_v51  ;;  %v8386_v2 = vpop.f32.mrf.mxu0 }
 0x9f6   : > { %v8434_v63 = vpop.f32.mrf.mxu2 }
 0x9f7   : > { %v8339_v24 = vadd.f32 %v8338_v11, %v8315_v0  ;;  %9870 = vmatmul.f32.vlgmr.msrb.gmra.mxu1 %v12572_v47  ;;  %v8461_v1 = vadd.f32 %v8460_v50, %v8434_v63 }
 0x9f9   : > { %v8363_v20 = vadd.f32 %v8362_v48, %v8339_v24 }
 0x9fb   : > { %v8387_v54 = vadd.f32 %v8386_v2, %v8363_v20 }
 0x9fc   : > { %v8554_v13 = vpop.f32.mrf.mxu3  ;;  %v8408_v44 = vpop.f32.mrf.mxu1 }
 0x9fd   : > { %v12744_v61 = vadd.f32 %v8408_v44, %v8387_v54  ;;  %v8484_v33 = vpop.f32.mrf.mxu0 }
 0x9fe   : > { %v8532_v56 = vpop.f32.mrf.mxu2  ;;  %v8485_v7 = vadd.f32 %v8484_v33, %v8461_v1 }
 0xa04   : > { %v8654_v27 = vpop.f32.mrf.mxu3  ;;  %v8508_v37 = vpop.f32.mrf.mxu1 }
 0xa05   : > { %v8509_v32 = vadd.f32 %v8508_v37, %v8485_v7  ;;  %v8580_v5 = vpop.f32.mrf.mxu0 }
 0xa06   : > { %v8630_v18 = vpop.f32.mrf.mxu2 }
 0xa07   : > { %v8533_v10 = vadd.f32 %v8532_v56, %v8509_v32 }
 0xa09   : > { %v12746_v14 = vadd.f32 %v8554_v13, %v8533_v10 }
 0xa0c   : > { %v8755_v59 = vpop.f32.mrf.mxu3  ;;  %v8606_v47 = vpop.f32.mrf.mxu1 }
 0xa0d   : > { %v8607_v58 = vadd.f32 %v8606_v47, %v8580_v5  ;;  %v8678_v29 = vpop.f32.mrf.mxu0 }
 0xa0e   : > { %v8729_v36 = vpop.f32.mrf.mxu2 }
 0xa0f   : > { %v8631_v9 = vadd.f32 %v8630_v18, %v8607_v58  ;;  %v8756_v50 = vadd.f32 %v8755_v59, %v8729_v36 }
 0xa11   : > { %v8655_v8 = vadd.f32 %v8654_v27, %v8631_v9 }
 0xa13   : > { %v8679_v48 = vadd.f32 %v8678_v29, %v8655_v8 }
 0xa14   : > { %v8849_v40 = vpop.f32.mrf.mxu3  ;;  %v8700_v38 = vpop.f32.mrf.mxu1 }
 0xa15   : > { %v12748_v51 = vadd.f32 %v8700_v38, %v8679_v48  ;;  %v8779_v11 = vpop.f32.mrf.mxu0 }
 0xa16   : > { %v8827_v60 = vpop.f32.mrf.mxu2  ;;  %v8780_v34 = vadd.f32 %v8779_v11, %v8756_v50 }
 0xa1c   : > { %v8949_v0 = vpop.f32.mrf.mxu3  ;;  %v8803_v2 = vpop.f32.mrf.mxu1 }
 0xa1d   : > { %v8804_v63 = vadd.f32 %v8803_v2, %v8780_v34  ;;  %v8875_v24 = vpop.f32.mrf.mxu0 }
 0xa1e   : > { %v8925_v1 = vpop.f32.mrf.mxu2 }
 0xa1f   : > { %v8828_v20 = vadd.f32 %v8827_v60, %v8804_v63 }
 0xa21   : > { %v8850_v54 = vadd.f32 %v8849_v40, %v8828_v20 }
 0xa23   : > { %9882 = vrot.lane.b32.xlu2 %v8850_v54, %s10910_s26 }
 0xa24   : > { %v9047_v13 = vpop.f32.mrf.mxu3  ;;  %v8901_v44 = vpop.f32.mrf.mxu1 }
 0xa25   : > { %v8902_v33 = vadd.f32 %v8901_v44, %v8875_v24  ;;  %v8973_v56 = vpop.f32.mrf.mxu0 }
 0xa26   : > { %v9021_v7 = vpop.f32.mrf.mxu2 }
 0xa27   : > { %v8926_v27 = vadd.f32 %v8925_v1, %v8902_v33  ;;  %v9048_v58 = vadd.f32 %v9047_v13, %v9021_v7 }
 0xa29   : > { %v8950_v37 = vadd.f32 %v8949_v0, %v8926_v27 }
 0xa2b   : > { %v8974_v32 = vadd.f32 %v8973_v56, %v8950_v37 }
 0xa2c   : > { %v9141_v5 = vpop.f32.mrf.mxu3  ;;  %v8995_v18 = vpop.f32.mrf.mxu1 }
 0xa2d   : > { %v8996_v10 = vadd.f32 %v8995_v18, %v8974_v32  ;;  %v9071_v59 = vpop.f32.mrf.mxu0 }
 0xa2e   : > { %v9119_v47 = vpop.f32.mrf.mxu2  ;;  %v9072_v29 = vadd.f32 %v9071_v59, %v9048_v58 }
 0xa2f   : > { %9884 = vrot.lane.b32.xlu0 %v8996_v10, %s10910_s26 }
 0xa34   : > { %v9241_v36 = vpop.f32.mrf.mxu3  ;;  %v9095_v9 = vpop.f32.mrf.mxu1 }
 0xa35   : > { %v9096_v8 = vadd.f32 %v9095_v9, %v9072_v29  ;;  %v9167_v48 = vpop.f32.mrf.mxu0 }
 0xa36   : > { %v9217_v40 = vpop.f32.mrf.mxu2 }
 0xa37   : > { %v9120_v38 = vadd.f32 %v9119_v47, %v9096_v8 }
 0xa39   : > { %v9142_v11 = vadd.f32 %v9141_v5, %v9120_v38 }
 0xa3b   : > { %9886 = vrot.lane.b32.xlu2 %v9142_v11, %s10910_s26 }
 0xa3c   : > { %v9193_v60 = vpop.f32.mrf.mxu1  ;;  %v9339_v34 = vpop.f32.mrf.mxu3 }
 0xa3d   : > { %v9194_v50 = vadd.f32 %v9193_v60, %v9167_v48  ;;  %v9265_v0 = vpop.f32.mrf.mxu0 }
 0xa3e   : > { %v9313_v2 = vpop.f32.mrf.mxu2 }
 0xa3f   : > { %v9218_v63 = vadd.f32 %v9217_v40, %v9194_v50  ;;  %v9340_v33 = vadd.f32 %v9339_v34, %v9313_v2 }
 0xa41   : > { %v9242_v24 = vadd.f32 %v9241_v36, %v9218_v63 }
 0xa43   : > { %v9266_v1 = vadd.f32 %v9265_v0, %v9242_v24  ;;  %v7490_v24 = vadd.f32 %v12668_v4, %v12663_v25  ;;  %v7501_v25 = vpop.permute.xlu0 %7500 }
 0xa44   : > { %v9287_v20 = vpop.f32.mrf.mxu1  ;;  %v9433_v56 = vpop.f32.mrf.mxu3 }
 0xa45   : > { %v9288_v54 = vadd.f32 %v9287_v20, %v9266_v1  ;;  %v9363_v13 = vpop.f32.mrf.mxu0 }
 0xa46   : > { %v9411_v44 = vpop.f32.mrf.mxu2  ;;  %v9364_v7 = vadd.f32 %v9363_v13, %v9340_v33 }
 0xa47   : > { %9888 = vrot.lane.b32.xlu1 %v9288_v54, %s10910_s26 }
 0xa4b   : > { %v7507_v4 = vpop.permute.xlu0 %7506 }
 0xa4c   : > { %v9387_v27 = vpop.f32.mrf.mxu1  ;;  %v9533_v59 = vpop.f32.mrf.mxu3 }
 0xa4d   : > { %v9388_v37 = vadd.f32 %v9387_v27, %v9364_v7  ;;  %v9459_v32 = vpop.f32.mrf.mxu0 }
 0xa4e   : > { %v9509_v5 = vpop.f32.mrf.mxu2 }
 0xa4f   : > { %v9412_v18 = vadd.f32 %v9411_v44, %v9388_v37 }
 0xa51   : > { %v9434_v10 = vadd.f32 %v9433_v56, %v9412_v18 }
 0xa53   : > { %9890 = vrot.lane.b32.xlu0 %v9434_v10, %s10910_s26 }
 0xa54   : > { %v9485_v47 = vpop.f32.mrf.mxu1  ;;  %v9631_v38 = vpop.f32.mrf.mxu3 }
 0xa55   : > { %v9486_v58 = vadd.f32 %v9485_v47, %v9459_v32  ;;  %v9557_v29 = vpop.f32.mrf.mxu0  ;;  %v7503_v47 = vpop.permute.xlu1 %7502 }
 0xa56   : > { %v9605_v9 = vpop.f32.mrf.mxu2 }
 0xa57   : > { %v9510_v36 = vadd.f32 %v9509_v5, %v9486_v58  ;;  %v9632_v50 = vadd.f32 %v9631_v38, %v9605_v9  ;;  %v7509_v58 = vpop.permute.xlu2 %7508  ;;  %v7513_v9 = vpop.permute.xlu0 %7512 }
 0xa59   : > { %v9534_v8 = vadd.f32 %v9533_v59, %v9510_v36  ;;  %v7731_v59 = vadd.f32 %v12698_v49, %v12686_v62 }
 0xa5b   : > { %v9558_v48 = vadd.f32 %v9557_v29, %v9534_v8  ;;  %v7585_v29 = vadd.f32 %v12652_v16, %v12654_v46  ;;  %v7755_v36 = vadd.f32 %v12688_v23, %v7731_v59  ;;  %v5425_v16 = vadd.f32 %v12328_v53, %v12325_v30 }
 0xa5c   : > { %v9579_v40 = vpop.f32.mrf.mxu1  ;;  %v9725_v63 = vpop.f32.mrf.mxu3 }
 0xa5d   : > { %v9580_v11 = vadd.f32 %v9579_v40, %v9558_v48  ;;  %v9655_v60 = vpop.f32.mrf.mxu0  ;;  %v7609_v8 = vadd.f32 %v12670_v6, %v7585_v29  ;;  %v7779_v48 = vadd.f32 %v12682_v42, %v7755_v36  ;;  %v7505_v40 = vpop.permute.xlu1 %7504 }
 0xa5e   : > { %v9703_v34 = vpop.f32.mrf.mxu2  ;;  %v9656_v0 = vadd.f32 %v9655_v60, %v9632_v50 }
 0xa5f   : > { %9892 = vrot.lane.b32.xlu2 %v9580_v11, %s10910_s26  ;;  %v7633_v38 = vadd.f32 %v12684_v35, %v7609_v8  ;;  %v7803_v60 = vadd.f32 %v12700_v26, %v7779_v48  ;;  %v12779_v35 = vsel %vm4329_vm7, %v5425_v16, %v7503_v47  ;;  %v12788_v26 = vsel %vm4329_vm7, %v12307_v45, %v7501_v25 }
 0xa61   : > { %v7657_v62 = vadd.f32 %v12672_v52, %v7633_v38  ;;  %v7825_v50 = vadd.f32 %v12710_v22, %v7803_v60  ;;  %v5090_v60 = vld [vmem:[%s13133_s12] sm:$0xff] }
 0xa63   : > { %v7679_v46 = vadd.f32 %v12666_v43, %v7657_v62 }
 0xa64   : > { %v9679_v2 = vpop.f32.mrf.mxu1  ;;  %v9825_v7 = vpop.f32.mrf.mxu3 }
 0xa65   : > { %v9680_v1 = vadd.f32 %v9679_v2, %v9656_v0  ;;  %v9751_v20 = vpop.f32.mrf.mxu0  ;;  %v12799_v0 = vsel %vm4329_vm7, %v12357_v3, %v7505_v40 }
 0xa66   : > { %v9801_v33 = vpop.f32.mrf.mxu2 }
 0xa67   : > { %v9704_v54 = vadd.f32 %v9703_v34, %v9680_v1  ;;  %7514 = vrot.lane.b32.xlu2 %v7490_v24, %s10910_s26  ;;  %v7511_v34 = vpop.permute.xlu1 %7510 }
 0xa69   : > { %v9726_v13 = vadd.f32 %v9725_v63, %v9704_v54  ;;  %v5723_v63 = vadd.f32 %v12386_v21, %v12383_v57  ;;  %v6021_v57 = vadd.f32 %v12446_v39, %v12443_v55 }
 0xa6b   : > { %9894 = vrot.lane.b32.xlu1 %v9726_v13, %s10910_s26  ;;  %v12811_v54 = vsel %vm4329_vm7, %v5723_v63, %v7507_v4 }
 0xa6c   : > { %v9777_v44 = vpop.f32.mrf.mxu1 }
 0xa6d   : > { %v9778_v56 = vadd.f32 %v9777_v44, %v9751_v20  ;;  %v9849_v37 = vpop.f32.mrf.mxu0 }
 0xa6f   : > { %v9802_v27 = vadd.f32 %v9801_v33, %v9778_v56  ;;  %v12831_v33 = vsel %vm4329_vm7, %v6021_v57, %v7511_v34  ;;  %v5095_v56 = vld [vmem:[%s13133_s12 + $0x28] sm:$0xff] }
 0xa71   : > { %v9826_v32 = vadd.f32 %v9825_v7, %v9802_v27 }
 0xa73   : > { %v9850_v5 = vadd.f32 %v9849_v37, %v9826_v32  ;;  %v12854_v37 = vand.u32 4294901760, %v5095_v56  ;;  %v5094_v32 = vld [vmem:[%s13133_s12 + $0x20] sm:$0xff] }
 0xa74   : > { %v9871_v18 = vpop.f32.mrf.mxu1  ;;  %v12866_v4 = vand.u32 4294901760, %v5094_v32 }
 0xa75   : > { %v9872_v10 = vadd.f32 %v9871_v18, %v9850_v5  ;;  %v5093_v5 = vld [vmem:[%s13133_s12 + $0x18] sm:$0xff]  ;;  %v5092_v18 = vld [vmem:[%s13133_s12 + $0x10] sm:$0xff] }
 0xa76   : > { %v12868_v59 = vand.u32 4294901760, %v5093_v5  ;;  %v12870_v47 = vand.u32 4294901760, %v5092_v18  ;;  %v12890_v40 = vsub.f32 %v5094_v32, %v12866_v4 }
 0xa77   : > { %9896 = vrot.lane.b32.xlu0 %v9872_v10, %s10910_s26 }
 0xa78   : > { %v12893_v38 = vsub.f32 %v5093_v5, %v12868_v59 }
 0xa7d   : > { %v9883_v11 = vpop.permute.xlu2 %9882 }
 0xa7e   : > { %v12782_v23 = vsel %vm4329_vm7, %v7679_v46, %v9883_v11  ;;  %v12896_v11 = vsub.f32 %v5092_v18, %v12870_v47  ;;  %v10014_v46 = vand.u32 4294901760, %v12890_v40 }
 0xa7f   : > { %v9914_v30 = vadd.f32 %v12782_v23, %v12788_v26 }
 0xa80   : > { %v10015_v57 = vsub.f32 %v12890_v40, %v10014_v46 }
 0xa81   : > { %v9922_v45 = vsel %vm3252_vm3, %v9914_v30, 0.0 }
 0xa82   : > { %v10016_v5 = vand.u32 4294901760, %v10015_v57  ;;  %v5098_v57 = vld [vmem:[%s13134_s13] sm:$0xff] }
 0xa95   : > { %v9887_v42 = vpop.permute.xlu2 %9886 }
 0xa96   : > { %v12794_v53 = vsel %vm4329_vm7, %v12724_v28, %v9887_v42  ;;  %v10020_v42 = vand.u32 4294901760, %v12893_v38 }
 0xa97   : > { %v9916_v24 = vadd.f32 %v12794_v53, %v12799_v0 }
 0xa99   : > { %v9925_v44 = vsel %vm3252_vm3, %v9916_v24, 0.0 }
 0xaa1   : > { %v9885_v49 = vpop.permute.xlu0 %9884 }
 0xaa2   : > { %v12776_v6 = vsel %vm4329_vm7, %v7825_v50, %v9885_v49 }
 0xaa3   : > { %v9915_v52 = vadd.f32 %v12776_v6, %v12779_v35 }
 0xaa5   : > { %v9923_v22 = vsel %vm3252_vm3, %v9915_v52, 0.0 }
 0xaa6   : > { %v9924_v20 = vadd.f32 %v9923_v22, %v9922_v45  ;;  %v12927_v22 = vand.u32 4294901760, %v5090_v60  ;;  %v10026_v45 = vand.u32 4294901760, %v12896_v11 }
 0xaa8   : > { %v9926_v55 = vadd.f32 %v9925_v44, %v9924_v20  ;;  %v6319_v44 = vadd.f32 %v12504_v12, %v12501_v31  ;;  %v10027_v18 = vsub.f32 %v12896_v11, %v10026_v45 }
 0xab9   : > { %v9889_v43 = vpop.permute.xlu1 %9888  ;;  %v9893_v1 = vpop.permute.xlu2 %9892 }
 0xaba   : > { %v12808_v28 = vsel %vm4329_vm7, %v12734_v41, %v9889_v43  ;;  %v12821_v21 = vsel %vm4329_vm7, %v12744_v61, %v9893_v1  ;;  %v12827_v41 = vsel %vm4329_vm7, %v12421_v19, %v7509_v58  ;;  %v5097_v61 = vld [vmem:[%s13133_s12 + $0x38] sm:$0xff]  ;;  %v5096_v19 = vld [vmem:[%s13133_s12 + $0x30] sm:$0xff]  ;;  %v5091_v58 = vld [vmem:[%s13133_s12 + $0x8] sm:$0xff] }
 0xabb   : > { %v9917_v13 = vadd.f32 %v12808_v28, %v12811_v54  ;;  %v12850_v7 = vand.u32 4294901760, %v5097_v61  ;;  %v12852_v27 = vand.u32 4294901760, %v5096_v19  ;;  %v12886_v8 = vand.u32 4294901760, %v5091_v58 }
 0xabd   : > { %v9927_v10 = vsel %vm3252_vm3, %v9917_v13, 0.0  ;;  %v12876_v29 = vsub.f32 %v5097_v61, %v12850_v7  ;;  %v12879_v36 = vsub.f32 %v5096_v19, %v12852_v27  ;;  %9962 = vmatpush.msra.mxu2 %v12850_v7  ;;  %10094 = vmatpush.msra.mxu1 %v12850_v7  ;;  %v12913_v52 = vsub.f32 %v5091_v58, %v12886_v8 }
 0xabe   : > { %v9928_v16 = vadd.f32 %v9927_v10, %v9926_v55  ;;  %v12939_v13 = vsub.f32 %v5090_v60, %v12927_v22  ;;  %v10021_v61 = vsub.f32 %v12893_v38, %v10020_v42 }
 0xabf   : > { %v9996_v49 = vand.u32 4294901760, %v12876_v29  ;;  %v10002_v50 = vand.u32 4294901760, %v12879_v36  ;;  %10057 = vmatpush.msra.mxu0 %v12876_v29  ;;  %9964 = vmatpush.msra.mxu2 %v12852_v27  ;;  %v10032_v19 = vand.u32 4294901760, %v12913_v52 }
 0xac0   : > { %10096 = vmatpush.msra.mxu1 %v12852_v27  ;;  %v10038_v10 = vand.u32 4294901760, %v12939_v13 }
 0xac1   : > { %v10003_v30 = vsub.f32 %v12879_v36, %v10002_v50  ;;  %10060 = vmatpush.msra.mxu0 %v12879_v36  ;;  %9966 = vmatpush.msra.mxu2 %v12854_v37  ;;  %v7515_v24 = vpop.permute.xlu2 %7514 }
 0xac2   : > { %10098 = vmatpush.msra.mxu1 %v12854_v37 }
 0xac3   : > { %v10004_v20 = vand.u32 4294901760, %v10003_v30  ;;  %9968 = vmatpush.msra.mxu2 %v12866_v4  ;;  %v10039_v30 = vsub.f32 %v12939_v13, %v10038_v10 }
 0xac4   : > { %10100 = vmatpush.msra.mxu1 %v12866_v4 }
 0xac5   : > { %v9891_v2 = vpop.permute.xlu0 %9890  ;;  %9970 = vmatpush.msra.mxu2 %v12868_v59 }
 0xac6   : > { %v12815_v3 = vsel %vm4329_vm7, %v12741_v17, %v9891_v2  ;;  %v12835_v17 = vsel %vm4329_vm7, %v12479_v15, %v7513_v9  ;;  %v9919_v15 = vadd.f32 %v12821_v21, %v12831_v33  ;;  %v12882_v9 = vsub.f32 %v5095_v56, %v12854_v37  ;;  %10102 = vmatpush.msra.mxu1 %v12868_v59 }
 0xac7   : > { %v9918_v39 = vadd.f32 %v12815_v3, %v12827_v41  ;;  %v12951_v56 = vsel %vm4329_vm7, %v6319_v44, %v7515_v24  ;;  %9972 = vmatpush.msra.mxu2 %v12870_v47  ;;  %v10040_v24 = vand.u32 4294901760, %v10039_v30 }
 0xac8   : > { %v10008_v34 = vand.u32 4294901760, %v12882_v9  ;;  %10063 = vmatpush.msra.mxu0 %v12882_v9  ;;  %v9931_v55 = vsel %vm3252_vm3, %v9919_v15, 0.0  ;;  %10104 = vmatpush.msra.mxu1 %v12870_v47 }
 0xac9   : > { %v9929_v48 = vsel %vm3252_vm3, %v9918_v39, 0.0  ;;  %9974 = vmatpush.msra.mxu2 %v12886_v8 }
 0xaca   : > { %v10009_v43 = vsub.f32 %v12882_v9, %v10008_v34  ;;  %v9930_v2 = vadd.f32 %v9929_v48, %v9928_v16  ;;  %10066 = vmatpush.msra.mxu0 %v12890_v40  ;;  %v10033_v48 = vsub.f32 %v12913_v52, %v10032_v19  ;;  %10106 = vmatpush.msra.mxu1 %v12886_v8 }
 0xacb   : > { %9976 = vmatpush.msra.mxu2 %v12927_v22 }
 0xacc   : > { %v10010_v39 = vand.u32 4294901760, %v10009_v43  ;;  %v9932_v32 = vadd.f32 %v9931_v55, %v9930_v2  ;;  %10069 = vmatpush.msra.mxu0 %v12893_v38  ;;  %10108 = vmatpush.msra.mxu1 %v12927_v22  ;;  %v10034_v2 = vand.u32 4294901760, %v10033_v48 }
 0xacd   : > { %10127 = vmatpush.msrb.mxu2 %v9996_v49 }
 0xace   : > { %10072 = vmatpush.msra.mxu0 %v12896_v11 }
 0xacf   : > { %10131 = vmatpush.msrb.mxu2 %v10002_v50 }
 0xad0   : > { %10075 = vmatpush.msra.mxu0 %v12913_v52 }
 0xad1   : > { %10135 = vmatpush.msrb.mxu2 %v10008_v34 }
 0xad2   : > { %10078 = vmatpush.msra.mxu0 %v12939_v13 }
 0xad3   : > { %10139 = vmatpush.msrb.mxu2 %v10014_v46  ;;  %v5099_v46 = vld [vmem:[%s13134_s13 + $0x8] sm:$0xff] }
 0xad5   : > { %10143 = vmatpush.msrb.mxu2 %v10020_v42 }
 0xad7   : > { %10147 = vmatpush.msrb.mxu2 %v10026_v45  ;;  %v10209_v45 = vand.u32 4294901760, %v5099_v46 }
 0xad9   : > { %10151 = vmatpush.msrb.mxu2 %v10032_v19  ;;  %v10247_v55 = vsub.f32 %v5099_v46, %v10209_v45 }
 0xadb   : > { %10155 = vmatpush.msrb.mxu2 %v10038_v10 }
 0xadd   : > { %v9895_v25 = vpop.permute.xlu1 %9894 }
 0xade   : > { %v12903_v62 = vsel %vm4329_vm7, %v12746_v14, %v9895_v25  ;;  %v9997_v14 = vsub.f32 %v12876_v29, %v9996_v49  ;;  %v5100_v49 = vld [vmem:[%s13134_s13 + $0x10] sm:$0xff] }
 0xadf   : > { %v9920_v63 = vadd.f32 %v12903_v62, %v12835_v17  ;;  %v10207_v34 = vand.u32 4294901760, %v5100_v49 }
 0xae0   : > { %v9998_v1 = vand.u32 4294901760, %v9997_v14  ;;  %v10028_v14 = vand.u32 4294901760, %v10027_v18 }
 0xae1   : > { %v9933_v31 = vsel %vm3252_vm3, %v9920_v63, 0.0 }
 0xae2   : > { %9999 = vmatpush.msra.mxu3 %v9998_v1  ;;  %v9934_v58 = vadd.f32 %v9933_v31, %v9932_v32  ;;  %v10248_v32 = vand.u32 4294901760, %v10247_v55 }
 0xae4   : > { %10005 = vmatpush.msra.mxu3 %v10004_v20 }
 0xae6   : > { %10011 = vmatpush.msra.mxu3 %v10010_v39  ;;  %v10211_v39 = vand.u32 4294901760, %v5098_v57 }
 0xae8   : > { %10017 = vmatpush.msra.mxu3 %v10016_v5  ;;  %v10253_v31 = vsub.f32 %v5098_v57, %v10211_v39  ;;  %v10249_v5 = vsub.f32 %v10247_v55, %v10248_v32 }
 0xae9   : > { %v9897_v12 = vpop.permute.xlu0 %9896 }
 0xaea   : > { %v12958_v15 = vsel %vm4329_vm7, %v12748_v51, %v9897_v12  ;;  %v10022_v51 = vand.u32 4294901760, %v10021_v61  ;;  %v10254_v18 = vand.u32 4294901760, %v10253_v31  ;;  %v10250_v10 = vand.u32 4294901760, %v10249_v5  ;;  %v5103_v5 = vld [vmem:[%s13172_s23 + $0x8] sm:$0xff] }
 0xaeb   : > { %v9921_v25 = vadd.f32 %v12958_v15, %v12951_v56 }
 0xaec   : > { %10023 = vmatpush.msra.mxu3 %v10022_v51 }
 0xaed   : > { %v9935_v60 = vsel %vm3252_vm3, %v9921_v25, 0.0  ;;  %v10255_v25 = vsub.f32 %v10253_v31, %v10254_v18 }
 0xaee   : > { %v9936_v16 = vadd.f32 %v9935_v60, %v9934_v58  ;;  %10029 = vmatpush.msra.mxu3 %v10028_v14 }
 0xaef   : > { %v10256_v58 = vand.u32 4294901760, %v10255_v25 }
 0xaf0   : > { %v9937_v43 = vsel %vm3252_vm3, %v9936_v16, 0.0  ;;  %10035 = vmatpush.msra.mxu3 %v10034_v2 }
 0xaf1   : > { %v9938_v63 = vrot.slane %v9937_v43, 4 }
 0xaf2   : > { %10041 = vmatpush.msra.mxu3 %v10040_v24 }
 0xaf3   : > { %v9939_v1 = vadd.f32 %v9938_v63, %v9937_v43 }
 0xaf4   : > { %10170 = vmatpush.msrb.mxu3 %v12850_v7 }
 0xaf5   : > { %v9940_v52 = vrot.slane %v9939_v1, 2 }
 0xaf6   : > { %10172 = vmatpush.msrb.mxu3 %v12852_v27 }
 0xaf7   : > { %v9941_v20 = vadd.f32 %v9940_v52, %v9939_v1 }
 0xaf8   : > { %10174 = vmatpush.msrb.mxu3 %v12854_v37 }
 0xaf9   : > { %v9942_v29 = vrot.slane %v9941_v20, 1 }
 0xafa   : > { %10176 = vmatpush.msrb.mxu3 %v12866_v4 }
 0xafb   : > { %v9943_v36 = vadd.f32 %v9942_v29, %v9941_v20 }
 0xafc   : > { %10178 = vmatpush.msrb.mxu3 %v12868_v59 }
 0xafd   : > { %9945 = vrot.lane.b32.xlu1 %v9943_v36, %s10910_s26 }
 0xafe   : > { %10180 = vmatpush.msrb.mxu3 %v12870_v47  ;;  %v5101_v47 = vld [vmem:[%s13134_s13 + $0x18] sm:$0xff] }
 0xb00   : > { %10182 = vmatpush.msrb.mxu3 %v12886_v8  ;;  %v10205_v8 = vand.u32 4294901760, %v5101_v47 }
 0xb02   : > { %10184 = vmatpush.msrb.mxu3 %v12927_v22  ;;  %v10235_v50 = vsub.f32 %v5101_v47, %v10205_v8  ;;  %10206 = vmatpush.msrb.mxu0 %v10205_v8  ;;  %v10241_v22 = vsub.f32 %v5100_v49, %v10207_v34  ;;  %v5106_v49 = vld [vmem:[%s13172_s23 + $0x20] sm:$0xff] }
 0xb04   : > { %v10236_v42 = vand.u32 4294901760, %v10235_v50  ;;  %10208 = vmatpush.msrb.mxu0 %v10207_v34  ;;  %v10242_v44 = vand.u32 4294901760, %v10241_v22 }
 0xb06   : > { %v10237_v13 = vsub.f32 %v10235_v50, %v10236_v42  ;;  %10210 = vmatpush.msrb.mxu0 %v10209_v45  ;;  %v10243_v19 = vsub.f32 %v10241_v22, %v10242_v44 }
 0xb08   : > { %v10238_v61 = vand.u32 4294901760, %v10237_v13  ;;  %10212 = vmatpush.msrb.mxu0 %v10211_v39  ;;  %v10244_v12 = vand.u32 4294901760, %v10243_v19 }
 0xb0a   : > { %10239 = vmatpush.msrb.mxu1 %v10238_v61 }
 0xb0c   : > { %10245 = vmatpush.msrb.mxu1 %v10244_v12 }
 0xb0e   : > { %10251 = vmatpush.msrb.mxu1 %v10250_v10 }
 0xb10   : > { %10257 = vmatpush.msrb.mxu1 %v10256_v58  ;;  %v10401_v58 = vand.u32 4294901760, %v5103_v5 }
 0xb6f   : > { %v9946_v7 = vpop.permute.xlu1 %9945 }
 0xb70   : > { %v9948_v27 = vadd.f32 %v9946_v7, %v9943_v36 }
 0xb72   : > { %v9949_v37 = vmul.f32 0.015625, %v9948_v27 }
 0xb74   : > { %v9951_v9 = vsel %vm4329_vm7, %v9949_v37, 0  ;;  %v5109_v37 = vld [vmem:[%s13172_s23 + $0x38] sm:$0xff] }
 0xb75   : > { %v9977_v40 = vand.u32 4294901760, %v9951_v9 }
 0xb77   : > { %v9978_v38 = vsub.f32 %v9951_v9, %v9977_v40  ;;  %10043 = vmatmul.f32.vlgmr.msra.gmra.mxu3 %v9977_v40  ;;  %v13018_v9 = vand.u32 4294901760, %v5109_v37 }
 0xb78   : > { %10366 = vmatpush.msra.mxu3 %v10205_v8 }
 0xb79   : > { %v9979_v11 = vand.u32 4294901760, %v9978_v38  ;;  %10081 = vmatmul.f32.vlgmr.msra.gmra.mxu0 %v9978_v38 }
 0xb7a   : > { %10368 = vmatpush.msra.mxu3 %v10207_v34  ;;  %10277 = vmatpush.msra.mxu0 %v10235_v50 }
 0xb7b   : > { %v9980_v4 = vsub.f32 %v9978_v38, %v9979_v11  ;;  %10112 = vmatmul.f32.vlgmr.msra.gmra.mxu1 %v9979_v11  ;;  %v13024_v38 = vsub.f32 %v5109_v37, %v13018_v9 }
 0xb7c   : > { %10370 = vmatpush.msra.mxu3 %v10209_v45  ;;  %10280 = vmatpush.msra.mxu0 %v10241_v22  ;;  %v5105_v22 = vld [vmem:[%s13172_s23 + $0x18] sm:$0xff] }
 0xb7d   : > { %v9981_v59 = vand.u32 4294901760, %v9980_v4  ;;  %10306 = vmatpush.msra.mxu1 %v10205_v8  ;;  %v5107_v4 = vld [vmem:[%s13172_s23 + $0x28] sm:$0xff] }
 0xb7e   : > { %10372 = vmatpush.msra.mxu3 %v10211_v39  ;;  %10283 = vmatpush.msra.mxu0 %v10247_v55  ;;  %v13037_v8 = vand.u32 4294901760, %v5107_v4  ;;  %v10397_v55 = vand.u32 4294901760, %v5105_v22 }
 0xb7f   : > { %9982 = vmatmul.f32.vlgmr.msra.gmra.mxu2 %v9981_v59  ;;  %10186 = vmatmul.f32.vlgmr.msrb.gmra.mxu3 %v9977_v40  ;;  %v10424_v59 = vand.u32 4294901760, %v13024_v38 }
 0xb80   : > { %10335 = vmatpush.msra.mxu2 %v10236_v42  ;;  %10286 = vmatpush.msra.mxu0 %v10253_v31  ;;  %v13048_v46 = vsub.f32 %v5107_v4, %v13037_v8  ;;  %v13050_v42 = vand.u32 4294901760, %v5106_v49  ;;  %v10447_v12 = vsub.f32 %v5105_v22, %v10397_v55 }
 0xb81   : > { %10308 = vmatpush.msra.mxu1 %v10207_v34  ;;  %10522 = vmatpush.msrb.mxu3 %v13018_v9  ;;  %v10425_v50 = vsub.f32 %v13024_v38, %v10424_v59 }
 0xb82   : > { %10339 = vmatpush.msra.mxu2 %v10242_v44  ;;  %v10436_v13 = vand.u32 4294901760, %v13048_v46  ;;  %v10441_v44 = vsub.f32 %v5106_v49, %v13050_v42 }
 0xb83   : > { %10310 = vmatpush.msra.mxu1 %v10209_v45  ;;  %v10426_v45 = vand.u32 4294901760, %v10425_v50 }
 0xb84   : > { %10343 = vmatpush.msra.mxu2 %v10248_v32  ;;  %v10437_v19 = vsub.f32 %v13048_v46, %v10436_v13  ;;  %v10442_v32 = vand.u32 4294901760, %v10441_v44 }
 0xb85   : > { %10312 = vmatpush.msra.mxu1 %v10211_v39  ;;  %v5104_v39 = vld [vmem:[%s13172_s23 + $0x10] sm:$0xff] }
 0xb86   : > { %10347 = vmatpush.msra.mxu2 %v10254_v18  ;;  %v10399_v31 = vand.u32 4294901760, %v5104_v39  ;;  %v10438_v18 = vand.u32 4294901760, %v10437_v19  ;;  %v10443_v10 = vsub.f32 %v10441_v44, %v10442_v32 }
 0xb87   : > { %10157 = vmatmul.f32.vlgmr.msrb.gmra.mxu2 %v9977_v40  ;;  %v5108_v40 = vld [vmem:[%s13172_s23 + $0x30] sm:$0xff] }
 0xb88   : > { %v13026_v11 = vand.u32 4294901760, %v5108_v40  ;;  %10485 = vmatpush.msrb.mxu2 %v13024_v38  ;;  %v10453_v25 = vsub.f32 %v5104_v39, %v10399_v31 }
 0xb8a   : > { %v13035_v47 = vsub.f32 %v5108_v40, %v13026_v11  ;;  %10524 = vmatpush.msrb.mxu3 %v13026_v11 }
 0xb8c   : > { %v10430_v34 = vand.u32 4294901760, %v13035_v47  ;;  %10488 = vmatpush.msrb.mxu2 %v13035_v47  ;;  %10526 = vmatpush.msrb.mxu3 %v13037_v8 }
 0xb8e   : > { %v10431_v57 = vsub.f32 %v13035_v47, %v10430_v34  ;;  %10491 = vmatpush.msrb.mxu2 %v13048_v46  ;;  %10528 = vmatpush.msrb.mxu3 %v13050_v42 }
 0xb90   : > { %v10432_v61 = vand.u32 4294901760, %v10431_v57  ;;  %10494 = vmatpush.msrb.mxu2 %v10441_v44  ;;  %10530 = vmatpush.msrb.mxu3 %v10397_v55 }
 0xb92   : > { %10497 = vmatpush.msrb.mxu2 %v10447_v12  ;;  %10532 = vmatpush.msrb.mxu3 %v10399_v31 }
 0xb94   : > { %10500 = vmatpush.msrb.mxu2 %v10453_v25  ;;  %10534 = vmatpush.msrb.mxu3 %v10401_v58 }
 0xbf6   : > { %v10082_v16 = vpop.f32.mrf.mxu0 }
 0xbf8   : > { %v10113_v30 = vpop.f32.mrf.mxu1 }
 0xbfa   : > { %v10044_v51 = vpop.f32.mrf.mxu3 }
 0xc02   : > { %v9983_v48 = vpop.f32.mrf.mxu2  ;;  %v10187_v24 = vpop.f32.mrf.mxu3 }
 0xc03   : > { %v10045_v60 = vadd.f32 %v10044_v51, %v9983_v48  ;;  %v10448_v51 = vand.u32 4294901760, %v10447_v12  ;;  %v5102_v48 = vld [vmem:[%s13172_s23] sm:$0xff] }
 0xc05   : > { %v10083_v14 = vadd.f32 %v10082_v16, %v10045_v60  ;;  %v10444_v60 = vand.u32 4294901760, %v10443_v10  ;;  %v10454_v16 = vand.u32 4294901760, %v10453_v25 }
 0xc07   : > { %v10114_v43 = vadd.f32 %v10113_v30, %v10083_v14  ;;  %v10459_v14 = vsub.f32 %v5103_v5, %v10401_v58  ;;  %v10403_v30 = vand.u32 4294901760, %v5102_v48 }
 0xc09   : > { %10503 = vmatpush.msrb.mxu2 %v10459_v14  ;;  %10536 = vmatpush.msrb.mxu3 %v10403_v30 }
 0xc0a   : > { %v10158_v2 = vpop.f32.mrf.mxu2 }
 0xc0b   : > { %v10159_v63 = vadd.f32 %v10158_v2, %v10114_v43  ;;  %v10449_v43 = vsub.f32 %v10447_v12, %v10448_v51  ;;  %v10455_v2 = vsub.f32 %v10453_v25, %v10454_v16 }
 0xc0d   : > { %v10188_v1 = vadd.f32 %v10187_v24, %v10159_v63  ;;  %v10460_v63 = vand.u32 4294901760, %v10459_v14  ;;  %v10465_v24 = vsub.f32 %v5102_v48, %v10403_v30 }
 0xc0f   : > { %v10191_v52 = vsel %vm4570_vm8, %v10188_v1, 0  ;;  %v10450_v1 = vand.u32 4294901760, %v10449_v43  ;;  %10506 = vmatpush.msrb.mxu2 %v10465_v24 }
 0xc10   : > { %v10213_v20 = vand.u32 4294901760, %v10191_v52 }
 0xc12   : > { %v10214_v29 = vsub.f32 %v10191_v52, %v10213_v20  ;;  %10259 = vmatmul.f32.vlgmr.msrb.gmra.mxu1 %v10213_v20  ;;  %10349 = vmatmul.f32.vlgmr.msra.gmra.mxu2 %v10213_v20  ;;  %v10456_v52 = vand.u32 4294901760, %v10455_v2 }
 0xc13   : > { %10374 = vmatmul.f32.vlgmr.msra.gmra.mxu3 %v10213_v20  ;;  %10427 = vmatpush.msrb.mxu1 %v10426_v45  ;;  %v10461_v20 = vsub.f32 %v10459_v14, %v10460_v63 }
 0xc14   : > { %v10215_v36 = vand.u32 4294901760, %v10214_v29 }
 0xc15   : > { %10433 = vmatpush.msrb.mxu1 %v10432_v61 }
 0xc16   : > { %v10216_v7 = vsub.f32 %v10214_v29, %v10215_v36 }
 0xc17   : > { %10439 = vmatpush.msrb.mxu1 %v10438_v18 }
 0xc18   : > { %v10217_v27 = vand.u32 4294901760, %v10216_v7 }
 0xc19   : > { %10445 = vmatpush.msrb.mxu1 %v10444_v60 }
 0xc1a   : > { %10218 = vmatmul.f32.vlgmr.msrb.gmra.mxu0 %v10217_v27  ;;  %10316 = vmatmul.f32.vlgmr.msra.gmra.mxu1 %v10215_v36  ;;  %v10462_v36 = vand.u32 4294901760, %v10461_v20 }
 0xc1b   : > { %10390 = vmatpush.msrb.mxu0 %v13018_v9  ;;  %10451 = vmatpush.msrb.mxu1 %v10450_v1 }
 0xc1d   : > { %10392 = vmatpush.msrb.mxu0 %v13026_v11  ;;  %10457 = vmatpush.msrb.mxu1 %v10456_v52 }
 0xc1f   : > { %10394 = vmatpush.msrb.mxu0 %v13037_v8  ;;  %10463 = vmatpush.msrb.mxu1 %v10462_v36 }
 0xc21   : > { %10396 = vmatpush.msrb.mxu0 %v13050_v42 }
 0xc22   : > { %10289 = vmatmul.f32.vlgmr.msra.gmra.mxu0 %v10214_v29  ;;  %v10466_v29 = vand.u32 4294901760, %v10465_v24 }
 0xc23   : > { %10398 = vmatpush.msrb.mxu0 %v10397_v55 }
 0xc24   : > { %v10467_v7 = vsub.f32 %v10465_v24, %v10466_v29 }
 0xc25   : > { %10400 = vmatpush.msrb.mxu0 %v10399_v31 }
 0xc26   : > { %v10468_v27 = vand.u32 4294901760, %v10467_v7 }
 0xc27   : > { %10402 = vmatpush.msrb.mxu0 %v10401_v58 }
 0xc28   : > { %10469 = vmatpush.msrb.mxu1 %v10468_v27 }
 0xc29   : > { %10404 = vmatpush.msrb.mxu0 %v10403_v30 }
 0xc2a   : > { %10598 = vmatpush.msra.mxu1 %v13018_v9 }
 0xc2b   : > { %10555 = vmatpush.msra.mxu0 %v10424_v59 }
 0xc2c   : > { %10600 = vmatpush.msra.mxu1 %v13026_v11 }
 0xc2d   : > { %10559 = vmatpush.msra.mxu0 %v10430_v34 }
 0xc2e   : > { %10602 = vmatpush.msra.mxu1 %v13037_v8 }
 0xc2f   : > { %10563 = vmatpush.msra.mxu0 %v10436_v13 }
 0xc30   : > { %10604 = vmatpush.msra.mxu1 %v13050_v42 }
 0xc31   : > { %10567 = vmatpush.msra.mxu0 %v10442_v32 }
 0xc32   : > { %10606 = vmatpush.msra.mxu1 %v10397_v55 }
 0xc33   : > { %10571 = vmatpush.msra.mxu0 %v10448_v51 }
 0xc34   : > { %10608 = vmatpush.msra.mxu1 %v10399_v31 }
 0xc35   : > { %10575 = vmatpush.msra.mxu0 %v10454_v16 }
 0xc36   : > { %10610 = vmatpush.msra.mxu1 %v10401_v58 }
 0xc37   : > { %10579 = vmatpush.msra.mxu0 %v10460_v63 }
 0xc38   : > { %10612 = vmatpush.msra.mxu1 %v10403_v30 }
 0xc39   : > { %10583 = vmatpush.msra.mxu0 %v10466_v29 }
 0xc8f   : > { %v10260_v37 = vpop.f32.mrf.mxu1 }
 0xc95   : > { %v10350_v49 = vpop.f32.mrf.mxu2 }
 0xc96   : > { %v10375_v50 = vpop.f32.mrf.mxu3 }
 0xc97   : > { %v10219_v40 = vpop.f32.mrf.mxu0  ;;  %v10317_v9 = vpop.f32.mrf.mxu1 }
 0xc98   : > { %v10261_v38 = vadd.f32 %v10260_v37, %v10219_v40 }
 0xc9f   : > { %v10290_v4 = vpop.f32.mrf.mxu0 }
 0xca0   : > { %v10291_v59 = vadd.f32 %v10290_v4, %v10261_v38 }
 0xca2   : > { %v10318_v47 = vadd.f32 %v10317_v9, %v10291_v59 }
 0xca4   : > { %v10351_v11 = vadd.f32 %v10350_v49, %v10318_v47 }
 0xca6   : > { %v10376_v34 = vadd.f32 %v10375_v50, %v10351_v11 }
 0xca8   : > { %v10379_v8 = vsel %vm4329_vm7, %v10376_v34, 0 }
 0xca9   : > { %v10405_v46 = vand.u32 4294901760, %v10379_v8 }
 0xcab   : > { %v10406_v42 = vsub.f32 %v10379_v8, %v10405_v46  ;;  %10471 = vmatmul.f32.vlgmr.msrb.gmra.mxu1 %v10405_v46 }
 0xcad   : > { %10509 = vmatmul.f32.vlgmr.msrb.gmra.mxu2 %v10406_v42  ;;  %v10407_v22 = vand.u32 4294901760, %v10406_v42 }
 0xcaf   : > { %10540 = vmatmul.f32.vlgmr.msrb.gmra.mxu3 %v10407_v22  ;;  %v10408_v45 = vsub.f32 %v10406_v42, %v10407_v22 }
 0xcb1   : > { %v10409_v57 = vand.u32 4294901760, %v10408_v45 }
 0xcb3   : > { %10410 = vmatmul.f32.vlgmr.msrb.gmra.mxu0 %v10409_v57  ;;  %10614 = vmatmul.f32.vlgmr.msra.gmra.mxu1 %v10405_v46 }
 0xcbb   : > { %10585 = vmatmul.f32.vlgmr.msra.gmra.mxu0 %v10405_v46 }
 0xd28   : > { %v10472_v13 = vpop.f32.mrf.mxu1 }
 0xd30   : > { %v10411_v44 = vpop.f32.mrf.mxu0  ;;  %v10510_v39 = vpop.f32.mrf.mxu2 }
 0xd31   : > { %v10473_v55 = vadd.f32 %v10472_v13, %v10411_v44  ;;  %v10615_v5 = vpop.f32.mrf.mxu1 }
 0xd32   : > { %v10541_v19 = vpop.f32.mrf.mxu3 }
 0xd33   : > { %v10511_v61 = vadd.f32 %v10510_v39, %v10473_v55 }
 0xd35   : > { %v10542_v32 = vadd.f32 %v10541_v19, %v10511_v61 }
 0xd38   : > { %v10586_v31 = vpop.f32.mrf.mxu0 }
 0xd39   : > { %v10587_v12 = vadd.f32 %v10586_v31, %v10542_v32 }
 0xd3b   : > { %v10616_v18 = vadd.f32 %v10615_v5, %v10587_v12 }
 0xd3d   : > { %10619 = vrot.lane.b32.xlu2 %v10616_v18, %s10910_s26 }
 0xd97   : > { %v10620_v10 = vpop.permute.xlu2 %10619 }
 0xd98   : > { %v10622_v25 = vmax.f32 %v10616_v18, %v10620_v10 }
 0xd9a   : > { %10627 = vrot.lane.b32.xlu0 %v10622_v25, %s10910_s26  ;;  %v10623_v16 = vsub.f32 %v10616_v18, %v10622_v25 }
 0xd9c   : > { %v10624_v14 = vmul.f32 1.442695, %v10623_v16 }
 0xe0c   : > { %v10628_v58 = vpop.permute.xlu0 %10627 }
 0xe0d   : > { %v10630_v51 = vsub.f32 %v10616_v18, %v10628_v58 }
 0xe0f   : > { %v10631_v48 = vmul.f32 1.442695, %v10630_v51 }
 0xe11   : > { %10836 = vpow2.f32 %v10631_v48 }
 0xe12   : > { %10838 = vpow2.f32 %v10624_v14 }
 0xe17   : > { %v10837_v60 = vpop.eup %10836 }
 0xe18   : > { %10634 = vrot.lane.b32.xlu1 %v10837_v60, %s10910_s26  ;;  %v10839_v30 = vpop.eup %10838 }
 0xe8a   : > { %v10635_v43 = vpop.permute.xlu1 %10634 }
 0xe8b   : > { %v10637_v2 = vadd.f32 %v10839_v30, %v10635_v43 }
 0xe8d   : > { %10840 = vrcp.f32 %v10637_v2  ;;  %v10649_v52 = vand.u32 2147483648, %v10637_v2  ;;  %v10647_v29 = vand.u32 2147483647, %v10637_v2  ;;  %vm10643_vm14 = vweird.f32 %v10637_v2 }
 0xe8f   : > { %v10650_v7 = vor.u32 1.1754944e-38, %v10649_v52  ;;  %vm10648_vm0 = vcmp.eq.f32.partialorder %v10647_v29, 8.507059e+37 }
 0xe93   : > { %v10841_v63 = vpop.eup %10840 }
 0xe94   : > { %v10639_v24 = vmul.f32 %v10841_v63, %v10637_v2  ;;  %vm10644_vm13 = vweird.f32 %v10841_v63 }
 0xe95   : > { %vm10645_vm15 = vmor %vm10643_vm14, %vm10644_vm13 }
 0xe96   : > { %v10640_v1 = vsub.f32 1.0, %v10639_v24 }
 0xe98   : > { %v10641_v20 = vmul.f32 %v10841_v63, %v10640_v1 }
 0xe9a   : > { %v10642_v36 = vadd.f32 %v10841_v63, %v10641_v20 }
 0xe9c   : > { %v10646_v27 = vsel %vm10645_vm15, %v10841_v63, %v10642_v36 }
 0xe9d   : > { %v10651_v37 = vsel %vm10648_vm0, %v10650_v7, %v10646_v27 }
 0xe9e   : > { %10655 = vrot.lane.b32.xlu2 %v10651_v37, %s10910_s26  ;;  %v10653_v40 = vmul.f32 %v10839_v30, %v10651_v37 }
 0xea0   : > { %10660 = vrot.lane.b32.xlu0 %v10653_v40, %s10910_s26 }
 0xef8   : > { %v10656_v38 = vpop.permute.xlu2 %10655 }
 0xef9   : > { %v10658_v4 = vmul.f32 %v10837_v60, %v10656_v38 }
 0xefb   : > { %10665 = vrot.lane.b32.xlu1 %v10658_v4, %s10910_s26 }
 0xf12   : > { %v10661_v59 = vpop.permute.xlu0 %10660 }
 0xf13   : > { %v10663_v9 = vsel %vm4329_vm7, %v10653_v40, %v10661_v59 }
 0xf14   : > { %v10669_v47 = vperm.slane %v10663_v9, 0 }
 0xf16   : > { %v10670_v34 = vmul.f32 %v10669_v47, %v12782_v23  ;;  %v10671_v8 = vmul.f32 %v10669_v47, %v12776_v6  ;;  %v10672_v46 = vmul.f32 %v10669_v47, %v12794_v53  ;;  %v10673_v13 = vmul.f32 %v10669_v47, %v12808_v28 }
 0xf17   : > { %v10674_v44 = vmul.f32 %v10669_v47, %v12815_v3  ;;  %v10676_v3 = vmul.f32 %v10669_v47, %v12903_v62  ;;  %v10677_v61 = vmul.f32 %v10669_v47, %v12958_v15 }
 0xf6d   : > { %v10666_v49 = vpop.permute.xlu1 %10665 }
 0xf6e   : > { %v10668_v11 = vsel %vm4329_vm7, %v10666_v49, %v10658_v4 }
 0xf6f   : > { %v10678_v50 = vperm.slane %v10668_v11, 0 }
 0xf71   : > { %v10679_v42 = vmul.f32 %v10678_v50, %v12788_v26  ;;  %v10680_v22 = vmul.f32 %v10678_v50, %v12779_v35  ;;  %v10681_v45 = vmul.f32 %v10678_v50, %v12799_v0  ;;  %v10682_v57 = vmul.f32 %v10678_v50, %v12811_v54 }
 0xf72   : > { %v10683_v6 = vmul.f32 %v10678_v50, %v12827_v41  ;;  %v10684_v23 = vmul.f32 %v10678_v50, %v12831_v33  ;;  %v10685_v26 = vmul.f32 %v10678_v50, %v12835_v17  ;;  %v10675_v0 = vmul.f32 %v10669_v47, %v12821_v21 }
 0xf73   : > { %v10687_v53 = vadd.f32 %v10679_v42, %v10670_v34  ;;  %v10688_v35 = vadd.f32 %v10680_v22, %v10671_v8  ;;  %v10689_v55 = vadd.f32 %v10681_v45, %v10672_v46  ;;  %v10686_v54 = vmul.f32 %v10678_v50, %v12951_v56 }
 0xf74   : > { %v10690_v28 = vadd.f32 %v10682_v57, %v10673_v13  ;;  %v10691_v39 = vadd.f32 %v10683_v6, %v10674_v44  ;;  %v10692_v19 = vadd.f32 %v10684_v23, %v10675_v0  ;;  %v10693_v41 = vadd.f32 %v10685_v26, %v10676_v3 }
 0xf75   : > { %10695 = vst [vmem:[%s516_s24] sm:$0xf] %v10687_v53  ;;  %v10694_v33 = vadd.f32 %v10686_v54, %v10677_v61 }
 0xf76   : > { %10696 = vst [vmem:[%s516_s24 + $0x4] sm:$0xf] %v10688_v35 }
 0xf77   : > { %10697 = vst [vmem:[%s516_s24 + $0x8] sm:$0xf] %v10689_v55 }
 0xf78   : > { %10698 = vst [vmem:[%s516_s24 + $0xc] sm:$0xf] %v10690_v28 }
 0xf79   : > { %10699 = vst [vmem:[%s516_s24 + $0x10] sm:$0xf] %v10691_v39 }
 0xf7a   : > { %10700 = vst [vmem:[%s516_s24 + $0x14] sm:$0xf] %v10692_v19 }
 0xf7b   : > { %10701 = vst [vmem:[%s516_s24 + $0x18] sm:$0xf] %v10693_v41 }
 0xf7c   : > { %10702 = vst [vmem:[%s516_s24 + $0x1c] sm:$0xf] %v10694_v33 }
 0xf7d PF: > { %s13175_s21 = sld [smem:[#allocation7_spill]]  ;;  %s13178_s18 = smov %s10898_s19 }
 0xf7e   : > { %s13176_s29 = sld [smem:[#allocation5_spill]] }
 0xf7f   : > { %s13177_s20 = sld [smem:[#allocation8_spill]] }
 0xf83   : > { %p25_p7 = scmp.ge.s32.totalorder %s13175_s21, 4  }
 0xf84   : > { %s13179_s19 = smov %s13176_s29 }
 0xf85   :  { %27 = sbr.rel (!%p25_p7) target bundleno = 6 (0x6), region = 120 }
 0xf8a   :  { %10724 = vsyncpa [#allocation3], 1 }
 0xf8b   :  { %10726 = vsyncpa [#allocation3 + $0x1], 1 }

</bundles_post_ra>
